<compile_context>
chip_gen: v5e
topology: v5e:2x2
jax: 0.10.0
libtpu: 0.0.40
codegen_flags: <defaults>
</compile_context>

<pallas_src>
import functools

import jax
import jax.numpy as jnp
from jax import lax
from jax.experimental import pallas as pl
from jax.experimental.pallas import tpu as pltpu


def _sigmoid(z):
    # hand-rolled to guarantee a clean Mosaic lowering (exp on EUP + divide)
    return 1.0 / (1.0 + jnp.exp(-z))


# ---------------------------------------------------------------------------
# Fused kernel: channel gate -> gated input -> spatial gate -> output
# ---------------------------------------------------------------------------
def _cbam_kernel(wc_ref, x_ref, w1_ref, w2_ref, o_ref, *, ksize):
    # wc_ref: SMEM (2*k*k,) conv taps
    # x_ref : (1, C, H, W)   w1_ref: (Crp, C)   w2_ref: (C, Crp)   o_ref: (1, C, H, W)
    x = x_ref[0].astype(jnp.float32)                         # (C, H, W)
    C, H, W = x.shape

    # ---- channel attention: sigmoid(MLP(maxpool_hw) + MLP(avgpool_hw)) -------
    mx = jnp.max(jnp.max(x, axis=2), axis=1, keepdims=True)          # (C, 1)
    av = jnp.sum(jnp.sum(x, axis=2), axis=1, keepdims=True) * (1.0 / (H * W))

    w1 = w1_ref[...].astype(jnp.float32)                     # (Crp, C)
    w2 = w2_ref[...].astype(jnp.float32)                     # (C, Crp)

    def mlp(v):                                              # (C,1) -> (C,1)
        h = jnp.maximum(
            jnp.dot(w1, v, preferred_element_type=jnp.float32), 0.0)  # (Crp, 1)
        return jnp.dot(w2, h, preferred_element_type=jnp.float32)     # (C, 1)

    ch_att = _sigmoid(mlp(mx) + mlp(av))                     # (C, 1)
    xc = x * ch_att[:, :, None]                              # channel-gated input

    # ---- spatial attention: sigmoid(Conv7x7([max_c(xc), mean_c(xc)])) --------
    smax = jnp.max(xc, axis=0)                               # (H, W)
    smean = jnp.sum(xc, axis=0) * (1.0 / C)                  # (H, W)

    pad = ksize // 2
    zc = jnp.zeros((H, pad), jnp.float32)
    zr = jnp.zeros((pad, W + 2 * pad), jnp.float32)

    def zero_pad(a):                                         # (H, W) -> (H+2p, W+2p)
        a = jnp.concatenate([zc, a, zc], axis=1)
        return jnp.concatenate([zr, a, zr], axis=0)

    pmax = zero_pad(smax)
    pmean = zero_pad(smean)

    # Conv2d(2, 1, k, padding=k//2, bias=False) as 2*k*k shifted FMAs.
    acc = jnp.zeros((H, W), jnp.float32)
    for di in range(ksize):
        for dj in range(ksize):
            wmax = wc_ref[di * ksize + dj]                   # scalar from SMEM
            wavg = wc_ref[ksize * ksize + di * ksize + dj]
            acc = (acc
                   + wmax * pmax[di:di + H, dj:dj + W]
                   + wavg * pmean[di:di + H, dj:dj + W])

    s_att = _sigmoid(acc)                                    # (H, W)
    o_ref[0] = (xc * s_att[None, :, :]).astype(o_ref.dtype)


# ---------------------------------------------------------------------------
# Wrapper
# ---------------------------------------------------------------------------
def cbam_forward(x, w1, w2, w_conv):
    """CBAM forward.

    x:      (B, C, H, W)
    w1:     (C // reduction, C)   -- mlp[0].weight squeezed
    w2:     (C, C // reduction)   -- mlp[2].weight squeezed
    w_conv: (2, k, k)             -- conv.weight squeezed (channel 0 = max, 1 = avg)
    """
    B, C, H, W = x.shape
    Cr = w1.shape[0]
    k = w_conv.shape[-1]
    assert w1.shape == (Cr, C) and w2.shape == (C, Cr)
    assert w_conv.shape == (2, k, k)

    # Pad the tiny MLP hidden dim up to a sublane multiple; the zero rows/cols are
    # inert (relu(0) = 0, zero-weighted columns contribute nothing).
    Crp = max(8, ((Cr + 7) // 8) * 8)
    w1p = jnp.zeros((Crp, C), jnp.float32).at[:Cr].set(w1.astype(jnp.float32))
    w2p = jnp.zeros((C, Crp), jnp.float32).at[:, :Cr].set(w2.astype(jnp.float32))
    wc_flat = w_conv.astype(jnp.float32).reshape(2 * k * k)

    out = pl.pallas_call(
        functools.partial(_cbam_kernel, ksize=k),
        out_shape=jax.ShapeDtypeStruct((B, C, H, W), x.dtype),
        grid_spec=pltpu.PrefetchScalarGridSpec(
            num_scalar_prefetch=0,
            grid=(B,),
            in_specs=[
                pl.BlockSpec(memory_space=pltpu.MemorySpace.SMEM),    # conv taps
                pl.BlockSpec((1, C, H, W), lambda b: (b, 0, 0, 0)),   # x
                pl.BlockSpec((Crp, C), lambda b: (0, 0)),             # mlp weight 1
                pl.BlockSpec((C, Crp), lambda b: (0, 0)),             # mlp weight 2
            ],
            out_specs=pl.BlockSpec((1, C, H, W), lambda b: (b, 0, 0, 0)),
        ),
        compiler_params=pltpu.CompilerParams(
            dimension_semantics=("parallel",)),
    )(wc_flat, x, w1p, w2p)

    return out


# ---------------------------------------------------------------------------
# Pure-JAX reference (mirrors the PyTorch module)
# ---------------------------------------------------------------------------
def _reference(x, w1, w2, w_conv):
    x32 = x.astype(jnp.float32)
    mx = jnp.max(x32, axis=(2, 3))            # (B, C)
    av = jnp.mean(x32, axis=(2, 3))           # (B, C)

    def mlp(v):                               # v: (B, C)
        h = jnp.maximum(v @ w1.T, 0.0)
        return h @ w2.T

    ch = jax.nn.sigmoid(mlp(mx) + mlp(av))[:, :, None, None]
    xc = x32 * ch
    smax = jnp.max(xc, axis=1, keepdims=True)
    smean = jnp.mean(xc, axis=1, keepdims=True)
    sm = jnp.concatenate([smax, smean], axis=1)               # (B, 2, H, W)
    conv = lax.conv_general_dilated(
        sm, w_conv[None].astype(jnp.float32), window_strides=(1, 1),
        padding="SAME", dimension_numbers=("NCHW", "OIHW", "NCHW"))
    satt = jax.nn.sigmoid(conv)
    return (xc * satt).astype(x.dtype)


if __name__ == "__main__":
    key = jax.random.PRNGKey(0)
    B, C, H, W = 2, 32, 16, 16
    reduction, ksize = 16, 7
    Cr = C // reduction                        # = 2

    kx, k1, k2, kc = jax.random.split(key, 4)
    x = jax.random.normal(kx, (B, C, H, W), dtype=jnp.float32)
    # Weights of Conv2d(C, C//r, 1), Conv2d(C//r, C, 1), Conv2d(2, 1, 7) (all bias-free).
    w1 = jax.random.normal(k1, (Cr, C), dtype=jnp.float32) * (1.0 / jnp.sqrt(C))
    w2 = jax.random.normal(k2, (C, Cr), dtype=jnp.float32) * (1.0 / jnp.sqrt(Cr))
    w_conv = jax.random.normal(kc, (2, ksize, ksize), dtype=jnp.float32) * 0.1

    out = cbam_forward(x, w1, w2, w_conv)
    out = jax.block_until_ready(out)

    ref = _reference(x, w1, w2, w_conv)
    assert out.shape == x.shape and out.dtype == x.dtype
    max_err = float(jnp.max(jnp.abs(out - ref)))
    assert jnp.allclose(out, ref, atol=2e-5, rtol=2e-5), f"mismatch vs reference: {max_err}"

    print("KERNEL_OK")
</pallas_src>

<mosaic_0001>
module attributes {stable_mosaic.version = 11 : i64} {
  func.func @_cbam_kernel(%arg0: i32, %arg1: memref<98xf32, #tpu.memory_space<smem>>, %arg2: memref<1x32x16x16xf32, #tpu.memory_space<vmem>>, %arg3: memref<8x32xf32, #tpu.memory_space<vmem>>, %arg4: memref<32x8xf32, #tpu.memory_space<vmem>>, %arg5: memref<1x32x16x16xf32, #tpu.memory_space<vmem>>) attributes {dimension_semantics = [#tpu.dimension_semantics<parallel>], iteration_bounds = array<i64: 2>, scalar_prefetch = 0 : i64, scratch_operands = 0 : i64, tpu.core_type = #tpu.core_type<tc>, window_params = [{transform_indices = @transform_0, window_bounds = array<i64: 98>}, {transform_indices = @transform_1, window_bounds = array<i64: 1, 32, 16, 16>}, {pipeline_mode = #tpu.pipeline_mode<synchronous>, transform_indices = @transform_2, window_bounds = array<i64: 8, 32>}, {pipeline_mode = #tpu.pipeline_mode<synchronous>, transform_indices = @transform_3, window_bounds = array<i64: 32, 8>}, {transform_indices = @transform_4, window_bounds = array<i64: 1, 32, 16, 16>}]} {
    %c0 = arith.constant 0 : index
    %c0_0 = arith.constant 0 : index
    %c0_1 = arith.constant 0 : index
    %c0_2 = arith.constant 0 : index
    %0 = vector.load %arg2[%c0, %c0_0, %c0_1, %c0_2] : memref<1x32x16x16xf32, #tpu.memory_space<vmem>>, vector<1x32x16x16xf32>
    %1 = vector.shape_cast %0 : vector<1x32x16x16xf32> to vector<32x16x16xf32>
    %cst = arith.constant dense<0xFF800000> : vector<32x16xf32>
    %2 = vector.multi_reduction <maximumf>, %1, %cst [2] : vector<32x16x16xf32> to vector<32x16xf32>
    %cst_3 = arith.constant dense<0xFF800000> : vector<32xf32>
    %3 = vector.multi_reduction <maximumf>, %2, %cst_3 [1] : vector<32x16xf32> to vector<32xf32>
    %4 = vector.shape_cast %3 : vector<32xf32> to vector<32x1xf32>
    %cst_4 = arith.constant dense<0.000000e+00> : vector<32x16xf32>
    %5 = vector.multi_reduction <add>, %1, %cst_4 [2] : vector<32x16x16xf32> to vector<32x16xf32>
    %cst_5 = arith.constant dense<0.000000e+00> : vector<32xf32>
    %6 = vector.multi_reduction <add>, %5, %cst_5 [1] : vector<32x16xf32> to vector<32xf32>
    %7 = vector.shape_cast %6 : vector<32xf32> to vector<32x1xf32>
    %cst_6 = arith.constant 3.906250e-03 : f32
    %8 = vector.broadcast %cst_6 : f32 to vector<32x1xf32>
    %9 = arith.mulf %7, %8 : vector<32x1xf32>
    %c0_7 = arith.constant 0 : index
    %c0_8 = arith.constant 0 : index
    %10 = vector.load %arg3[%c0_7, %c0_8] : memref<8x32xf32, #tpu.memory_space<vmem>>, vector<8x32xf32>
    %c0_9 = arith.constant 0 : index
    %c0_10 = arith.constant 0 : index
    %11 = vector.load %arg4[%c0_9, %c0_10] : memref<32x8xf32, #tpu.memory_space<vmem>>, vector<32x8xf32>
    %cst_11 = arith.constant dense<0.000000e+00> : vector<8x1xf32>
    %12 = tpu.matmul %10, %4, %cst_11 {dimension_numbers = #tpu.dot_dimension_numbers<[1], [0], [0], [1], [0, 0, 1, 1], [], []>} : vector<8x32xf32>, vector<32x1xf32>, vector<8x1xf32> -> vector<8x1xf32>
    %cst_12 = arith.constant 0.000000e+00 : f32
    %13 = vector.broadcast %cst_12 : f32 to vector<8x1xf32>
    %14 = arith.maximumf %12, %13 : vector<8x1xf32>
    %cst_13 = arith.constant dense<0.000000e+00> : vector<32x1xf32>
    %15 = tpu.matmul %11, %14, %cst_13 {dimension_numbers = #tpu.dot_dimension_numbers<[1], [0], [0], [1], [0, 0, 1, 1], [], []>} : vector<32x8xf32>, vector<8x1xf32>, vector<32x1xf32> -> vector<32x1xf32>
    %cst_14 = arith.constant dense<0.000000e+00> : vector<8x1xf32>
    %16 = tpu.matmul %10, %9, %cst_14 {dimension_numbers = #tpu.dot_dimension_numbers<[1], [0], [0], [1], [0, 0, 1, 1], [], []>} : vector<8x32xf32>, vector<32x1xf32>, vector<8x1xf32> -> vector<8x1xf32>
    %cst_15 = arith.constant 0.000000e+00 : f32
    %17 = vector.broadcast %cst_15 : f32 to vector<8x1xf32>
    %18 = arith.maximumf %16, %17 : vector<8x1xf32>
    %cst_16 = arith.constant dense<0.000000e+00> : vector<32x1xf32>
    %19 = tpu.matmul %11, %18, %cst_16 {dimension_numbers = #tpu.dot_dimension_numbers<[1], [0], [0], [1], [0, 0, 1, 1], [], []>} : vector<32x8xf32>, vector<8x1xf32>, vector<32x1xf32> -> vector<32x1xf32>
    %20 = arith.addf %15, %19 : vector<32x1xf32>
    %cst_17 = arith.constant 0.000000e+00 : f32
    %21 = vector.broadcast %cst_17 : f32 to vector<32x1xf32>
    %22 = arith.subf %21, %20 : vector<32x1xf32>
    %23 = math.exp %22 : vector<32x1xf32>
    %cst_18 = arith.constant 1.000000e+00 : f32
    %24 = vector.broadcast %cst_18 : f32 to vector<32x1xf32>
    %25 = arith.addf %24, %23 : vector<32x1xf32>
    %cst_19 = arith.constant 1.000000e+00 : f32
    %26 = vector.broadcast %cst_19 : f32 to vector<32x1xf32>
    %27 = arith.divf %26, %25 : vector<32x1xf32>
    %28 = vector.shape_cast %27 : vector<32x1xf32> to vector<32x1x1xf32>
    %29 = vector.broadcast %28 : vector<32x1x1xf32> to vector<32x16x16xf32>
    %30 = arith.mulf %1, %29 : vector<32x16x16xf32>
    %cst_20 = arith.constant dense<0xFF800000> : vector<16x16xf32>
    %31 = vector.multi_reduction <maximumf>, %30, %cst_20 [0] : vector<32x16x16xf32> to vector<16x16xf32>
    %cst_21 = arith.constant dense<0.000000e+00> : vector<16x16xf32>
    %32 = vector.multi_reduction <add>, %30, %cst_21 [0] : vector<32x16x16xf32> to vector<16x16xf32>
    %cst_22 = arith.constant 3.125000e-02 : f32
    %33 = vector.broadcast %cst_22 : f32 to vector<16x16xf32>
    %34 = arith.mulf %32, %33 : vector<16x16xf32>
    %cst_23 = arith.constant 0.000000e+00 : f32
    %35 = vector.broadcast %cst_23 : f32 to vector<16x3xf32>
    %cst_24 = arith.constant 0.000000e+00 : f32
    %36 = vector.broadcast %cst_24 : f32 to vector<3x22xf32>
    %37 = tpu.concatenate %35, %31, %35 in 1 : vector<16x3xf32>, vector<16x16xf32>, vector<16x3xf32> -> vector<16x22xf32>
    %38 = tpu.concatenate %36, %37, %36 in 0 : vector<3x22xf32>, vector<16x22xf32>, vector<3x22xf32> -> vector<22x22xf32>
    %39 = tpu.concatenate %35, %34, %35 in 1 : vector<16x3xf32>, vector<16x16xf32>, vector<16x3xf32> -> vector<16x22xf32>
    %40 = tpu.concatenate %36, %39, %36 in 0 : vector<3x22xf32>, vector<16x22xf32>, vector<3x22xf32> -> vector<22x22xf32>
    %cst_25 = arith.constant 0.000000e+00 : f32
    %41 = vector.broadcast %cst_25 : f32 to vector<16x16xf32>
    %c0_26 = arith.constant 0 : index
    %42 = memref.load %arg1[%c0_26] : memref<98xf32, #tpu.memory_space<smem>>
    %c49 = arith.constant 49 : index
    %43 = memref.load %arg1[%c49] : memref<98xf32, #tpu.memory_space<smem>>
    %44 = vector.extract_strided_slice %38 {offsets = [0, 0], sizes = [16, 16], strides = [1, 1]} : vector<22x22xf32> to vector<16x16xf32>
    %45 = vector.broadcast %42 : f32 to vector<16x16xf32>
    %46 = arith.mulf %45, %44 : vector<16x16xf32>
    %47 = arith.addf %41, %46 : vector<16x16xf32>
    %48 = vector.extract_strided_slice %40 {offsets = [0, 0], sizes = [16, 16], strides = [1, 1]} : vector<22x22xf32> to vector<16x16xf32>
    %49 = vector.broadcast %43 : f32 to vector<16x16xf32>
    %50 = arith.mulf %49, %48 : vector<16x16xf32>
    %51 = arith.addf %47, %50 : vector<16x16xf32>
    %c1 = arith.constant 1 : index
    %52 = memref.load %arg1[%c1] : memref<98xf32, #tpu.memory_space<smem>>
    %c50 = arith.constant 50 : index
    %53 = memref.load %arg1[%c50] : memref<98xf32, #tpu.memory_space<smem>>
    %54 = vector.extract_strided_slice %38 {offsets = [0, 1], sizes = [16, 16], strides = [1, 1]} : vector<22x22xf32> to vector<16x16xf32>
    %55 = vector.broadcast %52 : f32 to vector<16x16xf32>
    %56 = arith.mulf %55, %54 : vector<16x16xf32>
    %57 = arith.addf %51, %56 : vector<16x16xf32>
    %58 = vector.extract_strided_slice %40 {offsets = [0, 1], sizes = [16, 16], strides = [1, 1]} : vector<22x22xf32> to vector<16x16xf32>
    %59 = vector.broadcast %53 : f32 to vector<16x16xf32>
    %60 = arith.mulf %59, %58 : vector<16x16xf32>
    %61 = arith.addf %57, %60 : vector<16x16xf32>
    %c2 = arith.constant 2 : index
    %62 = memref.load %arg1[%c2] : memref<98xf32, #tpu.memory_space<smem>>
    %c51 = arith.constant 51 : index
    %63 = memref.load %arg1[%c51] : memref<98xf32, #tpu.memory_space<smem>>
    %64 = vector.extract_strided_slice %38 {offsets = [0, 2], sizes = [16, 16], strides = [1, 1]} : vector<22x22xf32> to vector<16x16xf32>
    %65 = vector.broadcast %62 : f32 to vector<16x16xf32>
    %66 = arith.mulf %65, %64 : vector<16x16xf32>
    %67 = arith.addf %61, %66 : vector<16x16xf32>
    %68 = vector.extract_strided_slice %40 {offsets = [0, 2], sizes = [16, 16], strides = [1, 1]} : vector<22x22xf32> to vector<16x16xf32>
    %69 = vector.broadcast %63 : f32 to vector<16x16xf32>
    %70 = arith.mulf %69, %68 : vector<16x16xf32>
    %71 = arith.addf %67, %70 : vector<16x16xf32>
    %c3 = arith.constant 3 : index
    %72 = memref.load %arg1[%c3] : memref<98xf32, #tpu.memory_space<smem>>
    %c52 = arith.constant 52 : index
    %73 = memref.load %arg1[%c52] : memref<98xf32, #tpu.memory_space<smem>>
    %74 = vector.extract_strided_slice %38 {offsets = [0, 3], sizes = [16, 16], strides = [1, 1]} : vector<22x22xf32> to vector<16x16xf32>
    %75 = vector.broadcast %72 : f32 to vector<16x16xf32>
    %76 = arith.mulf %75, %74 : vector<16x16xf32>
    %77 = arith.addf %71, %76 : vector<16x16xf32>
    %78 = vector.extract_strided_slice %40 {offsets = [0, 3], sizes = [16, 16], strides = [1, 1]} : vector<22x22xf32> to vector<16x16xf32>
    %79 = vector.broadcast %73 : f32 to vector<16x16xf32>
    %80 = arith.mulf %79, %78 : vector<16x16xf32>
    %81 = arith.addf %77, %80 : vector<16x16xf32>
    %c4 = arith.constant 4 : index
    %82 = memref.load %arg1[%c4] : memref<98xf32, #tpu.memory_space<smem>>
    %c53 = arith.constant 53 : index
    %83 = memref.load %arg1[%c53] : memref<98xf32, #tpu.memory_space<smem>>
    %84 = vector.extract_strided_slice %38 {offsets = [0, 4], sizes = [16, 16], strides = [1, 1]} : vector<22x22xf32> to vector<16x16xf32>
    %85 = vector.broadcast %82 : f32 to vector<16x16xf32>
    %86 = arith.mulf %85, %84 : vector<16x16xf32>
    %87 = arith.addf %81, %86 : vector<16x16xf32>
    %88 = vector.extract_strided_slice %40 {offsets = [0, 4], sizes = [16, 16], strides = [1, 1]} : vector<22x22xf32> to vector<16x16xf32>
    %89 = vector.broadcast %83 : f32 to vector<16x16xf32>
    %90 = arith.mulf %89, %88 : vector<16x16xf32>
    %91 = arith.addf %87, %90 : vector<16x16xf32>
    %c5 = arith.constant 5 : index
    %92 = memref.load %arg1[%c5] : memref<98xf32, #tpu.memory_space<smem>>
    %c54 = arith.constant 54 : index
    %93 = memref.load %arg1[%c54] : memref<98xf32, #tpu.memory_space<smem>>
    %94 = vector.extract_strided_slice %38 {offsets = [0, 5], sizes = [16, 16], strides = [1, 1]} : vector<22x22xf32> to vector<16x16xf32>
    %95 = vector.broadcast %92 : f32 to vector<16x16xf32>
    %96 = arith.mulf %95, %94 : vector<16x16xf32>
    %97 = arith.addf %91, %96 : vector<16x16xf32>
    %98 = vector.extract_strided_slice %40 {offsets = [0, 5], sizes = [16, 16], strides = [1, 1]} : vector<22x22xf32> to vector<16x16xf32>
    %99 = vector.broadcast %93 : f32 to vector<16x16xf32>
    %100 = arith.mulf %99, %98 : vector<16x16xf32>
    %101 = arith.addf %97, %100 : vector<16x16xf32>
    %c6 = arith.constant 6 : index
    %102 = memref.load %arg1[%c6] : memref<98xf32, #tpu.memory_space<smem>>
    %c55 = arith.constant 55 : index
    %103 = memref.load %arg1[%c55] : memref<98xf32, #tpu.memory_space<smem>>
    %104 = vector.extract_strided_slice %38 {offsets = [0, 6], sizes = [16, 16], strides = [1, 1]} : vector<22x22xf32> to vector<16x16xf32>
    %105 = vector.broadcast %102 : f32 to vector<16x16xf32>
    %106 = arith.mulf %105, %104 : vector<16x16xf32>
    %107 = arith.addf %101, %106 : vector<16x16xf32>
    %108 = vector.extract_strided_slice %40 {offsets = [0, 6], sizes = [16, 16], strides = [1, 1]} : vector<22x22xf32> to vector<16x16xf32>
    %109 = vector.broadcast %103 : f32 to vector<16x16xf32>
    %110 = arith.mulf %109, %108 : vector<16x16xf32>
    %111 = arith.addf %107, %110 : vector<16x16xf32>
    %c7 = arith.constant 7 : index
    %112 = memref.load %arg1[%c7] : memref<98xf32, #tpu.memory_space<smem>>
    %c56 = arith.constant 56 : index
    %113 = memref.load %arg1[%c56] : memref<98xf32, #tpu.memory_space<smem>>
    %114 = vector.extract_strided_slice %38 {offsets = [1, 0], sizes = [16, 16], strides = [1, 1]} : vector<22x22xf32> to vector<16x16xf32>
    %115 = vector.broadcast %112 : f32 to vector<16x16xf32>
    %116 = arith.mulf %115, %114 : vector<16x16xf32>
    %117 = arith.addf %111, %116 : vector<16x16xf32>
    %118 = vector.extract_strided_slice %40 {offsets = [1, 0], sizes = [16, 16], strides = [1, 1]} : vector<22x22xf32> to vector<16x16xf32>
    %119 = vector.broadcast %113 : f32 to vector<16x16xf32>
    %120 = arith.mulf %119, %118 : vector<16x16xf32>
    %121 = arith.addf %117, %120 : vector<16x16xf32>
    %c8 = arith.constant 8 : index
    %122 = memref.load %arg1[%c8] : memref<98xf32, #tpu.memory_space<smem>>
    %c57 = arith.constant 57 : index
    %123 = memref.load %arg1[%c57] : memref<98xf32, #tpu.memory_space<smem>>
    %124 = vector.extract_strided_slice %38 {offsets = [1, 1], sizes = [16, 16], strides = [1, 1]} : vector<22x22xf32> to vector<16x16xf32>
    %125 = vector.broadcast %122 : f32 to vector<16x16xf32>
    %126 = arith.mulf %125, %124 : vector<16x16xf32>
    %127 = arith.addf %121, %126 : vector<16x16xf32>
    %128 = vector.extract_strided_slice %40 {offsets = [1, 1], sizes = [16, 16], strides = [1, 1]} : vector<22x22xf32> to vector<16x16xf32>
    %129 = vector.broadcast %123 : f32 to vector<16x16xf32>
    %130 = arith.mulf %129, %128 : vector<16x16xf32>
    %131 = arith.addf %127, %130 : vector<16x16xf32>
    %c9 = arith.constant 9 : index
    %132 = memref.load %arg1[%c9] : memref<98xf32, #tpu.memory_space<smem>>
    %c58 = arith.constant 58 : index
    %133 = memref.load %arg1[%c58] : memref<98xf32, #tpu.memory_space<smem>>
    %134 = vector.extract_strided_slice %38 {offsets = [1, 2], sizes = [16, 16], strides = [1, 1]} : vector<22x22xf32> to vector<16x16xf32>
    %135 = vector.broadcast %132 : f32 to vector<16x16xf32>
    %136 = arith.mulf %135, %134 : vector<16x16xf32>
    %137 = arith.addf %131, %136 : vector<16x16xf32>
    %138 = vector.extract_strided_slice %40 {offsets = [1, 2], sizes = [16, 16], strides = [1, 1]} : vector<22x22xf32> to vector<16x16xf32>
    %139 = vector.broadcast %133 : f32 to vector<16x16xf32>
    %140 = arith.mulf %139, %138 : vector<16x16xf32>
    %141 = arith.addf %137, %140 : vector<16x16xf32>
    %c10 = arith.constant 10 : index
    %142 = memref.load %arg1[%c10] : memref<98xf32, #tpu.memory_space<smem>>
    %c59 = arith.constant 59 : index
    %143 = memref.load %arg1[%c59] : memref<98xf32, #tpu.memory_space<smem>>
    %144 = vector.extract_strided_slice %38 {offsets = [1, 3], sizes = [16, 16], strides = [1, 1]} : vector<22x22xf32> to vector<16x16xf32>
    %145 = vector.broadcast %142 : f32 to vector<16x16xf32>
    %146 = arith.mulf %145, %144 : vector<16x16xf32>
    %147 = arith.addf %141, %146 : vector<16x16xf32>
    %148 = vector.extract_strided_slice %40 {offsets = [1, 3], sizes = [16, 16], strides = [1, 1]} : vector<22x22xf32> to vector<16x16xf32>
    %149 = vector.broadcast %143 : f32 to vector<16x16xf32>
    %150 = arith.mulf %149, %148 : vector<16x16xf32>
    %151 = arith.addf %147, %150 : vector<16x16xf32>
    %c11 = arith.constant 11 : index
    %152 = memref.load %arg1[%c11] : memref<98xf32, #tpu.memory_space<smem>>
    %c60 = arith.constant 60 : index
    %153 = memref.load %arg1[%c60] : memref<98xf32, #tpu.memory_space<smem>>
    %154 = vector.extract_strided_slice %38 {offsets = [1, 4], sizes = [16, 16], strides = [1, 1]} : vector<22x22xf32> to vector<16x16xf32>
    %155 = vector.broadcast %152 : f32 to vector<16x16xf32>
    %156 = arith.mulf %155, %154 : vector<16x16xf32>
    %157 = arith.addf %151, %156 : vector<16x16xf32>
    %158 = vector.extract_strided_slice %40 {offsets = [1, 4], sizes = [16, 16], strides = [1, 1]} : vector<22x22xf32> to vector<16x16xf32>
    %159 = vector.broadcast %153 : f32 to vector<16x16xf32>
    %160 = arith.mulf %159, %158 : vector<16x16xf32>
    %161 = arith.addf %157, %160 : vector<16x16xf32>
    %c12 = arith.constant 12 : index
    %162 = memref.load %arg1[%c12] : memref<98xf32, #tpu.memory_space<smem>>
    %c61 = arith.constant 61 : index
    %163 = memref.load %arg1[%c61] : memref<98xf32, #tpu.memory_space<smem>>
    %164 = vector.extract_strided_slice %38 {offsets = [1, 5], sizes = [16, 16], strides = [1, 1]} : vector<22x22xf32> to vector<16x16xf32>
    %165 = vector.broadcast %162 : f32 to vector<16x16xf32>
    %166 = arith.mulf %165, %164 : vector<16x16xf32>
    %167 = arith.addf %161, %166 : vector<16x16xf32>
    %168 = vector.extract_strided_slice %40 {offsets = [1, 5], sizes = [16, 16], strides = [1, 1]} : vector<22x22xf32> to vector<16x16xf32>
    %169 = vector.broadcast %163 : f32 to vector<16x16xf32>
    %170 = arith.mulf %169, %168 : vector<16x16xf32>
    %171 = arith.addf %167, %170 : vector<16x16xf32>
    %c13 = arith.constant 13 : index
    %172 = memref.load %arg1[%c13] : memref<98xf32, #tpu.memory_space<smem>>
    %c62 = arith.constant 62 : index
    %173 = memref.load %arg1[%c62] : memref<98xf32, #tpu.memory_space<smem>>
    %174 = vector.extract_strided_slice %38 {offsets = [1, 6], sizes = [16, 16], strides = [1, 1]} : vector<22x22xf32> to vector<16x16xf32>
    %175 = vector.broadcast %172 : f32 to vector<16x16xf32>
    %176 = arith.mulf %175, %174 : vector<16x16xf32>
    %177 = arith.addf %171, %176 : vector<16x16xf32>
    %178 = vector.extract_strided_slice %40 {offsets = [1, 6], sizes = [16, 16], strides = [1, 1]} : vector<22x22xf32> to vector<16x16xf32>
    %179 = vector.broadcast %173 : f32 to vector<16x16xf32>
    %180 = arith.mulf %179, %178 : vector<16x16xf32>
    %181 = arith.addf %177, %180 : vector<16x16xf32>
    %c14 = arith.constant 14 : index
    %182 = memref.load %arg1[%c14] : memref<98xf32, #tpu.memory_space<smem>>
    %c63 = arith.constant 63 : index
    %183 = memref.load %arg1[%c63] : memref<98xf32, #tpu.memory_space<smem>>
    %184 = vector.extract_strided_slice %38 {offsets = [2, 0], sizes = [16, 16], strides = [1, 1]} : vector<22x22xf32> to vector<16x16xf32>
    %185 = vector.broadcast %182 : f32 to vector<16x16xf32>
    %186 = arith.mulf %185, %184 : vector<16x16xf32>
    %187 = arith.addf %181, %186 : vector<16x16xf32>
    %188 = vector.extract_strided_slice %40 {offsets = [2, 0], sizes = [16, 16], strides = [1, 1]} : vector<22x22xf32> to vector<16x16xf32>
    %189 = vector.broadcast %183 : f32 to vector<16x16xf32>
    %190 = arith.mulf %189, %188 : vector<16x16xf32>
    %191 = arith.addf %187, %190 : vector<16x16xf32>
    %c15 = arith.constant 15 : index
    %192 = memref.load %arg1[%c15] : memref<98xf32, #tpu.memory_space<smem>>
    %c64 = arith.constant 64 : index
    %193 = memref.load %arg1[%c64] : memref<98xf32, #tpu.memory_space<smem>>
    %194 = vector.extract_strided_slice %38 {offsets = [2, 1], sizes = [16, 16], strides = [1, 1]} : vector<22x22xf32> to vector<16x16xf32>
    %195 = vector.broadcast %192 : f32 to vector<16x16xf32>
    %196 = arith.mulf %195, %194 : vector<16x16xf32>
    %197 = arith.addf %191, %196 : vector<16x16xf32>
    %198 = vector.extract_strided_slice %40 {offsets = [2, 1], sizes = [16, 16], strides = [1, 1]} : vector<22x22xf32> to vector<16x16xf32>
    %199 = vector.broadcast %193 : f32 to vector<16x16xf32>
    %200 = arith.mulf %199, %198 : vector<16x16xf32>
    %201 = arith.addf %197, %200 : vector<16x16xf32>
    %c16 = arith.constant 16 : index
    %202 = memref.load %arg1[%c16] : memref<98xf32, #tpu.memory_space<smem>>
    %c65 = arith.constant 65 : index
    %203 = memref.load %arg1[%c65] : memref<98xf32, #tpu.memory_space<smem>>
    %204 = vector.extract_strided_slice %38 {offsets = [2, 2], sizes = [16, 16], strides = [1, 1]} : vector<22x22xf32> to vector<16x16xf32>
    %205 = vector.broadcast %202 : f32 to vector<16x16xf32>
    %206 = arith.mulf %205, %204 : vector<16x16xf32>
    %207 = arith.addf %201, %206 : vector<16x16xf32>
    %208 = vector.extract_strided_slice %40 {offsets = [2, 2], sizes = [16, 16], strides = [1, 1]} : vector<22x22xf32> to vector<16x16xf32>
    %209 = vector.broadcast %203 : f32 to vector<16x16xf32>
    %210 = arith.mulf %209, %208 : vector<16x16xf32>
    %211 = arith.addf %207, %210 : vector<16x16xf32>
    %c17 = arith.constant 17 : index
    %212 = memref.load %arg1[%c17] : memref<98xf32, #tpu.memory_space<smem>>
    %c66 = arith.constant 66 : index
    %213 = memref.load %arg1[%c66] : memref<98xf32, #tpu.memory_space<smem>>
    %214 = vector.extract_strided_slice %38 {offsets = [2, 3], sizes = [16, 16], strides = [1, 1]} : vector<22x22xf32> to vector<16x16xf32>
    %215 = vector.broadcast %212 : f32 to vector<16x16xf32>
    %216 = arith.mulf %215, %214 : vector<16x16xf32>
    %217 = arith.addf %211, %216 : vector<16x16xf32>
    %218 = vector.extract_strided_slice %40 {offsets = [2, 3], sizes = [16, 16], strides = [1, 1]} : vector<22x22xf32> to vector<16x16xf32>
    %219 = vector.broadcast %213 : f32 to vector<16x16xf32>
    %220 = arith.mulf %219, %218 : vector<16x16xf32>
    %221 = arith.addf %217, %220 : vector<16x16xf32>
    %c18 = arith.constant 18 : index
    %222 = memref.load %arg1[%c18] : memref<98xf32, #tpu.memory_space<smem>>
    %c67 = arith.constant 67 : index
    %223 = memref.load %arg1[%c67] : memref<98xf32, #tpu.memory_space<smem>>
    %224 = vector.extract_strided_slice %38 {offsets = [2, 4], sizes = [16, 16], strides = [1, 1]} : vector<22x22xf32> to vector<16x16xf32>
    %225 = vector.broadcast %222 : f32 to vector<16x16xf32>
    %226 = arith.mulf %225, %224 : vector<16x16xf32>
    %227 = arith.addf %221, %226 : vector<16x16xf32>
    %228 = vector.extract_strided_slice %40 {offsets = [2, 4], sizes = [16, 16], strides = [1, 1]} : vector<22x22xf32> to vector<16x16xf32>
    %229 = vector.broadcast %223 : f32 to vector<16x16xf32>
    %230 = arith.mulf %229, %228 : vector<16x16xf32>
    %231 = arith.addf %227, %230 : vector<16x16xf32>
    %c19 = arith.constant 19 : index
    %232 = memref.load %arg1[%c19] : memref<98xf32, #tpu.memory_space<smem>>
    %c68 = arith.constant 68 : index
    %233 = memref.load %arg1[%c68] : memref<98xf32, #tpu.memory_space<smem>>
    %234 = vector.extract_strided_slice %38 {offsets = [2, 5], sizes = [16, 16], strides = [1, 1]} : vector<22x22xf32> to vector<16x16xf32>
    %235 = vector.broadcast %232 : f32 to vector<16x16xf32>
    %236 = arith.mulf %235, %234 : vector<16x16xf32>
    %237 = arith.addf %231, %236 : vector<16x16xf32>
    %238 = vector.extract_strided_slice %40 {offsets = [2, 5], sizes = [16, 16], strides = [1, 1]} : vector<22x22xf32> to vector<16x16xf32>
    %239 = vector.broadcast %233 : f32 to vector<16x16xf32>
    %240 = arith.mulf %239, %238 : vector<16x16xf32>
    %241 = arith.addf %237, %240 : vector<16x16xf32>
    %c20 = arith.constant 20 : index
    %242 = memref.load %arg1[%c20] : memref<98xf32, #tpu.memory_space<smem>>
    %c69 = arith.constant 69 : index
    %243 = memref.load %arg1[%c69] : memref<98xf32, #tpu.memory_space<smem>>
    %244 = vector.extract_strided_slice %38 {offsets = [2, 6], sizes = [16, 16], strides = [1, 1]} : vector<22x22xf32> to vector<16x16xf32>
    %245 = vector.broadcast %242 : f32 to vector<16x16xf32>
    %246 = arith.mulf %245, %244 : vector<16x16xf32>
    %247 = arith.addf %241, %246 : vector<16x16xf32>
    %248 = vector.extract_strided_slice %40 {offsets = [2, 6], sizes = [16, 16], strides = [1, 1]} : vector<22x22xf32> to vector<16x16xf32>
    %249 = vector.broadcast %243 : f32 to vector<16x16xf32>
    %250 = arith.mulf %249, %248 : vector<16x16xf32>
    %251 = arith.addf %247, %250 : vector<16x16xf32>
    %c21 = arith.constant 21 : index
    %252 = memref.load %arg1[%c21] : memref<98xf32, #tpu.memory_space<smem>>
    %c70 = arith.constant 70 : index
    %253 = memref.load %arg1[%c70] : memref<98xf32, #tpu.memory_space<smem>>
    %254 = vector.extract_strided_slice %38 {offsets = [3, 0], sizes = [16, 16], strides = [1, 1]} : vector<22x22xf32> to vector<16x16xf32>
    %255 = vector.broadcast %252 : f32 to vector<16x16xf32>
    %256 = arith.mulf %255, %254 : vector<16x16xf32>
    %257 = arith.addf %251, %256 : vector<16x16xf32>
    %258 = vector.extract_strided_slice %40 {offsets = [3, 0], sizes = [16, 16], strides = [1, 1]} : vector<22x22xf32> to vector<16x16xf32>
    %259 = vector.broadcast %253 : f32 to vector<16x16xf32>
    %260 = arith.mulf %259, %258 : vector<16x16xf32>
    %261 = arith.addf %257, %260 : vector<16x16xf32>
    %c22 = arith.constant 22 : index
    %262 = memref.load %arg1[%c22] : memref<98xf32, #tpu.memory_space<smem>>
    %c71 = arith.constant 71 : index
    %263 = memref.load %arg1[%c71] : memref<98xf32, #tpu.memory_space<smem>>
    %264 = vector.extract_strided_slice %38 {offsets = [3, 1], sizes = [16, 16], strides = [1, 1]} : vector<22x22xf32> to vector<16x16xf32>
    %265 = vector.broadcast %262 : f32 to vector<16x16xf32>
    %266 = arith.mulf %265, %264 : vector<16x16xf32>
    %267 = arith.addf %261, %266 : vector<16x16xf32>
    %268 = vector.extract_strided_slice %40 {offsets = [3, 1], sizes = [16, 16], strides = [1, 1]} : vector<22x22xf32> to vector<16x16xf32>
    %269 = vector.broadcast %263 : f32 to vector<16x16xf32>
    %270 = arith.mulf %269, %268 : vector<16x16xf32>
    %271 = arith.addf %267, %270 : vector<16x16xf32>
    %c23 = arith.constant 23 : index
    %272 = memref.load %arg1[%c23] : memref<98xf32, #tpu.memory_space<smem>>
    %c72 = arith.constant 72 : index
    %273 = memref.load %arg1[%c72] : memref<98xf32, #tpu.memory_space<smem>>
    %274 = vector.extract_strided_slice %38 {offsets = [3, 2], sizes = [16, 16], strides = [1, 1]} : vector<22x22xf32> to vector<16x16xf32>
    %275 = vector.broadcast %272 : f32 to vector<16x16xf32>
    %276 = arith.mulf %275, %274 : vector<16x16xf32>
    %277 = arith.addf %271, %276 : vector<16x16xf32>
    %278 = vector.extract_strided_slice %40 {offsets = [3, 2], sizes = [16, 16], strides = [1, 1]} : vector<22x22xf32> to vector<16x16xf32>
    %279 = vector.broadcast %273 : f32 to vector<16x16xf32>
    %280 = arith.mulf %279, %278 : vector<16x16xf32>
    %281 = arith.addf %277, %280 : vector<16x16xf32>
    %c24 = arith.constant 24 : index
    %282 = memref.load %arg1[%c24] : memref<98xf32, #tpu.memory_space<smem>>
    %c73 = arith.constant 73 : index
    %283 = memref.load %arg1[%c73] : memref<98xf32, #tpu.memory_space<smem>>
    %284 = vector.extract_strided_slice %38 {offsets = [3, 3], sizes = [16, 16], strides = [1, 1]} : vector<22x22xf32> to vector<16x16xf32>
    %285 = vector.broadcast %282 : f32 to vector<16x16xf32>
    %286 = arith.mulf %285, %284 : vector<16x16xf32>
    %287 = arith.addf %281, %286 : vector<16x16xf32>
    %288 = vector.extract_strided_slice %40 {offsets = [3, 3], sizes = [16, 16], strides = [1, 1]} : vector<22x22xf32> to vector<16x16xf32>
    %289 = vector.broadcast %283 : f32 to vector<16x16xf32>
    %290 = arith.mulf %289, %288 : vector<16x16xf32>
    %291 = arith.addf %287, %290 : vector<16x16xf32>
    %c25 = arith.constant 25 : index
    %292 = memref.load %arg1[%c25] : memref<98xf32, #tpu.memory_space<smem>>
    %c74 = arith.constant 74 : index
    %293 = memref.load %arg1[%c74] : memref<98xf32, #tpu.memory_space<smem>>
    %294 = vector.extract_strided_slice %38 {offsets = [3, 4], sizes = [16, 16], strides = [1, 1]} : vector<22x22xf32> to vector<16x16xf32>
    %295 = vector.broadcast %292 : f32 to vector<16x16xf32>
    %296 = arith.mulf %295, %294 : vector<16x16xf32>
    %297 = arith.addf %291, %296 : vector<16x16xf32>
    %298 = vector.extract_strided_slice %40 {offsets = [3, 4], sizes = [16, 16], strides = [1, 1]} : vector<22x22xf32> to vector<16x16xf32>
    %299 = vector.broadcast %293 : f32 to vector<16x16xf32>
    %300 = arith.mulf %299, %298 : vector<16x16xf32>
    %301 = arith.addf %297, %300 : vector<16x16xf32>
    %c26 = arith.constant 26 : index
    %302 = memref.load %arg1[%c26] : memref<98xf32, #tpu.memory_space<smem>>
    %c75 = arith.constant 75 : index
    %303 = memref.load %arg1[%c75] : memref<98xf32, #tpu.memory_space<smem>>
    %304 = vector.extract_strided_slice %38 {offsets = [3, 5], sizes = [16, 16], strides = [1, 1]} : vector<22x22xf32> to vector<16x16xf32>
    %305 = vector.broadcast %302 : f32 to vector<16x16xf32>
    %306 = arith.mulf %305, %304 : vector<16x16xf32>
    %307 = arith.addf %301, %306 : vector<16x16xf32>
    %308 = vector.extract_strided_slice %40 {offsets = [3, 5], sizes = [16, 16], strides = [1, 1]} : vector<22x22xf32> to vector<16x16xf32>
    %309 = vector.broadcast %303 : f32 to vector<16x16xf32>
    %310 = arith.mulf %309, %308 : vector<16x16xf32>
    %311 = arith.addf %307, %310 : vector<16x16xf32>
    %c27 = arith.constant 27 : index
    %312 = memref.load %arg1[%c27] : memref<98xf32, #tpu.memory_space<smem>>
    %c76 = arith.constant 76 : index
    %313 = memref.load %arg1[%c76] : memref<98xf32, #tpu.memory_space<smem>>
    %314 = vector.extract_strided_slice %38 {offsets = [3, 6], sizes = [16, 16], strides = [1, 1]} : vector<22x22xf32> to vector<16x16xf32>
    %315 = vector.broadcast %312 : f32 to vector<16x16xf32>
    %316 = arith.mulf %315, %314 : vector<16x16xf32>
    %317 = arith.addf %311, %316 : vector<16x16xf32>
    %318 = vector.extract_strided_slice %40 {offsets = [3, 6], sizes = [16, 16], strides = [1, 1]} : vector<22x22xf32> to vector<16x16xf32>
    %319 = vector.broadcast %313 : f32 to vector<16x16xf32>
    %320 = arith.mulf %319, %318 : vector<16x16xf32>
    %321 = arith.addf %317, %320 : vector<16x16xf32>
    %c28 = arith.constant 28 : index
    %322 = memref.load %arg1[%c28] : memref<98xf32, #tpu.memory_space<smem>>
    %c77 = arith.constant 77 : index
    %323 = memref.load %arg1[%c77] : memref<98xf32, #tpu.memory_space<smem>>
    %324 = vector.extract_strided_slice %38 {offsets = [4, 0], sizes = [16, 16], strides = [1, 1]} : vector<22x22xf32> to vector<16x16xf32>
    %325 = vector.broadcast %322 : f32 to vector<16x16xf32>
    %326 = arith.mulf %325, %324 : vector<16x16xf32>
    %327 = arith.addf %321, %326 : vector<16x16xf32>
    %328 = vector.extract_strided_slice %40 {offsets = [4, 0], sizes = [16, 16], strides = [1, 1]} : vector<22x22xf32> to vector<16x16xf32>
    %329 = vector.broadcast %323 : f32 to vector<16x16xf32>
    %330 = arith.mulf %329, %328 : vector<16x16xf32>
    %331 = arith.addf %327, %330 : vector<16x16xf32>
    %c29 = arith.constant 29 : index
    %332 = memref.load %arg1[%c29] : memref<98xf32, #tpu.memory_space<smem>>
    %c78 = arith.constant 78 : index
    %333 = memref.load %arg1[%c78] : memref<98xf32, #tpu.memory_space<smem>>
    %334 = vector.extract_strided_slice %38 {offsets = [4, 1], sizes = [16, 16], strides = [1, 1]} : vector<22x22xf32> to vector<16x16xf32>
    %335 = vector.broadcast %332 : f32 to vector<16x16xf32>
    %336 = arith.mulf %335, %334 : vector<16x16xf32>
    %337 = arith.addf %331, %336 : vector<16x16xf32>
    %338 = vector.extract_strided_slice %40 {offsets = [4, 1], sizes = [16, 16], strides = [1, 1]} : vector<22x22xf32> to vector<16x16xf32>
    %339 = vector.broadcast %333 : f32 to vector<16x16xf32>
    %340 = arith.mulf %339, %338 : vector<16x16xf32>
    %341 = arith.addf %337, %340 : vector<16x16xf32>
    %c30 = arith.constant 30 : index
    %342 = memref.load %arg1[%c30] : memref<98xf32, #tpu.memory_space<smem>>
    %c79 = arith.constant 79 : index
    %343 = memref.load %arg1[%c79] : memref<98xf32, #tpu.memory_space<smem>>
    %344 = vector.extract_strided_slice %38 {offsets = [4, 2], sizes = [16, 16], strides = [1, 1]} : vector<22x22xf32> to vector<16x16xf32>
    %345 = vector.broadcast %342 : f32 to vector<16x16xf32>
    %346 = arith.mulf %345, %344 : vector<16x16xf32>
    %347 = arith.addf %341, %346 : vector<16x16xf32>
    %348 = vector.extract_strided_slice %40 {offsets = [4, 2], sizes = [16, 16], strides = [1, 1]} : vector<22x22xf32> to vector<16x16xf32>
    %349 = vector.broadcast %343 : f32 to vector<16x16xf32>
    %350 = arith.mulf %349, %348 : vector<16x16xf32>
    %351 = arith.addf %347, %350 : vector<16x16xf32>
    %c31 = arith.constant 31 : index
    %352 = memref.load %arg1[%c31] : memref<98xf32, #tpu.memory_space<smem>>
    %c80 = arith.constant 80 : index
    %353 = memref.load %arg1[%c80] : memref<98xf32, #tpu.memory_space<smem>>
    %354 = vector.extract_strided_slice %38 {offsets = [4, 3], sizes = [16, 16], strides = [1, 1]} : vector<22x22xf32> to vector<16x16xf32>
    %355 = vector.broadcast %352 : f32 to vector<16x16xf32>
    %356 = arith.mulf %355, %354 : vector<16x16xf32>
    %357 = arith.addf %351, %356 : vector<16x16xf32>
    %358 = vector.extract_strided_slice %40 {offsets = [4, 3], sizes = [16, 16], strides = [1, 1]} : vector<22x22xf32> to vector<16x16xf32>
    %359 = vector.broadcast %353 : f32 to vector<16x16xf32>
    %360 = arith.mulf %359, %358 : vector<16x16xf32>
    %361 = arith.addf %357, %360 : vector<16x16xf32>
    %c32 = arith.constant 32 : index
    %362 = memref.load %arg1[%c32] : memref<98xf32, #tpu.memory_space<smem>>
    %c81 = arith.constant 81 : index
    %363 = memref.load %arg1[%c81] : memref<98xf32, #tpu.memory_space<smem>>
    %364 = vector.extract_strided_slice %38 {offsets = [4, 4], sizes = [16, 16], strides = [1, 1]} : vector<22x22xf32> to vector<16x16xf32>
    %365 = vector.broadcast %362 : f32 to vector<16x16xf32>
    %366 = arith.mulf %365, %364 : vector<16x16xf32>
    %367 = arith.addf %361, %366 : vector<16x16xf32>
    %368 = vector.extract_strided_slice %40 {offsets = [4, 4], sizes = [16, 16], strides = [1, 1]} : vector<22x22xf32> to vector<16x16xf32>
    %369 = vector.broadcast %363 : f32 to vector<16x16xf32>
    %370 = arith.mulf %369, %368 : vector<16x16xf32>
    %371 = arith.addf %367, %370 : vector<16x16xf32>
    %c33 = arith.constant 33 : index
    %372 = memref.load %arg1[%c33] : memref<98xf32, #tpu.memory_space<smem>>
    %c82 = arith.constant 82 : index
    %373 = memref.load %arg1[%c82] : memref<98xf32, #tpu.memory_space<smem>>
    %374 = vector.extract_strided_slice %38 {offsets = [4, 5], sizes = [16, 16], strides = [1, 1]} : vector<22x22xf32> to vector<16x16xf32>
    %375 = vector.broadcast %372 : f32 to vector<16x16xf32>
    %376 = arith.mulf %375, %374 : vector<16x16xf32>
    %377 = arith.addf %371, %376 : vector<16x16xf32>
    %378 = vector.extract_strided_slice %40 {offsets = [4, 5], sizes = [16, 16], strides = [1, 1]} : vector<22x22xf32> to vector<16x16xf32>
    %379 = vector.broadcast %373 : f32 to vector<16x16xf32>
    %380 = arith.mulf %379, %378 : vector<16x16xf32>
    %381 = arith.addf %377, %380 : vector<16x16xf32>
    %c34 = arith.constant 34 : index
    %382 = memref.load %arg1[%c34] : memref<98xf32, #tpu.memory_space<smem>>
    %c83 = arith.constant 83 : index
    %383 = memref.load %arg1[%c83] : memref<98xf32, #tpu.memory_space<smem>>
    %384 = vector.extract_strided_slice %38 {offsets = [4, 6], sizes = [16, 16], strides = [1, 1]} : vector<22x22xf32> to vector<16x16xf32>
    %385 = vector.broadcast %382 : f32 to vector<16x16xf32>
    %386 = arith.mulf %385, %384 : vector<16x16xf32>
    %387 = arith.addf %381, %386 : vector<16x16xf32>
    %388 = vector.extract_strided_slice %40 {offsets = [4, 6], sizes = [16, 16], strides = [1, 1]} : vector<22x22xf32> to vector<16x16xf32>
    %389 = vector.broadcast %383 : f32 to vector<16x16xf32>
    %390 = arith.mulf %389, %388 : vector<16x16xf32>
    %391 = arith.addf %387, %390 : vector<16x16xf32>
    %c35 = arith.constant 35 : index
    %392 = memref.load %arg1[%c35] : memref<98xf32, #tpu.memory_space<smem>>
    %c84 = arith.constant 84 : index
    %393 = memref.load %arg1[%c84] : memref<98xf32, #tpu.memory_space<smem>>
    %394 = vector.extract_strided_slice %38 {offsets = [5, 0], sizes = [16, 16], strides = [1, 1]} : vector<22x22xf32> to vector<16x16xf32>
    %395 = vector.broadcast %392 : f32 to vector<16x16xf32>
    %396 = arith.mulf %395, %394 : vector<16x16xf32>
    %397 = arith.addf %391, %396 : vector<16x16xf32>
    %398 = vector.extract_strided_slice %40 {offsets = [5, 0], sizes = [16, 16], strides = [1, 1]} : vector<22x22xf32> to vector<16x16xf32>
    %399 = vector.broadcast %393 : f32 to vector<16x16xf32>
    %400 = arith.mulf %399, %398 : vector<16x16xf32>
    %401 = arith.addf %397, %400 : vector<16x16xf32>
    %c36 = arith.constant 36 : index
    %402 = memref.load %arg1[%c36] : memref<98xf32, #tpu.memory_space<smem>>
    %c85 = arith.constant 85 : index
    %403 = memref.load %arg1[%c85] : memref<98xf32, #tpu.memory_space<smem>>
    %404 = vector.extract_strided_slice %38 {offsets = [5, 1], sizes = [16, 16], strides = [1, 1]} : vector<22x22xf32> to vector<16x16xf32>
    %405 = vector.broadcast %402 : f32 to vector<16x16xf32>
    %406 = arith.mulf %405, %404 : vector<16x16xf32>
    %407 = arith.addf %401, %406 : vector<16x16xf32>
    %408 = vector.extract_strided_slice %40 {offsets = [5, 1], sizes = [16, 16], strides = [1, 1]} : vector<22x22xf32> to vector<16x16xf32>
    %409 = vector.broadcast %403 : f32 to vector<16x16xf32>
    %410 = arith.mulf %409, %408 : vector<16x16xf32>
    %411 = arith.addf %407, %410 : vector<16x16xf32>
    %c37 = arith.constant 37 : index
    %412 = memref.load %arg1[%c37] : memref<98xf32, #tpu.memory_space<smem>>
    %c86 = arith.constant 86 : index
    %413 = memref.load %arg1[%c86] : memref<98xf32, #tpu.memory_space<smem>>
    %414 = vector.extract_strided_slice %38 {offsets = [5, 2], sizes = [16, 16], strides = [1, 1]} : vector<22x22xf32> to vector<16x16xf32>
    %415 = vector.broadcast %412 : f32 to vector<16x16xf32>
    %416 = arith.mulf %415, %414 : vector<16x16xf32>
    %417 = arith.addf %411, %416 : vector<16x16xf32>
    %418 = vector.extract_strided_slice %40 {offsets = [5, 2], sizes = [16, 16], strides = [1, 1]} : vector<22x22xf32> to vector<16x16xf32>
    %419 = vector.broadcast %413 : f32 to vector<16x16xf32>
    %420 = arith.mulf %419, %418 : vector<16x16xf32>
    %421 = arith.addf %417, %420 : vector<16x16xf32>
    %c38 = arith.constant 38 : index
    %422 = memref.load %arg1[%c38] : memref<98xf32, #tpu.memory_space<smem>>
    %c87 = arith.constant 87 : index
    %423 = memref.load %arg1[%c87] : memref<98xf32, #tpu.memory_space<smem>>
    %424 = vector.extract_strided_slice %38 {offsets = [5, 3], sizes = [16, 16], strides = [1, 1]} : vector<22x22xf32> to vector<16x16xf32>
    %425 = vector.broadcast %422 : f32 to vector<16x16xf32>
    %426 = arith.mulf %425, %424 : vector<16x16xf32>
    %427 = arith.addf %421, %426 : vector<16x16xf32>
    %428 = vector.extract_strided_slice %40 {offsets = [5, 3], sizes = [16, 16], strides = [1, 1]} : vector<22x22xf32> to vector<16x16xf32>
    %429 = vector.broadcast %423 : f32 to vector<16x16xf32>
    %430 = arith.mulf %429, %428 : vector<16x16xf32>
    %431 = arith.addf %427, %430 : vector<16x16xf32>
    %c39 = arith.constant 39 : index
    %432 = memref.load %arg1[%c39] : memref<98xf32, #tpu.memory_space<smem>>
    %c88 = arith.constant 88 : index
    %433 = memref.load %arg1[%c88] : memref<98xf32, #tpu.memory_space<smem>>
    %434 = vector.extract_strided_slice %38 {offsets = [5, 4], sizes = [16, 16], strides = [1, 1]} : vector<22x22xf32> to vector<16x16xf32>
    %435 = vector.broadcast %432 : f32 to vector<16x16xf32>
    %436 = arith.mulf %435, %434 : vector<16x16xf32>
    %437 = arith.addf %431, %436 : vector<16x16xf32>
    %438 = vector.extract_strided_slice %40 {offsets = [5, 4], sizes = [16, 16], strides = [1, 1]} : vector<22x22xf32> to vector<16x16xf32>
    %439 = vector.broadcast %433 : f32 to vector<16x16xf32>
    %440 = arith.mulf %439, %438 : vector<16x16xf32>
    %441 = arith.addf %437, %440 : vector<16x16xf32>
    %c40 = arith.constant 40 : index
    %442 = memref.load %arg1[%c40] : memref<98xf32, #tpu.memory_space<smem>>
    %c89 = arith.constant 89 : index
    %443 = memref.load %arg1[%c89] : memref<98xf32, #tpu.memory_space<smem>>
    %444 = vector.extract_strided_slice %38 {offsets = [5, 5], sizes = [16, 16], strides = [1, 1]} : vector<22x22xf32> to vector<16x16xf32>
    %445 = vector.broadcast %442 : f32 to vector<16x16xf32>
    %446 = arith.mulf %445, %444 : vector<16x16xf32>
    %447 = arith.addf %441, %446 : vector<16x16xf32>
    %448 = vector.extract_strided_slice %40 {offsets = [5, 5], sizes = [16, 16], strides = [1, 1]} : vector<22x22xf32> to vector<16x16xf32>
    %449 = vector.broadcast %443 : f32 to vector<16x16xf32>
    %450 = arith.mulf %449, %448 : vector<16x16xf32>
    %451 = arith.addf %447, %450 : vector<16x16xf32>
    %c41 = arith.constant 41 : index
    %452 = memref.load %arg1[%c41] : memref<98xf32, #tpu.memory_space<smem>>
    %c90 = arith.constant 90 : index
    %453 = memref.load %arg1[%c90] : memref<98xf32, #tpu.memory_space<smem>>
    %454 = vector.extract_strided_slice %38 {offsets = [5, 6], sizes = [16, 16], strides = [1, 1]} : vector<22x22xf32> to vector<16x16xf32>
    %455 = vector.broadcast %452 : f32 to vector<16x16xf32>
    %456 = arith.mulf %455, %454 : vector<16x16xf32>
    %457 = arith.addf %451, %456 : vector<16x16xf32>
    %458 = vector.extract_strided_slice %40 {offsets = [5, 6], sizes = [16, 16], strides = [1, 1]} : vector<22x22xf32> to vector<16x16xf32>
    %459 = vector.broadcast %453 : f32 to vector<16x16xf32>
    %460 = arith.mulf %459, %458 : vector<16x16xf32>
    %461 = arith.addf %457, %460 : vector<16x16xf32>
    %c42 = arith.constant 42 : index
    %462 = memref.load %arg1[%c42] : memref<98xf32, #tpu.memory_space<smem>>
    %c91 = arith.constant 91 : index
    %463 = memref.load %arg1[%c91] : memref<98xf32, #tpu.memory_space<smem>>
    %464 = vector.extract_strided_slice %38 {offsets = [6, 0], sizes = [16, 16], strides = [1, 1]} : vector<22x22xf32> to vector<16x16xf32>
    %465 = vector.broadcast %462 : f32 to vector<16x16xf32>
    %466 = arith.mulf %465, %464 : vector<16x16xf32>
    %467 = arith.addf %461, %466 : vector<16x16xf32>
    %468 = vector.extract_strided_slice %40 {offsets = [6, 0], sizes = [16, 16], strides = [1, 1]} : vector<22x22xf32> to vector<16x16xf32>
    %469 = vector.broadcast %463 : f32 to vector<16x16xf32>
    %470 = arith.mulf %469, %468 : vector<16x16xf32>
    %471 = arith.addf %467, %470 : vector<16x16xf32>
    %c43 = arith.constant 43 : index
    %472 = memref.load %arg1[%c43] : memref<98xf32, #tpu.memory_space<smem>>
    %c92 = arith.constant 92 : index
    %473 = memref.load %arg1[%c92] : memref<98xf32, #tpu.memory_space<smem>>
    %474 = vector.extract_strided_slice %38 {offsets = [6, 1], sizes = [16, 16], strides = [1, 1]} : vector<22x22xf32> to vector<16x16xf32>
    %475 = vector.broadcast %472 : f32 to vector<16x16xf32>
    %476 = arith.mulf %475, %474 : vector<16x16xf32>
    %477 = arith.addf %471, %476 : vector<16x16xf32>
    %478 = vector.extract_strided_slice %40 {offsets = [6, 1], sizes = [16, 16], strides = [1, 1]} : vector<22x22xf32> to vector<16x16xf32>
    %479 = vector.broadcast %473 : f32 to vector<16x16xf32>
    %480 = arith.mulf %479, %478 : vector<16x16xf32>
    %481 = arith.addf %477, %480 : vector<16x16xf32>
    %c44 = arith.constant 44 : index
    %482 = memref.load %arg1[%c44] : memref<98xf32, #tpu.memory_space<smem>>
    %c93 = arith.constant 93 : index
    %483 = memref.load %arg1[%c93] : memref<98xf32, #tpu.memory_space<smem>>
    %484 = vector.extract_strided_slice %38 {offsets = [6, 2], sizes = [16, 16], strides = [1, 1]} : vector<22x22xf32> to vector<16x16xf32>
    %485 = vector.broadcast %482 : f32 to vector<16x16xf32>
    %486 = arith.mulf %485, %484 : vector<16x16xf32>
    %487 = arith.addf %481, %486 : vector<16x16xf32>
    %488 = vector.extract_strided_slice %40 {offsets = [6, 2], sizes = [16, 16], strides = [1, 1]} : vector<22x22xf32> to vector<16x16xf32>
    %489 = vector.broadcast %483 : f32 to vector<16x16xf32>
    %490 = arith.mulf %489, %488 : vector<16x16xf32>
    %491 = arith.addf %487, %490 : vector<16x16xf32>
    %c45 = arith.constant 45 : index
    %492 = memref.load %arg1[%c45] : memref<98xf32, #tpu.memory_space<smem>>
    %c94 = arith.constant 94 : index
    %493 = memref.load %arg1[%c94] : memref<98xf32, #tpu.memory_space<smem>>
    %494 = vector.extract_strided_slice %38 {offsets = [6, 3], sizes = [16, 16], strides = [1, 1]} : vector<22x22xf32> to vector<16x16xf32>
    %495 = vector.broadcast %492 : f32 to vector<16x16xf32>
    %496 = arith.mulf %495, %494 : vector<16x16xf32>
    %497 = arith.addf %491, %496 : vector<16x16xf32>
    %498 = vector.extract_strided_slice %40 {offsets = [6, 3], sizes = [16, 16], strides = [1, 1]} : vector<22x22xf32> to vector<16x16xf32>
    %499 = vector.broadcast %493 : f32 to vector<16x16xf32>
    %500 = arith.mulf %499, %498 : vector<16x16xf32>
    %501 = arith.addf %497, %500 : vector<16x16xf32>
    %c46 = arith.constant 46 : index
    %502 = memref.load %arg1[%c46] : memref<98xf32, #tpu.memory_space<smem>>
    %c95 = arith.constant 95 : index
    %503 = memref.load %arg1[%c95] : memref<98xf32, #tpu.memory_space<smem>>
    %504 = vector.extract_strided_slice %38 {offsets = [6, 4], sizes = [16, 16], strides = [1, 1]} : vector<22x22xf32> to vector<16x16xf32>
    %505 = vector.broadcast %502 : f32 to vector<16x16xf32>
    %506 = arith.mulf %505, %504 : vector<16x16xf32>
    %507 = arith.addf %501, %506 : vector<16x16xf32>
    %508 = vector.extract_strided_slice %40 {offsets = [6, 4], sizes = [16, 16], strides = [1, 1]} : vector<22x22xf32> to vector<16x16xf32>
    %509 = vector.broadcast %503 : f32 to vector<16x16xf32>
    %510 = arith.mulf %509, %508 : vector<16x16xf32>
    %511 = arith.addf %507, %510 : vector<16x16xf32>
    %c47 = arith.constant 47 : index
    %512 = memref.load %arg1[%c47] : memref<98xf32, #tpu.memory_space<smem>>
    %c96 = arith.constant 96 : index
    %513 = memref.load %arg1[%c96] : memref<98xf32, #tpu.memory_space<smem>>
    %514 = vector.extract_strided_slice %38 {offsets = [6, 5], sizes = [16, 16], strides = [1, 1]} : vector<22x22xf32> to vector<16x16xf32>
    %515 = vector.broadcast %512 : f32 to vector<16x16xf32>
    %516 = arith.mulf %515, %514 : vector<16x16xf32>
    %517 = arith.addf %511, %516 : vector<16x16xf32>
    %518 = vector.extract_strided_slice %40 {offsets = [6, 5], sizes = [16, 16], strides = [1, 1]} : vector<22x22xf32> to vector<16x16xf32>
    %519 = vector.broadcast %513 : f32 to vector<16x16xf32>
    %520 = arith.mulf %519, %518 : vector<16x16xf32>
    %521 = arith.addf %517, %520 : vector<16x16xf32>
    %c48 = arith.constant 48 : index
    %522 = memref.load %arg1[%c48] : memref<98xf32, #tpu.memory_space<smem>>
    %c97 = arith.constant 97 : index
    %523 = memref.load %arg1[%c97] : memref<98xf32, #tpu.memory_space<smem>>
    %524 = vector.extract_strided_slice %38 {offsets = [6, 6], sizes = [16, 16], strides = [1, 1]} : vector<22x22xf32> to vector<16x16xf32>
    %525 = vector.broadcast %522 : f32 to vector<16x16xf32>
    %526 = arith.mulf %525, %524 : vector<16x16xf32>
    %527 = arith.addf %521, %526 : vector<16x16xf32>
    %528 = vector.extract_strided_slice %40 {offsets = [6, 6], sizes = [16, 16], strides = [1, 1]} : vector<22x22xf32> to vector<16x16xf32>
    %529 = vector.broadcast %523 : f32 to vector<16x16xf32>
    %530 = arith.mulf %529, %528 : vector<16x16xf32>
    %531 = arith.addf %527, %530 : vector<16x16xf32>
    %cst_27 = arith.constant 0.000000e+00 : f32
    %532 = vector.broadcast %cst_27 : f32 to vector<16x16xf32>
    %533 = arith.subf %532, %531 : vector<16x16xf32>
    %534 = math.exp %533 : vector<16x16xf32>
    %cst_28 = arith.constant 1.000000e+00 : f32
    %535 = vector.broadcast %cst_28 : f32 to vector<16x16xf32>
    %536 = arith.addf %535, %534 : vector<16x16xf32>
    %cst_29 = arith.constant 1.000000e+00 : f32
    %537 = vector.broadcast %cst_29 : f32 to vector<16x16xf32>
    %538 = arith.divf %537, %536 : vector<16x16xf32>
    %539 = vector.shape_cast %538 : vector<16x16xf32> to vector<1x16x16xf32>
    %540 = vector.broadcast %539 : vector<1x16x16xf32> to vector<32x16x16xf32>
    %541 = arith.mulf %30, %540 : vector<32x16x16xf32>
    %c0_30 = arith.constant 0 : index
    %c0_31 = arith.constant 0 : index
    %c0_32 = arith.constant 0 : index
    %c0_33 = arith.constant 0 : index
    %542 = vector.load %arg5[%c0_30, %c0_31, %c0_32, %c0_33] : memref<1x32x16x16xf32, #tpu.memory_space<vmem>>, vector<1x32x16x16xf32>
    %543 = vector.shape_cast %542 : vector<1x32x16x16xf32> to vector<32x16x16xf32>
    %544 = vector.shape_cast %541 : vector<32x16x16xf32> to vector<1x32x16x16xf32>
    tpu.vector_store %arg5[%c0_30, %c0_31, %c0_32, %c0_33], %544 {strides = array<i32>} : memref<1x32x16x16xf32, #tpu.memory_space<vmem>>, vector<1x32x16x16xf32>,
    return
  }
  func.func @transform_0(%arg0: i32) -> i32 {
    %c0_i32 = arith.constant 0 : i32
    %c0_i32_0 = arith.constant 0 : i32
    return %c0_i32 : i32
  }
  func.func @transform_1(%arg0: i32) -> (i32, i32, i32, i32) {
    %c0_i32 = arith.constant 0 : i32
    %c0_i32_0 = arith.constant 0 : i32
    %c0_i32_1 = arith.constant 0 : i32
    %c0_i32_2 = arith.constant 0 : i32
    return %arg0, %c0_i32, %c0_i32_0, %c0_i32_1 : i32, i32, i32, i32
  }
  func.func @transform_2(%arg0: i32) -> (i32, i32) {
    %c0_i32 = arith.constant 0 : i32
    %c0_i32_0 = arith.constant 0 : i32
    %c0_i32_1 = arith.constant 0 : i32
    return %c0_i32, %c0_i32_0 : i32, i32
  }
  func.func @transform_3(%arg0: i32) -> (i32, i32) {
    %c0_i32 = arith.constant 0 : i32
    %c0_i32_0 = arith.constant 0 : i32
    %c0_i32_1 = arith.constant 0 : i32
    return %c0_i32, %c0_i32_0 : i32, i32
  }
  func.func @transform_4(%arg0: i32) -> (i32, i32, i32, i32) {
    %c0_i32 = arith.constant 0 : i32
    %c0_i32_0 = arith.constant 0 : i32
    %c0_i32_1 = arith.constant 0 : i32
    %c0_i32_2 = arith.constant 0 : i32
    return %arg0, %c0_i32, %c0_i32_0, %c0_i32_1 : i32, i32, i32, i32
  }
}

</mosaic_0001>

<bundles_post_ra>
// kernel: tpu_custom_call.1
= control target key start
LH: loop header
LB: loop body
LE: loop exit
PB: predicated region body
PF: predicated region fallthrough
CT: control target
= control target key end

     0   :  { %9 = vsyncpa [#allocation3], 0  ;;  %s4276_s15 = smov 0   ;;  %s6894_s0 = inlined_call_operand.vmem [shape: f32[98], index: 0, kind: input, shape index: {}]   ;;  %s6895_s1 = inlined_call_operand.vmem [shape: f32[2,32,16,16], index: 1, kind: input, shape index: {}]   ;;  %s6896_s2 = inlined_call_operand.vmem [shape: f32[8,32], index: 2, kind: input, shape index: {}]   ;;  %s6897_s3 = inlined_call_operand.vmem [shape: f32[32,8], index: 3, kind: input, shape index: {}]   ;;  %s6898_s4 = inlined_call_operand.vmem [shape: f32[2,32,16,16], index: 4, kind: output, shape index: {}]  }
   0x1 LB: > { %s3973_s16 = sadd.s32 4294967295, %s4240_s15   ;;  %p3975_p0 = scmp.ge.s32.totalorder %s4240_s15, 1  ;;  %s4240_s15 = sphi %s4276_s15, %s15_s15  }
   0x2   : > { %p135_p1 = scmp.lt.s32.totalorder %s4240_s15, 3  ;;  %s147_s19 = sshll.u32 %s6894_s0, 4  ;;  %s148_s19 = int_to_ptr.vmem [resolvable:$true] %s147_s19 }
   0x3   : > { %p4105_p3 = scmp.eq.s32.totalorder %s3973_s16, 0  ;;  %s4242_s20 = smov [#allocation2]  }
   0x4   : > { %p136_p2 = pnand %p3975_p0, %p135_p1 }
   0x6   : > { %p4101_p4 = pneg %p136_p2  ;;  %174 = sbr.rel (%p136_p2) target bundleno = 1987 (0x7c3), region = 36 }
   0x8   : > { %p4102_p5 = pnand %p4105_p3, %p4101_p4 }
   0xa   : > { %4104 = dma.vmem_to_smem (!%p4102_p5), %s148_s19, 16, %s4242_s20, [#allocation3]  }
   0xb   : > { %4235 = dma.done.wait (%p4105_p3), [#allocation3], 16  }
   0xc   : > { %4237 = vsyncadd (%p4105_p3), [#allocation3], 4294967280 }
   0xd   : > { %181 = sfence }
   0xe   : > { %p202_p6 = scmp.lt.s32.totalorder %s3973_s16, 1  ;;  %vm276_vm0 = vcmask 130048   ;;  %vm538_vm1 = vcmask 130112   ;;  %vm633_vm2 = vcmask 1041409   ;;  %vm635_vm3 = vcmask 1042434   ;;  %s4244_s9 = smov 3  }
   0xf   : > { %vm637_vm4 = vcmask 1043459   ;;  %vm639_vm5 = vcmask 1044484   ;;  %vm641_vm6 = vcmask 1045509   ;;  %vm643_vm7 = vcmask 1046534   ;;  %s3995_s10 = sld [smem:[#allocation2 + $0x1]]  ;;  %s4245_s13 = smov 127  }
  0x10   : > { %s7249_s16 = smov (!%p202_p6, %s3973_s16), 1  ;;  %vm645_vm8 = vcmask 1047559   ;;  %vm1089_vm9 = vcmask 261120   ;;  %vm1135_vm10 = vcmask 64512   ;;  %s5664_s11 = sld [smem:[#allocation2 + $0x2]] }
  0x11   : > { %s4093_s21 = sshll.u32 %s7249_s16, 9  ;;  %s3999_s12 = sld [smem:[#allocation2 + $0x3]] }
  0x12   : > { %s4295_s24 = scalar_lea.vmem %s6895_s1, %s4093_s21  ;;  %s4246_s14 = smov 126  }
  0x13   : > { %v4298_v0 = vld [vmem:[%s4295_s24 + $0x20] sm:$0xff]  ;;  %v4301_v1 = vld [vmem:[%s4295_s24 + $0x10] sm:$0xff]  ;;  %v4313_v6 = vld [vmem:[%s4295_s24 + $0x28] sm:$0xff]  ;;  %s4001_s17 = sld [smem:[#allocation2 + $0x4]]  ;;  %s4247_s19 = smov 125  }
  0x14   : > { %v4304_v2 = vld [vmem:[%s4295_s24] sm:$0xff]  ;;  %v289_v3 = vsel %vm276_vm0, %v4298_v0, -inf  ;;  %v283_v4 = vsel %vm276_vm0, %v4301_v1, -inf  ;;  %v4316_v7 = vld [vmem:[%s4295_s24 + $0x18] sm:$0xff]  ;;  %v4319_v8 = vld [vmem:[%s4295_s24 + $0x8] sm:$0xff]  ;;  %v292_v9 = vsel %vm276_vm0, %v4313_v6, -inf }
  0x15   : > { %v277_v5 = vsel %vm276_vm0, %v4304_v2, -inf  ;;  %290 = vmax.xlane.f32.xlu2 %v289_v3  ;;  %284 = vmax.xlane.f32.xlu1 %v283_v4  ;;  %v286_v10 = vsel %vm276_vm0, %v4316_v7, -inf  ;;  %v280_v11 = vsel %vm276_vm0, %v4319_v8, -inf  ;;  %v4328_v12 = vld [vmem:[%s4295_s24 + $0x40] sm:$0xff]  ;;  %v4331_v13 = vld [vmem:[%s4295_s24 + $0x38] sm:$0xff]  ;;  %v4334_v14 = vld [vmem:[%s4295_s24 + $0x30] sm:$0xff] }
  0x16   : > { %278 = vmax.xlane.f32.xlu0 %v277_v5  ;;  %v301_v15 = vsel %vm276_vm0, %v4328_v12, -inf  ;;  %v298_v16 = vsel %vm276_vm0, %v4331_v13, -inf  ;;  %v295_v17 = vsel %vm276_vm0, %v4334_v14, -inf  ;;  %v4343_v18 = vld [vmem:[%s4295_s24 + $0x58] sm:$0xff]  ;;  %v4346_v19 = vld [vmem:[%s4295_s24 + $0x50] sm:$0xff]  ;;  %v4349_v20 = vld [vmem:[%s4295_s24 + $0x48] sm:$0xff] }
  0x17   : > { %v310_v21 = vsel %vm276_vm0, %v4343_v18, -inf  ;;  %v307_v22 = vsel %vm276_vm0, %v4346_v19, -inf  ;;  %v304_v23 = vsel %vm276_vm0, %v4349_v20, -inf  ;;  %v4358_v24 = vld [vmem:[%s4295_s24 + $0x70] sm:$0xff]  ;;  %v4361_v25 = vld [vmem:[%s4295_s24 + $0x68] sm:$0xff]  ;;  %v4364_v26 = vld [vmem:[%s4295_s24 + $0x60] sm:$0xff] }
  0x18   : > { %v319_v27 = vsel %vm276_vm0, %v4358_v24, -inf  ;;  %v316_v28 = vsel %vm276_vm0, %v4361_v25, -inf  ;;  %v313_v29 = vsel %vm276_vm0, %v4364_v26, -inf  ;;  %v4373_v30 = vld [vmem:[%s4295_s24 + $0x88] sm:$0xff]  ;;  %v4376_v31 = vld [vmem:[%s4295_s24 + $0x80] sm:$0xff]  ;;  %v4379_v32 = vld [vmem:[%s4295_s24 + $0x78] sm:$0xff] }
  0x19   : > { %v328_v33 = vsel %vm276_vm0, %v4373_v30, -inf  ;;  %v325_v34 = vsel %vm276_vm0, %v4376_v31, -inf  ;;  %v322_v35 = vsel %vm276_vm0, %v4379_v32, -inf  ;;  %v4388_v36 = vld [vmem:[%s4295_s24 + $0xa0] sm:$0xff]  ;;  %v4391_v37 = vld [vmem:[%s4295_s24 + $0x98] sm:$0xff]  ;;  %v4394_v38 = vld [vmem:[%s4295_s24 + $0x90] sm:$0xff] }
  0x1a   : > { %v337_v39 = vsel %vm276_vm0, %v4388_v36, -inf  ;;  %v334_v40 = vsel %vm276_vm0, %v4391_v37, -inf  ;;  %v331_v41 = vsel %vm276_vm0, %v4394_v38, -inf  ;;  %v4403_v42 = vld [vmem:[%s4295_s24 + $0xb8] sm:$0xff]  ;;  %v4406_v43 = vld [vmem:[%s4295_s24 + $0xb0] sm:$0xff]  ;;  %v4409_v44 = vld [vmem:[%s4295_s24 + $0xa8] sm:$0xff] }
  0x1b   : > { %v346_v45 = vsel %vm276_vm0, %v4403_v42, -inf  ;;  %v343_v46 = vsel %vm276_vm0, %v4406_v43, -inf  ;;  %v340_v47 = vsel %vm276_vm0, %v4409_v44, -inf  ;;  %v4418_v48 = vld [vmem:[%s4295_s24 + $0xd0] sm:$0xff]  ;;  %v4421_v49 = vld [vmem:[%s4295_s24 + $0xc8] sm:$0xff]  ;;  %v4424_v50 = vld [vmem:[%s4295_s24 + $0xc0] sm:$0xff] }
  0x1c   : > { %6990 = vst [vmem:[#allocation5_spill] sm:$0xff] %v4418_v48  ;;  %v355_v51 = vsel %vm276_vm0, %v4418_v48, -inf  ;;  %v352_v52 = vsel %vm276_vm0, %v4421_v49, -inf  ;;  %v349_v53 = vsel %vm276_vm0, %v4424_v50, -inf  ;;  %v4433_v54 = vld [vmem:[%s4295_s24 + $0xe8] sm:$0xff]  ;;  %v4436_v55 = vld [vmem:[%s4295_s24 + $0xe0] sm:$0xff] }
  0x1d   : > { %293 = vmax.xlane.f32.xlu2 %v292_v9  ;;  %287 = vmax.xlane.f32.xlu1 %v286_v10  ;;  %6991 = vst [vmem:[#allocation6_spill] sm:$0xff] %v4433_v54  ;;  %v4439_v56 = vld [vmem:[%s4295_s24 + $0xd8] sm:$0xff]  ;;  %v364_v57 = vsel %vm276_vm0, %v4433_v54, -inf  ;;  %v361_v58 = vsel %vm276_vm0, %v4436_v55, -inf  ;;  %v4448_v60 = vld [vmem:[%s4295_s24 + $0x100] sm:$0xff]  ;;  %v4454_v62 = vld [vmem:[%s4295_s24 + $0xf0] sm:$0xff] }
  0x1e   : > { %281 = vmax.xlane.f32.xlu0 %v280_v11  ;;  %v358_v59 = vsel %vm276_vm0, %v4439_v56, -inf  ;;  %6992 = vst [vmem:[#allocation7_spill] sm:$0xff] %v4448_v60  ;;  %v4451_v61 = vld [vmem:[%s4295_s24 + $0xf8] sm:$0xff]  ;;  %v373_v63 = vsel %vm276_vm0, %v4448_v60, -inf  ;;  %v367_v4 = vsel %vm276_vm0, %v4454_v62, -inf  ;;  %v4466_v9 = vld [vmem:[%s4295_s24 + $0x110] sm:$0xff] }
  0x1f   : > { %v370_v3 = vsel %vm276_vm0, %v4451_v61, -inf  ;;  %v4463_v5 = vld [vmem:[%s4295_s24 + $0x118] sm:$0xff]  ;;  %v4469_v10 = vld [vmem:[%s4295_s24 + $0x108] sm:$0xff]  ;;  %s4003_s18 = sld [smem:[#allocation2 + $0x5]]  ;;  %s4249_s25 = smov 123  }
  0x20   : > { %6993 = vst [vmem:[#allocation8_spill] sm:$0xff] %v4463_v5  ;;  %v382_v11 = vsel %vm276_vm0, %v4463_v5, -inf  ;;  %v4602_v5 = vld [vmem:[%s4295_s24 + $0x1d0] sm:$0xff]  ;;  %s4005_s20 = sld [smem:[#allocation2 + $0x6]]  ;;  %s4250_s27 = smov 122  }
  0x21   : > { %7011 = vst [vmem:[#allocation26_spill] sm:$0xff] %v4602_v5  ;;  %s4009_s22 = sld [smem:[#allocation2 + $0x8]] }
  0x22   : > { %s4011_s23 = sld [smem:[#allocation2 + $0x9]] }
  0x23   : > { %s4013_s26 = sld [smem:[#allocation2 + $0xa]] }
  0x24   : > { %s4015_s28 = sld [smem:[#allocation2 + $0xb]] }
  0x25   : > { %302 = vmax.xlane.f32.xlu2 %v301_v15  ;;  %299 = vmax.xlane.f32.xlu1 %v298_v16  ;;  %v379_v15 = vsel %vm276_vm0, %v4466_v9, -inf  ;;  %v376_v16 = vsel %vm276_vm0, %v4469_v10, -inf  ;;  %s4017_s29 = sld [smem:[#allocation2 + $0xc]] }
  0x26   : > { %296 = vmax.xlane.f32.xlu0 %v295_v17  ;;  %v4478_v17 = vld [vmem:[%s4295_s24 + $0x128] sm:$0xff]  ;;  %s4019_s30 = sld [smem:[#allocation2 + $0xd]] }
  0x27   : > { %s4023_s5 = sld [smem:[#allocation2 + $0xf]] }
  0x28   : > { %s4025_s6 = sld [smem:[#allocation2 + $0x10]] }
  0x29   : > { %s4027_s7 = sld [smem:[#allocation2 + $0x11]] }
  0x2a   : > { %s4029_s8 = sld [smem:[#allocation2 + $0x12]] }
  0x2d   : > { %311 = vmax.xlane.f32.xlu2 %v310_v21  ;;  %308 = vmax.xlane.f32.xlu1 %v307_v22  ;;  %v4481_v21 = vld [vmem:[%s4295_s24 + $0x130] sm:$0xff]  ;;  %v4484_v22 = vld [vmem:[%s4295_s24 + $0x120] sm:$0xff] }
  0x2e   : > { %305 = vmax.xlane.f32.xlu0 %v304_v23  ;;  %6994 = vst [vmem:[#allocation9_spill] sm:$0xff] %v4481_v21  ;;  %v388_v23 = vsel %vm276_vm0, %v4478_v17, -inf }
  0x35   : > { %320 = vmax.xlane.f32.xlu2 %v319_v27  ;;  %317 = vmax.xlane.f32.xlu1 %v316_v28  ;;  %v391_v27 = vsel %vm276_vm0, %v4481_v21, -inf  ;;  %v385_v28 = vsel %vm276_vm0, %v4484_v22, -inf }
  0x36   : > { %314 = vmax.xlane.f32.xlu0 %v313_v29  ;;  %v4493_v29 = vld [vmem:[%s4295_s24 + $0x140] sm:$0xff] }
  0x37   : > { %6995 = vst [vmem:[#allocation10_spill] sm:$0xff] %v4493_v29 }
  0x3d   : > { %329 = vmax.xlane.f32.xlu2 %v328_v33  ;;  %326 = vmax.xlane.f32.xlu1 %v325_v34  ;;  %v4496_v33 = vld [vmem:[%s4295_s24 + $0x148] sm:$0xff]  ;;  %v4499_v34 = vld [vmem:[%s4295_s24 + $0x138] sm:$0xff] }
  0x3e   : > { %323 = vmax.xlane.f32.xlu0 %v322_v35  ;;  %6996 = vst [vmem:[#allocation11_spill] sm:$0xff] %v4496_v33  ;;  %v397_v35 = vsel %vm276_vm0, %v4493_v29, -inf }
  0x3f   : > { %6997 = vst [vmem:[#allocation12_spill] sm:$0xff] %v4499_v34 }
  0x45   : > { %338 = vmax.xlane.f32.xlu2 %v337_v39  ;;  %335 = vmax.xlane.f32.xlu1 %v334_v40  ;;  %v400_v39 = vsel %vm276_vm0, %v4496_v33, -inf  ;;  %v394_v40 = vsel %vm276_vm0, %v4499_v34, -inf  ;;  %v4605_v34 = vld [vmem:[%s4295_s24 + $0x1d8] sm:$0xff] }
  0x46   : > { %332 = vmax.xlane.f32.xlu0 %v331_v41  ;;  %v4508_v41 = vld [vmem:[%s4295_s24 + $0x158] sm:$0xff]  ;;  %7012 = vst [vmem:[#allocation27_spill] sm:$0xff] %v4605_v34 }
  0x47   : > { %6998 = vst [vmem:[#allocation13_spill] sm:$0xff] %v4508_v41 }
  0x4d   : > { %347 = vmax.xlane.f32.xlu2 %v346_v45  ;;  %344 = vmax.xlane.f32.xlu1 %v343_v46  ;;  %v4511_v45 = vld [vmem:[%s4295_s24 + $0x160] sm:$0xff]  ;;  %v4514_v46 = vld [vmem:[%s4295_s24 + $0x150] sm:$0xff] }
  0x4e   : > { %341 = vmax.xlane.f32.xlu0 %v340_v47  ;;  %6999 = vst [vmem:[#allocation14_spill] sm:$0xff] %v4511_v45  ;;  %v406_v47 = vsel %vm276_vm0, %v4508_v41, -inf }
  0x4f   : > { %7000 = vst [vmem:[#allocation15_spill] sm:$0xff] %v4514_v46 }
  0x55   : > { %356 = vmax.xlane.f32.xlu2 %v355_v51  ;;  %353 = vmax.xlane.f32.xlu1 %v352_v52  ;;  %v409_v51 = vsel %vm276_vm0, %v4511_v45, -inf  ;;  %v403_v52 = vsel %vm276_vm0, %v4514_v46, -inf }
  0x56   : > { %350 = vmax.xlane.f32.xlu0 %v349_v53  ;;  %v4523_v53 = vld [vmem:[%s4295_s24 + $0x170] sm:$0xff] }
  0x57   : > { %7001 = vst [vmem:[#allocation16_spill] sm:$0xff] %v4523_v53 }
  0x5d   : > { %365 = vmax.xlane.f32.xlu2 %v364_v57  ;;  %362 = vmax.xlane.f32.xlu1 %v361_v58  ;;  %v4526_v57 = vld [vmem:[%s4295_s24 + $0x178] sm:$0xff] }
  0x5e   : > { %359 = vmax.xlane.f32.xlu0 %v358_v59  ;;  %7002 = vst [vmem:[#allocation17_spill] sm:$0xff] %v4526_v57 }
  0x65   : > { %374 = vmax.xlane.f32.xlu2 %v373_v63  ;;  %371 = vmax.xlane.f32.xlu1 %v370_v3  ;;  %v4533_v63 = vld [vmem:[%s4295_s24 + $0x168] sm:$0xff] }
  0x66   : > { %368 = vmax.xlane.f32.xlu0 %v367_v4  ;;  %7003 = vst [vmem:[#allocation18_spill] sm:$0xff] %v4533_v63  ;;  %v415_v4 = vsel %vm276_vm0, %v4523_v53, -inf  ;;  %v4569_v53 = vld [vmem:[%s4295_s24 + $0x198] sm:$0xff] }
  0x67   : > { %7007 = vst [vmem:[#allocation22_spill] sm:$0xff] %v4569_v53 }
  0x6d   : > { %383 = vmax.xlane.f32.xlu2 %v382_v11  ;;  %380 = vmax.xlane.f32.xlu1 %v379_v15  ;;  %v418_v11 = vsel %vm276_vm0, %v4526_v57, -inf  ;;  %v412_v15 = vsel %vm276_vm0, %v4533_v63, -inf  ;;  %v4578_v57 = vld [vmem:[%s4295_s24 + $0x1b8] sm:$0xff]  ;;  %v4581_v63 = vld [vmem:[%s4295_s24 + $0x1c0] sm:$0xff] }
  0x6e   : > { %377 = vmax.xlane.f32.xlu0 %v376_v16  ;;  %v4544_v16 = vld [vmem:[%s4295_s24 + $0x188] sm:$0xff]  ;;  %7008 = vst [vmem:[#allocation23_spill] sm:$0xff] %v4578_v57 }
  0x6f   : > { %7009 = vst [vmem:[#allocation24_spill] sm:$0xff] %v4581_v63 }
  0x75   : > { %389 = vmax.xlane.f32.xlu1 %v388_v23  ;;  %392 = vmax.xlane.f32.xlu2 %v391_v27  ;;  %v4547_v23 = vld [vmem:[%s4295_s24 + $0x190] sm:$0xff] }
  0x76   : > { %386 = vmax.xlane.f32.xlu0 %v385_v28  ;;  %7004 = vst [vmem:[#allocation19_spill] sm:$0xff] %v4547_v23 }
  0x7d   : > { %398 = vmax.xlane.f32.xlu1 %v397_v35  ;;  %401 = vmax.xlane.f32.xlu2 %v400_v39  ;;  %v4552_v35 = vld [vmem:[%s4295_s24 + $0x180] sm:$0xff] }
  0x7e   : > { %395 = vmax.xlane.f32.xlu0 %v394_v40  ;;  %v424_v40 = vsel %vm276_vm0, %v4544_v16, -inf }
  0x85   : > { %407 = vmax.xlane.f32.xlu1 %v406_v47  ;;  %410 = vmax.xlane.f32.xlu2 %v409_v51  ;;  %v427_v47 = vsel %vm276_vm0, %v4547_v23, -inf  ;;  %v421_v51 = vsel %vm276_vm0, %v4552_v35, -inf  ;;  %v4588_v23 = vld [vmem:[%s4295_s24 + $0x1b0] sm:$0xff] }
  0x86   : > { %404 = vmax.xlane.f32.xlu0 %v403_v52  ;;  %v4561_v52 = vld [vmem:[%s4295_s24 + $0x1a0] sm:$0xff]  ;;  %7010 = vst [vmem:[#allocation25_spill] sm:$0xff] %v4588_v23 }
  0x87   : > { %7005 = vst [vmem:[#allocation20_spill] sm:$0xff] %v4561_v52  ;;  %v433_v33 = vsel %vm276_vm0, %v4561_v52, -inf }
  0x88   : > { %v4528_v58 = vpop.xlane.xlu2 %290  ;;  %v4530_v59 = vpop.xlane.xlu1 %284 }
  0x89   : > { %v4535_v3 = vpop.xlane.xlu0 %278 }
  0x8d   : > { %416 = vmax.xlane.f32.xlu1 %v415_v4  ;;  %419 = vmax.xlane.f32.xlu2 %v418_v11  ;;  %v4564_v4 = vld [vmem:[%s4295_s24 + $0x1a8] sm:$0xff] }
  0x8e   : > { %413 = vmax.xlane.f32.xlu0 %v412_v15  ;;  %7006 = vst [vmem:[#allocation21_spill] sm:$0xff] %v4564_v4 }
  0x90   : > { %v4549_v27 = vpop.xlane.xlu2 %293  ;;  %v288_v28 = vpop.xlane.xlu1 %287 }
  0x91   : > { %v282_v39 = vpop.xlane.xlu0 %281 }
  0x95   : > { %425 = vmax.xlane.f32.xlu1 %v424_v40  ;;  %428 = vmax.xlane.f32.xlu2 %v427_v47  ;;  %v436_v40 = vsel %vm276_vm0, %v4564_v4, -inf  ;;  %v430_v47 = vsel %vm276_vm0, %v4569_v53, -inf }
  0x96   : > { %422 = vmax.xlane.f32.xlu0 %v421_v51  ;;  %v533_v51 = vlaneseq }
  0x98   : > { %v4566_v11 = vpop.xlane.xlu2 %302  ;;  %v300_v15 = vpop.xlane.xlu1 %299  ;;  %v4590_v21 = vand.u32 127, %v533_v51 }
  0x99   : > { %v297_v46 = vpop.xlane.xlu0 %296 }
  0x9a   : > { %v4599_v29 = vadd.s32 4294967288, %v4590_v21  ;;  %v540_v51 = vperm.slane %v4530_v59, %v4590_v21  ;;  %v454_v59 = vsel %vm276_vm0, %v4605_v34, -inf  ;;  %v546_v48 = vperm.slane %v297_v46, %v4590_v21 }
  0x9b   : > { %v549_v34 = vperm.slane %v4566_v11, %v4590_v21 }
  0x9c   : > { %v541_v60 = vperm.slane %v288_v28, %v4599_v29  ;;  %v543_v28 = vperm.slane %v4528_v58, %v4590_v21 }
  0x9d   : > { %434 = vmax.xlane.f32.xlu1 %v433_v33  ;;  %437 = vmax.xlane.f32.xlu2 %v436_v40  ;;  %v442_v33 = vsel %vm276_vm0, %v4578_v57, -inf  ;;  %v445_v40 = vsel %vm276_vm0, %v4581_v63, -inf  ;;  %v537_v63 = vperm.slane %v282_v39, %v4599_v29  ;;  %v544_v39 = vperm.slane %v4549_v27, %v4599_v29  ;;  %v4634_v27 = vld [vmem:[%s4295_s24 + $0x1e8] sm:$0xff] }
  0x9e   : > { %431 = vmax.xlane.f32.xlu0 %v430_v47  ;;  %v439_v47 = vsel %vm276_vm0, %v4588_v23, -inf  ;;  %v4612_v23 = vld [vmem:[%s4295_s24 + $0x1c8] sm:$0xff] }
  0x9f   : > { %7013 = vst [vmem:[#allocation28_spill] sm:$0xff] %v4612_v23 }
  0xa0   : > { %v4583_v45 = vpop.xlane.xlu2 %311  ;;  %v4585_v41 = vpop.xlane.xlu1 %308 }
  0xa1   : > { %v306_v4 = vpop.xlane.xlu0 %305  ;;  %v553_v11 = vperm.slane %v4583_v45, %v4599_v29 }
  0xa2   : > { %v550_v58 = vperm.slane %v306_v4, %v4599_v29  ;;  %v552_v4 = vperm.slane %v4585_v41, %v4590_v21 }
  0xa5   : > { %443 = vmax.xlane.f32.xlu1 %v442_v33  ;;  %446 = vmax.xlane.f32.xlu2 %v445_v40  ;;  %v535_v33 = vperm.slane %v4535_v3, %v4590_v21  ;;  %v451_v40 = vsel %vm276_vm0, %v4602_v5, -inf  ;;  %v542_v3 = vsel %vm538_vm1, %v541_v60, %v540_v51  ;;  %v547_v5 = vperm.slane %v300_v15, %v4599_v29 }
  0xa6   : > { %440 = vmax.xlane.f32.xlu0 %v439_v47  ;;  %v448_v47 = vsel %vm276_vm0, %v4612_v23, -inf  ;;  %v545_v23 = vsel %vm538_vm1, %v544_v39, %v543_v28 }
  0xa7   : > { %v539_v52 = vsel %vm538_vm1, %v537_v63, %v535_v33  ;;  %v4639_v63 = vld [vmem:[%s4295_s24 + $0x1f0] sm:$0xff]  ;;  %v548_v46 = vsel %vm538_vm1, %v547_v5, %v546_v48  ;;  %v4647_v33 = vld [vmem:[%s4295_s24 + $0x1e0] sm:$0xff]  ;;  %v460_v48 = vsel %vm276_vm0, %v4634_v27, -inf }
  0xa8   : > { %v321_v57 = vpop.xlane.xlu2 %320  ;;  %v318_v54 = vpop.xlane.xlu1 %317  ;;  %v634_v60 = vsel %vm633_vm2, %v542_v3, %v539_v52  ;;  %v463_v39 = vsel %vm276_vm0, %v4639_v63, -inf }
  0xa9   : > { %v315_v53 = vpop.xlane.xlu0 %314  ;;  %v556_v52 = vperm.slane %v318_v54, %v4599_v29  ;;  %v636_v5 = vsel %vm635_vm3, %v545_v23, %v634_v60  ;;  %v558_v45 = vperm.slane %v321_v57, %v4590_v21  ;;  %v457_v54 = vsel %vm276_vm0, %v4647_v33, -inf }
  0xad   : > { %452 = vmax.xlane.f32.xlu1 %v451_v40  ;;  %455 = vmax.xlane.f32.xlu2 %v454_v59  ;;  %v551_v40 = vsel %vm538_vm1, %v550_v58, %v549_v34  ;;  %v555_v59 = vperm.slane %v315_v53, %v4590_v21  ;;  %v638_v34 = vsel %vm637_vm4, %v548_v46, %v636_v5  ;;  %v4668_v46 = vld [vmem:[%s4295_s24 + $0x1f8] sm:$0xff] }
  0xae   : > { %449 = vmax.xlane.f32.xlu0 %v448_v47  ;;  %v554_v53 = vsel %vm538_vm1, %v553_v11, %v552_v4  ;;  %v640_v47 = vsel %vm639_vm5, %v551_v40, %v638_v34  ;;  %7014 = vst [vmem:[#allocation29_spill] sm:$0xff] %v4668_v46 }
  0xaf   : > { %v557_v57 = vsel %vm538_vm1, %v556_v52, %v555_v59  ;;  %v642_v3 = vsel %vm641_vm6, %v554_v53, %v640_v47 }
  0xb0   : > { %v330_v15 = vpop.xlane.xlu2 %329  ;;  %v327_v51 = vpop.xlane.xlu1 %326  ;;  %v644_v11 = vsel %vm643_vm7, %v557_v57, %v642_v3 }
  0xb1   : > { %v324_v28 = vpop.xlane.xlu0 %323  ;;  %v562_v34 = vperm.slane %v330_v15, %v4599_v29 }
  0xb2   : > { %v559_v41 = vperm.slane %v324_v28, %v4599_v29  ;;  %v466_v28 = vsel %vm276_vm0, %v4668_v46, -inf }
  0xb4   : > { %v560_v23 = vsel %vm538_vm1, %v559_v41, %v558_v45 }
  0xb5   : > { %461 = vmax.xlane.f32.xlu1 %v460_v48  ;;  %464 = vmax.xlane.f32.xlu2 %v463_v39  ;;  %v646_v40 = vsel %vm645_vm8, %v560_v23, %v644_v11 }
  0xb6   : > { %458 = vmax.xlane.f32.xlu0 %v457_v54  ;;  %v672_v52 = vsel %vm276_vm0, %v646_v40, -inf  ;;  %v561_v54 = vperm.slane %v327_v51, %v4590_v21 }
  0xb8   : > { %v339_v58 = vpop.xlane.xlu2 %338  ;;  %v336_v60 = vpop.xlane.xlu1 %335  ;;  %v563_v3 = vsel %vm538_vm1, %v562_v34, %v561_v54 }
  0xb9   : > { %v333_v4 = vpop.xlane.xlu0 %332  ;;  %v565_v53 = vperm.slane %v336_v60, %v4599_v29  ;;  %v567_v57 = vperm.slane %v339_v58, %v4590_v21 }
  0xba   : > { %v564_v47 = vperm.slane %v333_v4, %v4590_v21 }
  0xbc   : > { %v566_v11 = vsel %vm538_vm1, %v565_v53, %v564_v47 }
  0xbd   : > { %673 = vmax.xlane.f32.xlu1 %v672_v52  ;;  %v647_v34 = vsel %vm633_vm2, %v566_v11, %v563_v3 }
  0xbe   : > { %467 = vmax.xlane.f32.xlu0 %v466_v28 }
  0xc0   : > { %v348_v59 = vpop.xlane.xlu2 %347  ;;  %v345_v48 = vpop.xlane.xlu1 %344 }
  0xc1   : > { %v342_v5 = vpop.xlane.xlu0 %341  ;;  %v571_v40 = vperm.slane %v348_v59, %v4599_v29  ;;  %v570_v28 = vperm.slane %v345_v48, %v4590_v21 }
  0xc2   : > { %v568_v23 = vperm.slane %v342_v5, %v4599_v29 }
  0xc3   : > { %v572_v54 = vsel %vm538_vm1, %v571_v40, %v570_v28 }
  0xc4   : > { %v569_v51 = vsel %vm538_vm1, %v568_v23, %v567_v57 }
  0xc5   : > { %v648_v59 = vsel %vm635_vm3, %v569_v51, %v647_v34 }
  0xc8   : > { %v357_v45 = vpop.xlane.xlu2 %356  ;;  %v354_v41 = vpop.xlane.xlu1 %353 }
  0xc9   : > { %v351_v39 = vpop.xlane.xlu0 %350  ;;  %v574_v60 = vperm.slane %v354_v41, %v4599_v29  ;;  %v576_v58 = vperm.slane %v357_v45, %v4590_v21 }
  0xca   : > { %v573_v4 = vperm.slane %v351_v39, %v4590_v21  ;;  %v649_v39 = vsel %vm637_vm4, %v572_v54, %v648_v59 }
  0xcc   : > { %v575_v48 = vsel %vm538_vm1, %v574_v60, %v573_v4 }
  0xd0   : > { %v366_v52 = vpop.xlane.xlu2 %365  ;;  %v363_v15 = vpop.xlane.xlu1 %362 }
  0xd1   : > { %v360_v46 = vpop.xlane.xlu0 %359  ;;  %v580_v53 = vperm.slane %v366_v52, %v4599_v29  ;;  %v579_v47 = vperm.slane %v363_v15, %v4590_v21 }
  0xd2   : > { %v577_v5 = vperm.slane %v360_v46, %v4599_v29  ;;  %v650_v46 = vsel %vm639_vm5, %v575_v48, %v649_v39 }
  0xd3   : > { %v581_v11 = vsel %vm538_vm1, %v580_v53, %v579_v47 }
  0xd4   : > { %v578_v41 = vsel %vm538_vm1, %v577_v5, %v576_v58 }
  0xd5   : > { %v651_v40 = vsel %vm641_vm6, %v578_v41, %v650_v46 }
  0xd6   : > { %v652_v15 = vsel %vm643_vm7, %v581_v11, %v651_v40 }
  0xd8   : > { %v375_v57 = vpop.xlane.xlu2 %374  ;;  %v372_v45 = vpop.xlane.xlu1 %371 }
  0xd9   : > { %v583_v23 = vperm.slane %v372_v45, %v4599_v29  ;;  %v369_v3 = vpop.xlane.xlu0 %368  ;;  %v585_v41 = vperm.slane %v375_v57, %v4590_v21 }
  0xda   : > { %v582_v28 = vperm.slane %v369_v3, %v4590_v21 }
  0xdc   : > { %v584_v52 = vsel %vm538_vm1, %v583_v23, %v582_v28 }
  0xdd   : > { %v653_v51 = vsel %vm645_vm8, %v584_v52, %v652_v15 }
  0xde   : > { %v675_v60 = vsel %vm276_vm0, %v653_v51, -inf }
  0xdf   : > { %676 = vmax.xlane.f32.xlu2 %v675_v60 }
  0xe0   : > { %v384_v4 = vpop.xlane.xlu2 %383  ;;  %v381_v58 = vpop.xlane.xlu1 %380 }
  0xe1   : > { %v378_v5 = vpop.xlane.xlu0 %377  ;;  %v589_v39 = vperm.slane %v384_v4, %v4599_v29  ;;  %v588_v45 = vperm.slane %v381_v58, %v4590_v21 }
  0xe2   : > { %v586_v46 = vperm.slane %v378_v5, %v4599_v29 }
  0xe3   : > { %v590_v51 = vsel %vm538_vm1, %v589_v39, %v588_v45 }
  0xe4   : > { %v587_v57 = vsel %vm538_vm1, %v586_v46, %v585_v41 }
  0xe8   : > { %v390_v34 = vpop.xlane.xlu1 %389  ;;  %v393_v54 = vpop.xlane.xlu2 %392 }
  0xe9   : > { %v387_v59 = vpop.xlane.xlu0 %386  ;;  %v592_v23 = vperm.slane %v390_v34, %v4599_v29  ;;  %v594_v28 = vperm.slane %v393_v54, %v4590_v21  ;;  %v654_v54 = vsel %vm633_vm2, %v590_v51, %v587_v57 }
  0xea   : > { %v591_v3 = vperm.slane %v387_v59, %v4590_v21 }
  0xec   : > { %v593_v60 = vsel %vm538_vm1, %v592_v23, %v591_v3 }
  0xf0   : > { %v399_v48 = vpop.xlane.xlu1 %398  ;;  %v402_v53 = vpop.xlane.xlu2 %401 }
  0xf1   : > { %v396_v47 = vpop.xlane.xlu0 %395  ;;  %v597_v4 = vperm.slane %v399_v48, %v4590_v21  ;;  %v598_v58 = vperm.slane %v402_v53, %v4599_v29 }
  0xf2   : > { %v595_v52 = vperm.slane %v396_v47, %v4599_v29  ;;  %v655_v47 = vsel %vm635_vm3, %v593_v60, %v654_v54  ;;  %v687_v54 = vsel %vm276_vm0, %v4319_v8, 0.0  ;;  %v702_v8 = vsel %vm276_vm0, %v4334_v14, 0.0 }
  0xf3   : > { %v599_v41 = vsel %vm538_vm1, %v598_v58, %v597_v4 }
  0xf4   : > { %v596_v5 = vsel %vm538_vm1, %v595_v52, %v594_v28 }
  0xf5   : > { %v656_v39 = vsel %vm637_vm4, %v596_v5, %v655_v47 }
  0xf8   : > { %v408_v11 = vpop.xlane.xlu1 %407  ;;  %v411_v40 = vpop.xlane.xlu2 %410 }
  0xf9   : > { %v405_v15 = vpop.xlane.xlu0 %404  ;;  %v601_v34 = vperm.slane %v408_v11, %v4599_v29  ;;  %v603_v45 = vperm.slane %v411_v40, %v4590_v21 }
  0xfa   : > { %v600_v59 = vperm.slane %v405_v15, %v4590_v21  ;;  %v657_v15 = vsel %vm639_vm5, %v599_v41, %v656_v39 }
  0xfc   : > { %v602_v53 = vsel %vm538_vm1, %v601_v34, %v600_v59  ;;  %v684_v59 = vsel %vm276_vm0, %v4304_v2, 0.0  ;;  %v705_v2 = vsel %vm276_vm0, %v4331_v13, 0.0 }
  0xfd   : > { %v658_v57 = vsel %vm641_vm6, %v602_v53, %v657_v15  ;;  %685 = vadd.xlane.f32.xlu2 %v684_v59 }
 0x100   : > { %v417_v46 = vpop.xlane.xlu1 %416  ;;  %v420_v48 = vpop.xlane.xlu2 %419 }
 0x101   : > { %v606_v23 = vperm.slane %v417_v46, %v4590_v21  ;;  %v414_v3 = vpop.xlane.xlu0 %413  ;;  %v607_v11 = vperm.slane %v420_v48, %v4599_v29  ;;  %v693_v46 = vsel %vm276_vm0, %v4316_v7, 0.0 }
 0x102   : > { %v604_v28 = vperm.slane %v414_v3, %v4599_v29 }
 0x103   : > { %v608_v52 = vsel %vm538_vm1, %v607_v11, %v606_v23 }
 0x104   : > { %v605_v51 = vsel %vm538_vm1, %v604_v28, %v603_v45  ;;  %v696_v45 = vsel %vm276_vm0, %v4298_v0, 0.0 }
 0x105   : > { %v659_v40 = vsel %vm643_vm7, %v605_v51, %v658_v57  ;;  %694 = vadd.xlane.f32.xlu2 %v693_v46  ;;  %v711_v57 = vsel %vm276_vm0, %v4349_v20, 0.0 }
 0x106   : > { %v660_v60 = vsel %vm645_vm8, %v608_v52, %v659_v40  ;;  %v714_v52 = vsel %vm276_vm0, %v4346_v19, 0.0 }
 0x107   : > { %v678_v4 = vsel %vm276_vm0, %v660_v60, -inf }
 0x108   : > { %679 = vmax.xlane.f32.xlu0 %v678_v4  ;;  %v426_v58 = vpop.xlane.xlu1 %425  ;;  %v429_v5 = vpop.xlane.xlu2 %428 }
 0x109   : > { %v423_v34 = vpop.xlane.xlu0 %422  ;;  %v612_v0 = vperm.slane %v429_v5, %v4590_v21  ;;  %v610_v15 = vperm.slane %v426_v58, %v4599_v29 }
 0x10a   : > { %v609_v51 = vperm.slane %v423_v34, %v4590_v21 }
 0x10c   : > { %v611_v34 = vsel %vm538_vm1, %v610_v15, %v609_v51 }
 0x10d   : > { %703 = vadd.xlane.f32.xlu2 %v702_v8 }
 0x110   : > { %v435_v47 = vpop.xlane.xlu1 %434  ;;  %688 = vadd.xlane.f32.xlu0 %v687_v54  ;;  %v438_v41 = vpop.xlane.xlu2 %437 }
 0x111   : > { %v432_v39 = vpop.xlane.xlu0 %431  ;;  %v615_v13 = vperm.slane %v435_v47, %v4590_v21  ;;  %v616_v14 = vperm.slane %v438_v41, %v4599_v29 }
 0x112   : > { %v613_v28 = vperm.slane %v432_v39, %v4599_v29 }
 0x113   : > { %v617_v20 = vsel %vm538_vm1, %v616_v14, %v615_v13  ;;  %v732_v14 = vsel %vm276_vm0, %v4376_v31, 0.0  ;;  %v699_v31 = vsel %vm276_vm0, %v4313_v6, 0.0  ;;  %v717_v6 = vsel %vm276_vm0, %v4343_v18, 0.0 }
 0x114   : > { %v614_v40 = vsel %vm538_vm1, %v613_v28, %v612_v0  ;;  %v735_v18 = vsel %vm276_vm0, %v4373_v30, 0.0  ;;  %v753_v30 = vsel %vm276_vm0, %v4403_v42, 0.0 }
 0x115   : > { %712 = vadd.xlane.f32.xlu2 %v711_v57  ;;  %v661_v54 = vsel %vm633_vm2, %v614_v40, %v611_v34  ;;  %v729_v40 = vsel %vm276_vm0, %v4379_v32, 0.0  ;;  %v750_v32 = vsel %vm276_vm0, %v4406_v43, 0.0  ;;  %v768_v43 = vsel %vm276_vm0, %v4436_v55, 0.0 }
 0x116   : > { %v786_v55 = vsel %vm276_vm0, %v4466_v9, 0.0  ;;  %v831_v9 = vsel %vm276_vm0, %v4544_v16, 0.0 }
 0x118   : > { %v444_v48 = vpop.xlane.xlu1 %443  ;;  %697 = vadd.xlane.f32.xlu0 %v696_v45  ;;  %v447_v23 = vpop.xlane.xlu2 %446 }
 0x119   : > { %v441_v53 = vpop.xlane.xlu0 %440  ;;  %v619_v60 = vperm.slane %v444_v48, %v4599_v29  ;;  %v621_v19 = vperm.slane %v447_v23, %v4590_v21  ;;  %v723_v23 = vsel %vm276_vm0, %v4361_v25, 0.0 }
 0x11a   : > { %v618_v4 = vperm.slane %v441_v53, %v4590_v21 }
 0x11c   : > { %v620_v47 = vsel %vm538_vm1, %v619_v60, %v618_v4  ;;  %v690_v60 = vsel %vm276_vm0, %v4301_v1, 0.0  ;;  %v741_v4 = vsel %vm276_vm0, %v4391_v37, 0.0  ;;  %v708_v1 = vsel %vm276_vm0, %v4328_v12, 0.0 }
 0x11d   : > { %v759_v37 = vsel %vm276_vm0, %v4421_v49, 0.0  ;;  %v726_v12 = vsel %vm276_vm0, %v4358_v24, 0.0  ;;  %v777_v49 = vsel %vm276_vm0, %v4451_v61, 0.0  ;;  %v744_v24 = vsel %vm276_vm0, %v4388_v36, 0.0 }
 0x11e   : > { %v795_v61 = vsel %vm276_vm0, %v4478_v17, 0.0  ;;  %v7015_v17 = vld [vmem:[#allocation5_spill] sm:$0xff] }
 0x120   : > { %v453_v3 = vpop.xlane.xlu1 %452  ;;  %706 = vadd.xlane.f32.xlu0 %v705_v2  ;;  %v456_v7 = vpop.xlane.xlu2 %455  ;;  %v662_v2 = vsel %vm635_vm3, %v617_v20, %v661_v54  ;;  %v7017_v54 = vld [vmem:[#allocation22_spill] sm:$0xff] }
 0x121   : > { %v450_v11 = vpop.xlane.xlu0 %449  ;;  %v624_v39 = vperm.slane %v453_v3, %v4590_v21  ;;  %v625_v41 = vperm.slane %v456_v7, %v4599_v29  ;;  %v663_v8 = vsel %vm637_vm4, %v620_v47, %v662_v2  ;;  %v837_v42 = vsel %vm276_vm0, %v7017_v54, 0.0  ;;  %v7018_v20 = vld [vmem:[#allocation6_spill] sm:$0xff]  ;;  %v7022_v2 = vld [vmem:[#allocation12_spill] sm:$0xff] }
 0x122   : > { %v622_v58 = vperm.slane %v450_v11, %v4599_v29  ;;  %v720_v11 = vsel %vm276_vm0, %v4364_v26, 0.0 }
 0x123   : > { %v626_v3 = vsel %vm538_vm1, %v625_v41, %v624_v39  ;;  %721 = vadd.xlane.f32.xlu2 %v720_v11  ;;  %v7019_v39 = vld [vmem:[#allocation23_spill] sm:$0xff] }
 0x124   : > { %v623_v45 = vsel %vm538_vm1, %v622_v58, %v621_v19  ;;  %v738_v19 = vsel %vm276_vm0, %v4394_v38, 0.0  ;;  %v747_v58 = vsel %vm276_vm0, %v4409_v44, 0.0  ;;  %v756_v38 = vsel %vm276_vm0, %v4424_v50, 0.0 }
 0x125   : > { %v664_v28 = vsel %vm639_vm5, %v623_v45, %v663_v8  ;;  %v765_v44 = vsel %vm276_vm0, %v4439_v56, 0.0  ;;  %v774_v50 = vsel %vm276_vm0, %v4454_v62, 0.0  ;;  %v783_v56 = vsel %vm276_vm0, %v4469_v10, 0.0  ;;  %v7020_v45 = vld [vmem:[#allocation25_spill] sm:$0xff] }
 0x126   : > { %v665_v15 = vsel %vm641_vm6, %v626_v3, %v664_v28  ;;  %v792_v62 = vsel %vm276_vm0, %v4484_v22, 0.0  ;;  %v828_v10 = vsel %vm276_vm0, %v4552_v35, 0.0  ;;  %v7016_v22 = vld [vmem:[#allocation20_spill] sm:$0xff]  ;;  %v771_v35 = vsel %vm276_vm0, %v7018_v20, 0.0 }
 0x127   : > { %v849_v41 = vsel %vm276_vm0, %v7019_v39, 0.0  ;;  %v801_v8 = vsel %vm276_vm0, %v7022_v2, 0.0  ;;  %v7023_v3 = vld [vmem:[#allocation28_spill] sm:$0xff] }
 0x128   : > { %715 = vadd.xlane.f32.xlu0 %v714_v52  ;;  %v462_v59 = vpop.xlane.xlu1 %461  ;;  %v465_v53 = vpop.xlane.xlu2 %464 }
 0x129   : > { %v459_v5 = vpop.xlane.xlu0 %458  ;;  %v628_v46 = vperm.slane %v462_v59, %v4599_v29  ;;  %v630_v0 = vperm.slane %v465_v53, %v4590_v21  ;;  %v840_v59 = vsel %vm276_vm0, %v7016_v22, 0.0  ;;  %v7021_v53 = vld [vmem:[#allocation7_spill] sm:$0xff] }
 0x12a   : > { %v627_v48 = vperm.slane %v459_v5, %v4590_v21  ;;  %v762_v5 = vsel %vm276_vm0, %v7015_v17, 0.0  ;;  %v7036_v22 = vld [vmem:[#allocation11_spill] sm:$0xff] }
 0x12b   : > { %730 = vadd.xlane.f32.xlu2 %v729_v40 }
 0x12c   : > { %v629_v52 = vsel %vm538_vm1, %v628_v46, %v627_v48  ;;  %v846_v46 = vsel %vm276_vm0, %v7020_v45, 0.0 }
 0x12d   : > { %v666_v13 = vsel %vm643_vm7, %v629_v52, %v665_v15 }
 0x130   : > { %724 = vadd.xlane.f32.xlu0 %v723_v23  ;;  %v780_v23 = vsel %vm276_vm0, %v7021_v53, 0.0 }
 0x131   : > { %v468_v7 = vpop.xlane.xlu0 %467 }
 0x132   : > { %v631_v25 = vperm.slane %v468_v7, %v4599_v29  ;;  %v7024_v7 = vld [vmem:[#allocation8_spill] sm:$0xff] }
 0x133   : > { %739 = vadd.xlane.f32.xlu2 %v738_v19  ;;  %v789_v52 = vsel %vm276_vm0, %v7024_v7, 0.0  ;;  %v674_v19 = vpop.xlane.xlu1 %673 }
 0x134   : > { %v632_v51 = vsel %vm538_vm1, %v631_v25, %v630_v0  ;;  %v855_v0 = vsel %vm276_vm0, %v7023_v3, 0.0  ;;  %v7025_v25 = vld [vmem:[#allocation27_spill] sm:$0xff]  ;;  %v7039_v3 = vld [vmem:[#allocation16_spill] sm:$0xff] }
 0x135   : > { %v667_v26 = vsel %vm645_vm8, %v632_v51, %v666_v13  ;;  %v861_v15 = vsel %vm276_vm0, %v7025_v25, 0.0  ;;  %v7026_v51 = vld [vmem:[#allocation10_spill] sm:$0xff] }
 0x136   : > { %v681_v57 = vsel %vm276_vm0, %v667_v26, -inf  ;;  %v804_v13 = vsel %vm276_vm0, %v7026_v51, 0.0 }
 0x137   : > { %682 = vmax.xlane.f32.xlu1 %v681_v57 }
 0x138   : > { %733 = vadd.xlane.f32.xlu0 %v732_v14  ;;  %v7027_v14 = vld [vmem:[#allocation9_spill] sm:$0xff] }
 0x139   : > { %v798_v57 = vsel %vm276_vm0, %v7027_v14, 0.0 }
 0x13b   : > { %748 = vadd.xlane.f32.xlu2 %v747_v58 }
 0x13f   : > { %691 = vadd.xlane.f32.xlu1 %v690_v60  ;;  %v864_v60 = vsel %vm276_vm0, %v4647_v33, 0.0  ;;  %v870_v33 = vsel %vm276_vm0, %v4639_v63, 0.0 }
 0x140   : > { %742 = vadd.xlane.f32.xlu0 %v741_v4  ;;  %v867_v4 = vsel %vm276_vm0, %v4634_v27, 0.0 }
 0x143   : > { %757 = vadd.xlane.f32.xlu2 %v756_v38 }
 0x147   : > { %700 = vadd.xlane.f32.xlu1 %v699_v31 }
 0x148   : > { %751 = vadd.xlane.f32.xlu0 %v750_v32  ;;  %v7028_v32 = vld [vmem:[#allocation19_spill] sm:$0xff] }
 0x149   : > { %v834_v58 = vsel %vm276_vm0, %v7028_v32, 0.0 }
 0x14b   : > { %766 = vadd.xlane.f32.xlu2 %v765_v44 }
 0x14f   : > { %709 = vadd.xlane.f32.xlu1 %v708_v1 }
 0x150   : > { %760 = vadd.xlane.f32.xlu0 %v759_v37  ;;  %v7029_v37 = vld [vmem:[#allocation13_spill] sm:$0xff] }
 0x151   : > { %v813_v38 = vsel %vm276_vm0, %v7029_v37, 0.0 }
 0x152   : > { %v677_v36 = vpop.xlane.xlu2 %676 }
 0x153   : > { %775 = vadd.xlane.f32.xlu2 %v774_v50  ;;  %v7032_v50 = vld [vmem:[#allocation18_spill] sm:$0xff] }
 0x157   : > { %718 = vadd.xlane.f32.xlu1 %v717_v6  ;;  %v7030_v6 = vld [vmem:[#allocation21_spill] sm:$0xff] }
 0x158   : > { %769 = vadd.xlane.f32.xlu0 %v768_v43  ;;  %v843_v43 = vsel %vm276_vm0, %v7030_v6, 0.0 }
 0x15b   : > { %784 = vadd.xlane.f32.xlu2 %v783_v56  ;;  %v7033_v56 = vld [vmem:[#allocation24_spill] sm:$0xff] }
 0x15f   : > { %727 = vadd.xlane.f32.xlu1 %v726_v12  ;;  %v7031_v12 = vld [vmem:[#allocation14_spill] sm:$0xff] }
 0x160   : > { %778 = vadd.xlane.f32.xlu0 %v777_v49  ;;  %v816_v49 = vsel %vm276_vm0, %v7031_v12, 0.0 }
 0x163   : > { %793 = vadd.xlane.f32.xlu2 %v792_v62 }
 0x167   : > { %736 = vadd.xlane.f32.xlu1 %v735_v18  ;;  %v819_v18 = vsel %vm276_vm0, %v7032_v50, 0.0 }
 0x168   : > { %787 = vadd.xlane.f32.xlu0 %v786_v55 }
 0x16b   : > { %829 = vadd.xlane.f32.xlu2 %v828_v10 }
 0x16f   : > { %745 = vadd.xlane.f32.xlu1 %v744_v24  ;;  %v852_v24 = vsel %vm276_vm0, %v7033_v56, 0.0 }
 0x170   : > { %796 = vadd.xlane.f32.xlu0 %v795_v61  ;;  %v4849_v16 = vpop.xlane.xlu2 %685 }
 0x173   : > { %838 = vadd.xlane.f32.xlu2 %v837_v42 }
 0x177   : > { %754 = vadd.xlane.f32.xlu1 %v753_v30 }
 0x178   : > { %832 = vadd.xlane.f32.xlu0 %v831_v9  ;;  %v4859_v48 = vpop.xlane.xlu2 %694  ;;  %v7034_v9 = vld [vmem:[#allocation26_spill] sm:$0xff] }
 0x179   : > { %v858_v10 = vsel %vm276_vm0, %v7034_v9, 0.0 }
 0x17b   : > { %v680_v34 = vpop.xlane.xlu0 %679  ;;  %847 = vadd.xlane.f32.xlu2 %v846_v46  ;;  %v7038_v46 = vld [vmem:[#allocation29_spill] sm:$0xff] }
 0x17c   : > { %v873_v53 = vsel %vm276_vm0, %v7038_v46, 0.0 }
 0x17f   : > { %763 = vadd.xlane.f32.xlu1 %v762_v5 }
 0x180   : > { %841 = vadd.xlane.f32.xlu0 %v840_v59  ;;  %v4869_v28 = vpop.xlane.xlu2 %703  ;;  %v807_v59 = vsel %vm276_vm0, %v7036_v22, 0.0 }
 0x183   : > { %v4853_v47 = vpop.xlane.xlu0 %688  ;;  %856 = vadd.xlane.f32.xlu2 %v855_v0  ;;  %v822_v0 = vsel %vm276_vm0, %v7039_v3, 0.0 }
 0x187   : > { %772 = vadd.xlane.f32.xlu1 %v771_v35  ;;  %v7037_v35 = vld [vmem:[#allocation15_spill] sm:$0xff] }
 0x188   : > { %850 = vadd.xlane.f32.xlu0 %v849_v41  ;;  %v4881_v40 = vpop.xlane.xlu2 %712  ;;  %v810_v39 = vsel %vm276_vm0, %v7037_v35, 0.0 }
 0x18b   : > { %v4865_v11 = vpop.xlane.xlu0 %697  ;;  %862 = vadd.xlane.f32.xlu2 %v861_v15 }
 0x18f   : > { %781 = vadd.xlane.f32.xlu1 %v780_v23 }
 0x190   : > { %802 = vadd.xlane.f32.xlu0 %v801_v8 }
 0x193   : > { %v4877_v26 = vpop.xlane.xlu0 %706  ;;  %865 = vadd.xlane.f32.xlu2 %v864_v60 }
 0x196   : > { %v4891_v1 = vpop.xlane.xlu2 %721 }
 0x197   : > { %790 = vadd.xlane.f32.xlu1 %v789_v52 }
 0x198   : > { %805 = vadd.xlane.f32.xlu0 %v804_v13 }
 0x19b   : > { %v4887_v31 = vpop.xlane.xlu0 %715  ;;  %814 = vadd.xlane.f32.xlu2 %v813_v38 }
 0x19e   : > { %v4905_v55 = vpop.xlane.xlu2 %730 }
 0x19f   : > { %799 = vadd.xlane.f32.xlu1 %v798_v57 }
 0x1a0   : > { %868 = vadd.xlane.f32.xlu0 %v867_v4 }
 0x1a3   : > { %v4899_v44 = vpop.xlane.xlu0 %724  ;;  %817 = vadd.xlane.f32.xlu2 %v816_v49 }
 0x1a6   : > { %v740_v30 = vpop.xlane.xlu2 %739 }
 0x1a7   : > { %835 = vadd.xlane.f32.xlu1 %v834_v58  ;;  %v967_v60 = vperm.slane %v740_v30, %v4590_v21 }
 0x1a8   : > { %871 = vadd.xlane.f32.xlu0 %v870_v33 }
 0x1aa   : > { %v683_v27 = vpop.xlane.xlu1 %682 }
 0x1ab   : > { %1105 = vmatpush.msra.mxu0 %v683_v27  ;;  %v734_v61 = vpop.xlane.xlu0 %733 }
 0x1ac   : > { %v964_v14 = vperm.slane %v734_v61, %v4590_v21 }
 0x1ad   : > { %1106 = vmatpush.msra.mxu0 %v680_v34 }
 0x1ae   : > { %v749_v54 = vpop.xlane.xlu2 %748 }
 0x1af   : > { %844 = vadd.xlane.f32.xlu1 %v843_v43  ;;  %1107 = vmatpush.msra.mxu0 %v677_v36  ;;  %v7035_v36 = vld [vmem:[#allocation17_spill] sm:$0xff] }
 0x1b0   : > { %820 = vadd.xlane.f32.xlu0 %v819_v18  ;;  %v825_v17 = vsel %vm276_vm0, %v7035_v36, 0.0 }
 0x1b1   : > { %1108 = vmatpush.msra.mxu0 %v674_v19  ;;  %826 = vadd.xlane.f32.xlu2 %v825_v17  ;;  %v971_v19 = vperm.slane %v749_v54, %v4599_v29 }
 0x1b2   : > { %v4907_v63 = vpop.xlane.xlu1 %691 }
 0x1b3   : > { %v743_v5 = vpop.xlane.xlu0 %742 }
 0x1b4   : > { %v968_v57 = vperm.slane %v743_v5, %v4599_v29 }
 0x1b6   : > { %v758_v41 = vpop.xlane.xlu2 %757  ;;  %v969_v27 = vsel %vm538_vm1, %v968_v57, %v967_v60 }
 0x1b7   : > { %853 = vadd.xlane.f32.xlu1 %v852_v24  ;;  %v976_v49 = vperm.slane %v758_v41, %v4590_v21 }
 0x1ba   : > { %v4911_v62 = vpop.xlane.xlu1 %700 }
 0x1bb   : > { %v752_v20 = vpop.xlane.xlu0 %751 }
 0x1bc   : > { %v973_v58 = vperm.slane %v752_v20, %v4590_v21 }
 0x1be   : > { %v767_v2 = vpop.xlane.xlu2 %766 }
 0x1bf   : > { %859 = vadd.xlane.f32.xlu1 %v858_v10  ;;  %v980_v18 = vperm.slane %v767_v2, %v4599_v29 }
 0x1c2   : > { %v4917_v34 = vpop.xlane.xlu1 %709 }
 0x1c3   : > { %v761_v23 = vpop.xlane.xlu0 %760 }
 0x1c4   : > { %v977_v43 = vperm.slane %v761_v23, %v4599_v29 }
 0x1c6   : > { %v776_v25 = vpop.xlane.xlu2 %775  ;;  %v978_v17 = vsel %vm538_vm1, %v977_v43, %v976_v49  ;;  %v944_v43 = vperm.slane %v4859_v48, %v4599_v29  ;;  %v946_v49 = vperm.slane %v4865_v11, %v4590_v21  ;;  %v950_v48 = vperm.slane %v4877_v26, %v4599_v29 }
 0x1c7   : > { %808 = vadd.xlane.f32.xlu1 %v807_v59  ;;  %v985_v10 = vperm.slane %v776_v25, %v4590_v21 }
 0x1ca   : > { %v4921_v42 = vpop.xlane.xlu1 %718 }
 0x1cb   : > { %v770_v7 = vpop.xlane.xlu0 %769 }
 0x1cc   : > { %v982_v36 = vperm.slane %v770_v7, %v4590_v21 }
 0x1ce   : > { %v4931_v13 = vpop.xlane.xlu2 %784 }
 0x1cf   : > { %811 = vadd.xlane.f32.xlu1 %v810_v39 }
 0x1d2   : > { %v4925_v45 = vpop.xlane.xlu1 %727 }
 0x1d3   : > { %v779_v15 = vpop.xlane.xlu0 %778 }
 0x1d4   : > { %v986_v9 = vperm.slane %v779_v15, %v4599_v29 }
 0x1d6   : > { %v4951_v24 = vpop.xlane.xlu2 %793  ;;  %v987_v20 = vsel %vm538_vm1, %v986_v9, %v985_v10 }
 0x1d7   : > { %874 = vadd.xlane.f32.xlu1 %v873_v53 }
 0x1da   : > { %v737_v8 = vpop.xlane.xlu1 %736 }
 0x1db   : > { %v965_v4 = vperm.slane %v737_v8, %v4599_v29  ;;  %v4941_v33 = vpop.xlane.xlu0 %787 }
 0x1dd   : > { %v966_v6 = vsel %vm538_vm1, %v965_v4, %v964_v14 }
 0x1de   : > { %v1043_v61 = vsel %vm633_vm2, %v969_v27, %v966_v6  ;;  %v830_v8 = vpop.xlane.xlu2 %829 }
 0x1df   : > { %823 = vadd.xlane.f32.xlu1 %v822_v0 }
 0x1e2   : > { %v746_v52 = vpop.xlane.xlu1 %745 }
 0x1e3   : > { %v970_v32 = vperm.slane %v746_v52, %v4590_v21  ;;  %v4964_v39 = vpop.xlane.xlu0 %796 }
 0x1e5   : > { %v972_v12 = vsel %vm538_vm1, %v971_v19, %v970_v32 }
 0x1e6   : > { %v1044_v30 = vsel %vm635_vm3, %v972_v12, %v1043_v61  ;;  %v839_v52 = vpop.xlane.xlu2 %838  ;;  %v943_v12 = vperm.slane %v4907_v63, %v4590_v21  ;;  %v940_v61 = vperm.slane %v4849_v16, %v4590_v21  ;;  %v949_v63 = vperm.slane %v4869_v28, %v4590_v21 }
 0x1e7   : > { %v1012_v28 = vperm.slane %v830_v8, %v4590_v21  ;;  %v959_v8 = vperm.slane %v4899_v44, %v4599_v29 }
 0x1e8   : > { %v945_v11 = vsel %vm538_vm1, %v944_v43, %v943_v12 }
 0x1ea   : > { %v755_v51 = vpop.xlane.xlu1 %754 }
 0x1eb   : > { %v974_v37 = vperm.slane %v755_v51, %v4599_v29  ;;  %v833_v0 = vpop.xlane.xlu0 %832 }
 0x1ec   : > { %v1013_v26 = vperm.slane %v833_v0, %v4599_v29 }
 0x1ed   : > { %v975_v50 = vsel %vm538_vm1, %v974_v37, %v973_v58 }
 0x1ee   : > { %v1045_v5 = vsel %vm637_vm4, %v975_v50, %v1044_v30  ;;  %v848_v51 = vpop.xlane.xlu2 %847  ;;  %v947_v50 = vperm.slane %v4911_v62, %v4599_v29  ;;  %v1016_v62 = vperm.slane %v839_v52, %v4599_v29  ;;  %v1014_v0 = vsel %vm538_vm1, %v1013_v26, %v1012_v28 }
 0x1ef   : > { %v1046_v35 = vsel %vm639_vm5, %v978_v17, %v1045_v5  ;;  %v955_v17 = vperm.slane %v4887_v31, %v4590_v21 }
 0x1f0   : > { %v948_v10 = vsel %vm538_vm1, %v947_v50, %v946_v49  ;;  %v995_v49 = vperm.slane %v4964_v39, %v4599_v29 }
 0x1f2   : > { %v764_v38 = vpop.xlane.xlu1 %763 }
 0x1f3   : > { %v979_v56 = vperm.slane %v764_v38, %v4590_v21  ;;  %v842_v25 = vpop.xlane.xlu0 %841 }
 0x1f5   : > { %v981_v22 = vsel %vm538_vm1, %v980_v18, %v979_v56  ;;  %v941_v56 = vperm.slane %v4853_v47, %v4599_v29  ;;  %v1018_v47 = vperm.slane %v842_v25, %v4590_v21 }
 0x1f6   : > { %v1047_v46 = vsel %vm641_vm6, %v981_v22, %v1046_v35  ;;  %v857_v60 = vpop.xlane.xlu2 %856  ;;  %v951_v22 = vsel %vm538_vm1, %v950_v48, %v949_v63  ;;  %v1021_v35 = vperm.slane %v848_v51, %v4590_v21  ;;  %v958_v51 = vperm.slane %v4891_v1, %v4590_v21 }
 0x1f7   : > { %v1025_v31 = vperm.slane %v857_v60, %v4599_v29  ;;  %v991_v60 = vperm.slane %v4941_v33, %v4590_v21  ;;  %v952_v1 = vperm.slane %v4917_v34, %v4590_v21  ;;  %v956_v33 = vperm.slane %v4921_v42, %v4599_v29 }
 0x1fa   : > { %v773_v59 = vpop.xlane.xlu1 %772 }
 0x1fb   : > { %v983_v54 = vperm.slane %v773_v59, %v4599_v29  ;;  %v851_v57 = vpop.xlane.xlu0 %850 }
 0x1fd   : > { %v984_v41 = vsel %vm538_vm1, %v983_v54, %v982_v36  ;;  %v942_v36 = vsel %vm538_vm1, %v941_v56, %v940_v61  ;;  %v1022_v54 = vperm.slane %v851_v57, %v4599_v29 }
 0x1fe   : > { %v1048_v53 = vsel %vm643_vm7, %v984_v41, %v1047_v46  ;;  %v863_v32 = vpop.xlane.xlu2 %862  ;;  %v1036_v5 = vsel %vm633_vm2, %v945_v11, %v942_v36  ;;  %v953_v46 = vperm.slane %v4881_v40, %v4599_v29  ;;  %v962_v40 = vperm.slane %v4905_v55, %v4599_v29 }
 0x1ff   : > { %v1049_v23 = vsel %vm645_vm8, %v987_v20, %v1048_v53  ;;  %v1037_v59 = vsel %vm635_vm3, %v948_v10, %v1036_v5  ;;  %v1028_v52 = vperm.slane %v863_v32, %v4599_v29  ;;  %v957_v10 = vsel %vm538_vm1, %v956_v33, %v955_v17 }
 0x200   : > { %v1071_v2 = vsel %vm276_vm0, %v1049_v23, 0.0  ;;  %v1038_v57 = vsel %vm637_vm4, %v951_v22, %v1037_v59 }
 0x201   : > { %1072 = vadd.xlane.f32.xlu2 %v1071_v2 }
 0x202   : > { %v4971_v3 = vpop.xlane.xlu1 %781 }
 0x203   : > { %v4977_v19 = vpop.xlane.xlu0 %802  ;;  %v988_v12 = vperm.slane %v4971_v3, %v4590_v21 }
 0x206   : > { %v4981_v27 = vpop.xlane.xlu2 %865 }
 0x207   : > { %v1030_v55 = vperm.slane %v4981_v27, %v4590_v21  ;;  %v994_v27 = vperm.slane %v4951_v24, %v4590_v21 }
 0x20a   : > { %v4973_v7 = vpop.xlane.xlu1 %790 }
 0x20b   : > { %v4979_v37 = vpop.xlane.xlu0 %805  ;;  %v992_v44 = vperm.slane %v4973_v7, %v4599_v29  ;;  %v989_v7 = vperm.slane %v4931_v13, %v4599_v29 }
 0x20c   : > { %v1000_v39 = vperm.slane %v4979_v37, %v4590_v21  ;;  %v954_v37 = vsel %vm538_vm1, %v953_v46, %v952_v1  ;;  %v960_v46 = vsel %vm538_vm1, %v959_v8, %v958_v51 }
 0x20d   : > { %v993_v42 = vsel %vm538_vm1, %v992_v44, %v991_v60  ;;  %v990_v63 = vsel %vm538_vm1, %v989_v7, %v988_v12 }
 0x20e   : > { %v5003_v30 = vpop.xlane.xlu2 %814 }
 0x212   : > { %v4975_v15 = vpop.xlane.xlu1 %799 }
 0x213   : > { %v4983_v6 = vpop.xlane.xlu0 %868  ;;  %v997_v13 = vperm.slane %v4975_v15, %v4590_v21  ;;  %v1004_v15 = vperm.slane %v5003_v30, %v4599_v29 }
 0x216   : > { %v818_v43 = vpop.xlane.xlu2 %817 }
 0x217   : > { %v1006_v5 = vperm.slane %v818_v43, %v4590_v21 }
 0x21a   : > { %v836_v14 = vpop.xlane.xlu1 %835 }
 0x21b   : > { %v1015_v9 = vperm.slane %v836_v14, %v4590_v21  ;;  %v872_v41 = vpop.xlane.xlu0 %871 }
 0x21c   : > { %v1033_v3 = vperm.slane %v872_v41, %v4590_v21 }
 0x21d   : > { %v1017_v20 = vsel %vm538_vm1, %v1016_v62, %v1015_v9 }
 0x21e   : > { %v1057_v14 = vsel %vm633_vm2, %v1017_v20, %v1014_v0 }
 0x222   : > { %v845_v4 = vpop.xlane.xlu1 %844 }
 0x223   : > { %v1019_v16 = vperm.slane %v845_v4, %v4599_v29  ;;  %v1023_v4 = vsel %vm538_vm1, %v1022_v54, %v1021_v35  ;;  %v821_v62 = vpop.xlane.xlu0 %820  ;;  %v1039_v35 = vsel %vm639_vm5, %v954_v37, %v1038_v57 }
 0x224   : > { %v1007_v22 = vperm.slane %v821_v62, %v4599_v29  ;;  %v827_v59 = vpop.xlane.xlu2 %826 }
 0x225   : > { %v1020_v53 = vsel %vm538_vm1, %v1019_v16, %v1018_v47  ;;  %v1050_v47 = vsel %vm633_vm2, %v993_v42, %v990_v63  ;;  %v961_v16 = vperm.slane %v4925_v45, %v4590_v21 }
 0x226   : > { %v1058_v32 = vsel %vm635_vm3, %v1020_v53, %v1057_v14  ;;  %v1040_v53 = vsel %vm641_vm6, %v957_v10, %v1039_v35 }
 0x227   : > { %v1059_v50 = vsel %vm637_vm4, %v1023_v4, %v1058_v32  ;;  %v1041_v57 = vsel %vm643_vm7, %v960_v46, %v1040_v53 }
 0x22a   : > { %v854_v58 = vpop.xlane.xlu1 %853 }
 0x22b   : > { %v1024_v23 = vperm.slane %v854_v58, %v4590_v21 }
 0x22d   : > { %v1026_v58 = vsel %vm538_vm1, %v1025_v31, %v1024_v23  ;;  %v1010_v31 = vperm.slane %v827_v59, %v4599_v29  ;;  %v963_v23 = vsel %vm538_vm1, %v962_v40, %v961_v16 }
 0x22e   : > { %v1060_v56 = vsel %vm639_vm5, %v1026_v58, %v1059_v50  ;;  %v1042_v60 = vsel %vm645_vm8, %v963_v23, %v1041_v57 }
 0x22f   : > { %v1068_v40 = vsel %vm276_vm0, %v1042_v60, 0.0 }
 0x232   : > { %v860_v38 = vpop.xlane.xlu1 %859 }
 0x233   : > { %v1027_v25 = vperm.slane %v860_v38, %v4590_v21  ;;  %v1031_v38 = vperm.slane %v4983_v6, %v4599_v29  ;;  %v998_v6 = vperm.slane %v4977_v19, %v4599_v29 }
 0x235   : > { %v1029_v34 = vsel %vm538_vm1, %v1028_v52, %v1027_v25  ;;  %v1032_v19 = vsel %vm538_vm1, %v1031_v38, %v1030_v55  ;;  %v999_v36 = vsel %vm538_vm1, %v998_v6, %v997_v13  ;;  %v1008_v52 = vsel %vm538_vm1, %v1007_v22, %v1006_v5  ;;  %v1088_v6 = vld [vmem:[%s6897_s3 + $0x18] sm:$0xff] }
 0x236   : > { %v1061_v48 = vsel %vm641_vm6, %v1029_v34, %v1060_v56  ;;  %v1085_v34 = vld [vmem:[%s6897_s3] sm:$0xff] }
 0x237   : > { %v1062_v26 = vsel %vm643_vm7, %v1032_v19, %v1061_v48 }
 0x23a   : > { %v4993_v18 = vpop.xlane.xlu1 %808 }
 0x23b   : > { %v1001_v24 = vperm.slane %v4993_v18, %v4599_v29  ;;  %v996_v18 = vsel %vm538_vm1, %v995_v49, %v994_v27  ;;  %v1086_v49 = vld [vmem:[%s6897_s3 + $0x8] sm:$0xff]  ;;  %v1087_v27 = vld [vmem:[%s6897_s3 + $0x10] sm:$0xff] }
 0x23c   : > { %v1051_v54 = vsel %vm635_vm3, %v996_v18, %v1050_v47 }
 0x23d   : > { %v1002_v28 = vsel %vm538_vm1, %v1001_v24, %v1000_v39  ;;  %v1052_v41 = vsel %vm637_vm4, %v999_v36, %v1051_v54  ;;  %v4243_v39 = vmov 0  }
 0x23e   : > { %4124 = vset.pattern.permute.xlu1 %v4243_v39  ;;  %4126 = vset.pattern.permute.xlu0 %v4243_v39 }
 0x23f   : > { %4125 = vset.pattern.permute.xlu2 %v4243_v39 }
 0x242   : > { %v812_v2 = vpop.xlane.xlu1 %811 }
 0x243   : > { %v1003_v11 = vperm.slane %v812_v2, %v4590_v21  ;;  %v1053_v2 = vsel %vm639_vm5, %v1002_v28, %v1052_v41 }
 0x245   : > { %v1005_v20 = vsel %vm538_vm1, %v1004_v15, %v1003_v11 }
 0x246   : > { %v1054_v25 = vsel %vm641_vm6, %v1005_v20, %v1053_v2 }
 0x247   : > { %v1055_v51 = vsel %vm643_vm7, %v1008_v52, %v1054_v25 }
 0x24a   : > { %v875_v61 = vpop.xlane.xlu1 %874 }
 0x24b   : > { %v1034_v9 = vperm.slane %v875_v61, %v4599_v29 }
 0x24d   : > { %v1035_v30 = vsel %vm538_vm1, %v1034_v9, %v1033_v3 }
 0x24e   : > { %v1063_v17 = vsel %vm645_vm8, %v1035_v30, %v1062_v26 }
 0x24f   : > { %v1077_v45 = vsel %vm276_vm0, %v1063_v17, 0.0 }
 0x250   : > { %1078 = vadd.xlane.f32.xlu0 %v1077_v45 }
 0x252   : > { %v824_v0 = vpop.xlane.xlu1 %823 }
 0x253   : > { %v1009_v14 = vperm.slane %v824_v0, %v4590_v21  ;;  %v1084_v21 = vld [vmem:[%s6896_s2] sm:$0xff] }
 0x254   : > { %3984 = vmatmul.msk.f32.vlgmr.msra.gmra.mxu0 %vm1089_vm9, %v1084_v21 }
 0x255   : > { %v1011_v8 = vsel %vm538_vm1, %v1010_v31, %v1009_v14 }
 0x256   : > { %v1056_v29 = vsel %vm645_vm8, %v1011_v8, %v1055_v51 }
 0x257   : > { %v1074_v44 = vsel %vm276_vm0, %v1056_v29, 0.0 }
 0x258   : > { %1069 = vadd.xlane.f32.xlu0 %v1068_v40  ;;  %1075 = vadd.xlane.f32.xlu1 %v1074_v44 }
 0x274   : > { %v1073_v1 = vpop.xlane.xlu2 %1072 }
 0x275   : > { %v1081_v43 = vmul.f32 0.00390625, %v1073_v1 }
 0x2c3   : > { %v1079_v4 = vpop.xlane.xlu0 %1078 }
 0x2c4   : > { %v1083_v32 = vmul.f32 0.00390625, %v1079_v4 }
 0x2c6   : > { %1126 = vmatpush.msra.mxu1 %v1083_v32 }
 0x2cb   : > { %v1076_v58 = vpop.xlane.xlu1 %1075  ;;  %v1070_v38 = vpop.xlane.xlu0 %1069 }
 0x2cc   : > { %v1082_v55 = vmul.f32 0.00390625, %v1076_v58  ;;  %v1080_v33 = vmul.f32 0.00390625, %v1070_v38 }
 0x2ce   : > { %1127 = vmatpush.msra.mxu1 %v1082_v55 }
 0x2d0   : > { %1128 = vmatpush.msra.mxu1 %v1081_v43 }
 0x2d1   : > { %v1110_v7 = vpop.f32.mrf.mxu0 }
 0x2d2   : > { %1129 = vmatpush.msra.mxu1 %v1080_v33  ;;  %v1113_v12 = vmax.f32 %v1110_v7, 0.0 }
 0x2d3   : > { %3985 = vmatmul.msk.f32.vlgmr.msra.gmra.mxu1 %vm1089_vm9, %v1084_v21 }
 0x2d4   : > { %1192 = vmatpush.msrb.mxu1 %v1113_v12  ;;  %4096 = vmatpush.msra.mxu3 %v1113_v12 }
 0x2d5   : > { %3991 = vmatmul.msk.f32.vlgmr.msra.gmra.mxu3 %vm1135_vm10, %v1086_v49 }
 0x2db   : > { %3990 = vmatmul.msk.f32.vlgmr.msrb.gmra.mxu1 %vm1135_vm10, %v1085_v34 }
 0x2dd   : > { %3992 = vmatmul.msk.f32.gmra.mxu3 %vm1135_vm10, %v1087_v27 }
 0x2e5   : > { %3993 = vmatmul.msk.f32.gmra.mxu3 %vm1135_vm10, %v1088_v6 }
 0x350   : > { %v1131_v50 = vpop.f32.mrf.mxu1 }
 0x351   : > { %v1134_v42 = vmax.f32 %v1131_v50, 0.0 }
 0x353   : > { %1163 = vmatpush.msrb.mxu0 %v1134_v42  ;;  %4095 = vmatpush.msra.mxu2 %v1134_v42 }
 0x354   : > { %3986 = vmatmul.msk.f32.vlgmr.msrb.gmra.mxu0 %vm1135_vm10, %v1085_v34  ;;  %3987 = vmatmul.msk.f32.vlgmr.msra.gmra.mxu2 %vm1135_vm10, %v1086_v49 }
 0x358   : > { %v1194_v13 = vpop.f32.mrf.mxu1  ;;  %v1197_v61 = vpop.f32.mrf.mxu3 }
 0x35c   : > { %3988 = vmatmul.msk.f32.gmra.mxu2 %vm1135_vm10, %v1087_v27 }
 0x360   : > { %v1200_v62 = vpop.f32.mrf.mxu3 }
 0x364   : > { %3989 = vmatmul.msk.f32.gmra.mxu2 %vm1135_vm10, %v1088_v6 }
 0x368   : > { %v1203_v26 = vpop.f32.mrf.mxu3 }
 0x3d1   : > { %v1165_v3 = vpop.f32.mrf.mxu0 }
 0x3d2   : > { %v1195_v56 = vadd.f32 %v1194_v13, %v1165_v3 }
 0x3d4   : > { %v1206_v24 = vsub.f32 0.0, %v1195_v56 }
 0x3d6   : > { %v1210_v19 = vmul.f32 1.442695, %v1206_v24 }
 0x3d7   : > { %v1168_v48 = vpop.f32.mrf.mxu2 }
 0x3d8   : > { %4127 = vpow2.f32 %v1210_v19  ;;  %v1198_v63 = vadd.f32 %v1197_v61, %v1168_v48 }
 0x3da   : > { %v1207_v15 = vsub.f32 0.0, %v1198_v63 }
 0x3dc   : > { %v1212_v11 = vmul.f32 1.442695, %v1207_v15 }
 0x3de   : > { %v4128_v9 = vpop.eup %4127  ;;  %4129 = vpow2.f32 %v1212_v11 }
 0x3df   : > { %v1218_v37 = vadd.f32 1.0, %v4128_v9  ;;  %v1171_v10 = vpop.f32.mrf.mxu2 }
 0x3e0   : > { %v1201_v18 = vadd.f32 %v1200_v62, %v1171_v10 }
 0x3e1   : > { %4131 = vrcp.f32 %v1218_v37  ;;  %v1231_v54 = vand.u32 2147483647, %v1218_v37  ;;  %v1233_v20 = vand.u32 2147483648, %v1218_v37  ;;  %vm1227_vm12 = vweird.f32 %v1218_v37 }
 0x3e2   : > { %v1208_v47 = vsub.f32 0.0, %v1201_v18 }
 0x3e3   : > { %vm1232_vm13 = vcmp.eq.f32.partialorder %v1231_v54, 8.507059e+37  ;;  %v1234_v2 = vor.u32 1.1754944e-38, %v1233_v20 }
 0x3e4   : > { %v4130_v16 = vpop.eup %4129  ;;  %v1214_v36 = vmul.f32 1.442695, %v1208_v47 }
 0x3e5   : > { %v1219_v30 = vadd.f32 1.0, %v4130_v16 }
 0x3e6   : > { %4133 = vpow2.f32 %v1214_v36 }
 0x3e7   : > { %v4132_v28 = vpop.eup %4131  ;;  %4135 = vrcp.f32 %v1219_v30  ;;  %v1174_v5 = vpop.f32.mrf.mxu2  ;;  %vm1242_vm15 = vweird.f32 %v1219_v30  ;;  %v1248_v0 = vand.u32 2147483648, %v1219_v30  ;;  %v1246_v14 = vand.u32 2147483647, %v1219_v30 }
 0x3e8   : > { %v1223_v22 = vmul.f32 %v4132_v28, %v1218_v37  ;;  %v1204_v17 = vadd.f32 %v1203_v26, %v1174_v5  ;;  %vm1228_vm11 = vweird.f32 %v4132_v28 }
 0x3e9   : > { %vm1229_vm14 = vmor %vm1227_vm12, %vm1228_vm11  ;;  %v1249_v44 = vor.u32 1.1754944e-38, %v1248_v0  ;;  %vm1247_vm3 = vcmp.eq.f32.partialorder %v1246_v14, 8.507059e+37  ;;  %vm1800_vm12 = vcmask 23552  }
 0x3ea   : > { %v1224_v59 = vsub.f32 1.0, %v1223_v22  ;;  %v1209_v53 = vsub.f32 0.0, %v1204_v17 }
 0x3ec   : > { %v4134_v45 = vpop.eup %4133  ;;  %v1225_v35 = vmul.f32 %v4132_v28, %v1224_v59  ;;  %v1216_v60 = vmul.f32 1.442695, %v1209_v53 }
 0x3ed   : > { %v4136_v41 = vpop.eup %4135  ;;  %v5129_v46 = vadd.f32 1.0, %v4134_v45 }
 0x3ee   : > { %v1226_v31 = vadd.f32 %v4132_v28, %v1225_v35  ;;  %v1238_v23 = vmul.f32 %v4136_v41, %v1219_v30  ;;  %vm1243_vm1 = vweird.f32 %v4136_v41 }
 0x3ef   : > { %4137 = vrcp.f32 %v5129_v46  ;;  %vm1244_vm2 = vmor %vm1242_vm15, %vm1243_vm1  ;;  %vm1257_vm4 = vweird.f32 %v5129_v46  ;;  %v1263_v24 = vand.u32 2147483648, %v5129_v46  ;;  %v1261_v19 = vand.u32 2147483647, %v5129_v46 }
 0x3f0   : > { %v1230_v52 = vsel %vm1229_vm14, %v4132_v28, %v1226_v31  ;;  %v1239_v25 = vsub.f32 1.0, %v1238_v23  ;;  %4139 = vpow2.f32 %v1216_v60  ;;  %vm1808_vm14 = vcmask 1042432  }
 0x3f1   : > { %v1235_v57 = vsel %vm1232_vm13, %v1234_v2, %v1230_v52  ;;  %v1264_v15 = vor.u32 1.1754944e-38, %v1263_v24  ;;  %vm1262_vm7 = vcmp.eq.f32.partialorder %v1261_v19, 8.507059e+37  ;;  %vm1803_vm13 = vcmask 154624  }
 0x3f2   : > { %v1240_v8 = vmul.f32 %v4136_v41, %v1239_v25  ;;  %v1314_v51 = vperm.slane %v1235_v57, 0  ;;  %v1287_v29 = vrot.slane %v1235_v57, 2  ;;  %v1286_v40 = vrot.slane %v1235_v57, 1 }
 0x3f3   : > { %v1289_v55 = vrot.slane %v1235_v57, 4  ;;  %v1288_v7 = vrot.slane %v1235_v57, 3  ;;  %v1291_v50 = vrot.slane %v1235_v57, 6  ;;  %v1290_v56 = vrot.slane %v1235_v57, 5 }
 0x3f4   : > { %v1241_v21 = vadd.f32 %v4136_v41, %v1240_v8  ;;  %1347 = vperm.xlu1 %4124, %v1314_v51   ;;  %v1316_v4 = vperm.slane %v1287_v29, 0  ;;  %v1315_v32 = vperm.slane %v1286_v40, 0  ;;  %v1292_v9 = vrot.slane %v1235_v57, 7 }
 0x3f5   : > { %v4138_v1 = vpop.eup %4137  ;;  %v1318_v12 = vperm.slane %v1289_v55, 0  ;;  %v1317_v6 = vperm.slane %v1288_v7, 0  ;;  %v1320_v39 = vperm.slane %v1291_v50, 0  ;;  %v1319_v63 = vperm.slane %v1290_v56, 0 }
 0x3f6   : > { %v1245_v58 = vsel %vm1244_vm2, %v4136_v41, %v1241_v21  ;;  %1355 = vperm.xlu0 %4126, %v1316_v4   ;;  %1351 = vperm.xlu2 %4125, %v1315_v32   ;;  %v1253_v43 = vmul.f32 %v4138_v1, %v5129_v46  ;;  %v4140_v49 = vpop.eup %4139  ;;  %vm1258_vm5 = vweird.f32 %v4138_v1  ;;  %v1321_v36 = vperm.slane %v1292_v9, 0 }
 0x3f7   : > { %v5132_v38 = vsel %vm1247_vm3, %v1249_v44, %v1245_v58  ;;  %v1221_v42 = vadd.f32 1.0, %v4140_v49  ;;  %vm1259_vm6 = vmor %vm1257_vm4, %vm1258_vm5  ;;  %vm2028_vm15 = vcmask 1046528   ;;  %vm2315_vm1 = vcmask 1045504  }
 0x3f8   : > { %v1293_v33 = vrot.slane %v5132_v38, 1  ;;  %v1254_v27 = vsub.f32 1.0, %v1253_v43  ;;  %v1296_v3 = vrot.slane %v5132_v38, 4  ;;  %v1299_v62 = vrot.slane %v5132_v38, 7 }
 0x3f9   : > { %4141 = vrcp.f32 %v1221_v42  ;;  %v1322_v10 = vperm.slane %v5132_v38, 0  ;;  %v1295_v30 = vrot.slane %v5132_v38, 3  ;;  %v1294_v5 = vrot.slane %v5132_v38, 2 }
 0x3fa   : > { %v1323_v34 = vperm.slane %v1293_v33, 0  ;;  %v1255_v13 = vmul.f32 %v4138_v1, %v1254_v27  ;;  %v1326_v48 = vperm.slane %v1296_v3, 0  ;;  %v1329_v16 = vperm.slane %v1299_v62, 0  ;;  %v4154_v62 = vld [vmem:[%s4295_s24 + $0x8] sm:$0xff] }
 0x3fb   : > { %v1325_v22 = vperm.slane %v1295_v30, 0  ;;  %v1324_v54 = vperm.slane %v1294_v5, 0  ;;  %vm1272_vm8 = vweird.f32 %v1221_v42  ;;  %v1298_v20 = vrot.slane %v5132_v38, 6  ;;  %v4156_v30 = vld [vmem:[%s4295_s24 + $0x28] sm:$0xff] }
 0x3fc   : > { %1363 = vperm.xlu1 %4124, %v1318_v12   ;;  %v1256_v61 = vadd.f32 %v4138_v1, %v1255_v13  ;;  %v1278_v45 = vand.u32 2147483648, %v1221_v42  ;;  %v1276_v41 = vand.u32 2147483647, %v1221_v42  ;;  %v1297_v53 = vrot.slane %v5132_v38, 5 }
 0x3fd   : > { %v1328_v31 = vperm.slane %v1298_v20, 0  ;;  %vm2602_vm2 = vcmask 1044480   ;;  %vm2889_vm3 = vcmask 1043456   ;;  %vm3462_vm4 = vcmask 1041408  }
 0x3fe   : > { %1383 = vperm.xlu0 %4126, %v1323_v34   ;;  %1359 = vperm.xlu2 %4125, %v1317_v6   ;;  %v1260_v11 = vsel %vm1259_vm6, %v4138_v1, %v1256_v61  ;;  %v1279_v23 = vor.u32 1.1754944e-38, %v1278_v45  ;;  %vm1277_vm11 = vcmp.eq.f32.partialorder %v1276_v41, 8.507059e+37  ;;  %v1327_v52 = vperm.slane %v1297_v53, 0  ;;  %v4151_v61 = vld [vmem:[%s4295_s24 + $0x10] sm:$0xff]  ;;  %v4158_v41 = vld [vmem:[%s4295_s24 + $0x38] sm:$0xff]  ;;  %v4159_v53 = vld [vmem:[%s4295_s24 + $0x40] sm:$0xff] }
 0x3ff   : > { %v4142_v37 = vpop.eup %4141  ;;  %v1265_v18 = vsel %vm1262_vm7, %v1264_v15, %v1260_v11  ;;  %v4153_v15 = vld [vmem:[%s4295_s24] sm:$0xff]  ;;  %v4157_v45 = vld [vmem:[%s4295_s24 + $0x30] sm:$0xff] }
 0x400   : > { %v1268_v47 = vmul.f32 %v4142_v37, %v1221_v42  ;;  %v1301_v26 = vrot.slane %v1265_v18, 2  ;;  %vm1273_vm9 = vweird.f32 %v4142_v37  ;;  %v1304_v46 = vrot.slane %v1265_v18, 5 }
 0x401   : > { %vm1274_vm10 = vmor %vm1272_vm8, %vm1273_vm9  ;;  %v1300_v25 = vrot.slane %v1265_v18, 1  ;;  %v1330_v8 = vperm.slane %v1265_v18, 0  ;;  %v1303_v51 = vrot.slane %v1265_v18, 4  ;;  %v1302_v40 = vrot.slane %v1265_v18, 3 }
 0x402   : > { %v1269_v28 = vsub.f32 1.0, %v1268_v47  ;;  %v1332_v17 = vperm.slane %v1301_v26, 0  ;;  %v1335_v0 = vperm.slane %v1304_v46, 0  ;;  %v1306_v32 = vrot.slane %v1265_v18, 7 }
 0x403   : > { %v1331_v57 = vperm.slane %v1300_v25, 0  ;;  %v1334_v44 = vperm.slane %v1303_v51, 0  ;;  %v1333_v4 = vperm.slane %v1302_v40, 0  ;;  %v1305_v58 = vrot.slane %v1265_v18, 6 }
 0x404   : > { %1371 = vperm.xlu1 %4124, %v1320_v39   ;;  %v1270_v59 = vmul.f32 %v4142_v37, %v1269_v28  ;;  %v1337_v55 = vperm.slane %v1306_v32, 0 }
 0x405   : > { %v1336_v43 = vperm.slane %v1305_v58, 0 }
 0x406   : > { %1395 = vperm.xlu0 %4126, %v1326_v48   ;;  %1367 = vperm.xlu2 %4125, %v1319_v63   ;;  %v1271_v35 = vadd.f32 %v4142_v37, %v1270_v59  ;;  %v4152_v48 = vld [vmem:[%s4295_s24 + $0x18] sm:$0xff] }
 0x408   : > { %v1275_v2 = vsel %vm1274_vm10, %v4142_v37, %v1271_v35 }
 0x409   : > { %v1280_v14 = vsel %vm1277_vm11, %v1279_v23, %v1275_v2  ;;  %v4160_v23 = vld [vmem:[%s4295_s24 + $0x48] sm:$0xff] }
 0x40a   : > { %v1338_v60 = vperm.slane %v1280_v14, 0  ;;  %v1309_v29 = vrot.slane %v1280_v14, 3  ;;  %v1312_v1 = vrot.slane %v1280_v14, 6  ;;  %v1308_v33 = vrot.slane %v1280_v14, 2 }
 0x40b   : > { %v1307_v7 = vrot.slane %v1280_v14, 1  ;;  %v1311_v49 = vrot.slane %v1280_v14, 5  ;;  %v1310_v27 = vrot.slane %v1280_v14, 4  ;;  %v1313_v42 = vrot.slane %v1280_v14, 7 }
 0x40c   : > { %1379 = vperm.xlu1 %4124, %v1322_v10   ;;  %v1341_v21 = vperm.slane %v1309_v29, 0  ;;  %v1344_v38 = vperm.slane %v1312_v1, 0  ;;  %v1340_v12 = vperm.slane %v1308_v33, 0  ;;  %v4161_v29 = vld [vmem:[%s4295_s24 + $0x50] sm:$0xff] }
 0x40d   : > { %v1339_v34 = vperm.slane %v1307_v7, 0  ;;  %v1343_v6 = vperm.slane %v1311_v49, 0  ;;  %v1342_v50 = vperm.slane %v1310_v27, 0  ;;  %v1345_v13 = vperm.slane %v1313_v42, 0  ;;  %v4164_v49 = vld [vmem:[%s4295_s24 + $0x68] sm:$0xff] }
 0x40e   : > { %1407 = vperm.xlu0 %4126, %v1329_v16   ;;  %1375 = vperm.xlu2 %4125, %v1321_v36   ;;  %v4155_v16 = vld [vmem:[%s4295_s24 + $0x20] sm:$0xff] }
 0x414   : > { %1391 = vperm.xlu1 %4124, %v1325_v22  }
 0x416   : > { %1419 = vperm.xlu0 %4126, %v1332_v17   ;;  %1387 = vperm.xlu2 %4125, %v1324_v54  }
 0x41c   : > { %1403 = vperm.xlu1 %4124, %v1328_v31  }
 0x41e   : > { %1431 = vperm.xlu0 %4126, %v1335_v0   ;;  %1399 = vperm.xlu2 %4125, %v1327_v52  }
 0x424   : > { %1415 = vperm.xlu1 %4124, %v1331_v57  }
 0x426   : > { %1443 = vperm.xlu0 %4126, %v1338_v60   ;;  %1411 = vperm.xlu2 %4125, %v1330_v8  }
 0x42c   : > { %1427 = vperm.xlu1 %4124, %v1334_v44   ;;  %v4162_v44 = vld [vmem:[%s4295_s24 + $0x58] sm:$0xff] }
 0x42e   : > { %1455 = vperm.xlu0 %4126, %v1341_v21   ;;  %1423 = vperm.xlu2 %4125, %v1333_v4  }
 0x434   : > { %1439 = vperm.xlu1 %4124, %v1337_v55  }
 0x436   : > { %1467 = vperm.xlu0 %4126, %v1344_v38   ;;  %1435 = vperm.xlu2 %4125, %v1336_v43  }
 0x43c   : > { %1451 = vperm.xlu1 %4124, %v1340_v12   ;;  %v4163_v12 = vld [vmem:[%s4295_s24 + $0x60] sm:$0xff] }
 0x43e   : > { %1447 = vperm.xlu2 %4125, %v1339_v34  }
 0x444   : > { %1463 = vperm.xlu1 %4124, %v1343_v6  }
 0x446   : > { %1459 = vperm.xlu2 %4125, %v1342_v50  }
 0x44e   : > { %1471 = vperm.xlu2 %4125, %v1345_v13  }
 0x450   : > { %v1352_v3 = vpop.permute.xlu2 %1351 }
 0x451   : > { %v5147_v19 = vmul.f32 %v4151_v61, %v1352_v3  ;;  %v5150_v63 = vmul.f32 %v4152_v48, %v1352_v3  ;;  %v4166_v61 = vld [vmem:[%s4295_s24 + $0x78] sm:$0xff] }
 0x453   : > { %7040 = vst [vmem:[#allocation5_spill] sm:$0xff] %v5147_v19  ;;  %v1665_v28 = vsel %vm276_vm0, %v5147_v19, 0.0  ;;  %v1728_v5 = vsel %vm276_vm0, %v5150_v63, 0.0  ;;  %v1539_v1 = vsel %vm276_vm0, %v5147_v19, -inf  ;;  %v1602_v58 = vsel %vm276_vm0, %v5150_v63, -inf }
 0x454   : > { %7041 = vst [vmem:[#allocation20_spill] sm:$0xff] %v5150_v63 }
 0x458   : > { %v1360_v56 = vpop.permute.xlu2 %1359 }
 0x459   : > { %v5177_v35 = vmul.f32 %v4157_v45, %v1360_v56  ;;  %v5180_v46 = vmul.f32 %v4158_v41, %v1360_v56 }
 0x45b   : > { %7046 = vst [vmem:[#allocation7_spill] sm:$0xff] %v5177_v35  ;;  %v1669_v57 = vsel %vm276_vm0, %v5177_v35, 0.0  ;;  %v1732_v60 = vsel %vm276_vm0, %v5180_v46, 0.0  ;;  %v1542_v33 = vsel %vm276_vm0, %v5177_v35, -inf  ;;  %v1605_v7 = vsel %vm276_vm0, %v5180_v46, -inf }
 0x45c   : > { %7047 = vst [vmem:[#allocation12_spill] sm:$0xff] %v5180_v46 }
 0x460   : > { %v1368_v39 = vpop.permute.xlu2 %1367 }
 0x461   : > { %v5199_v40 = vmul.f32 %v4161_v29, %v1368_v39  ;;  %v5202_v21 = vmul.f32 %v4162_v44, %v1368_v39  ;;  %v4165_v39 = vld [vmem:[%s4295_s24 + $0x70] sm:$0xff]  ;;  %v4169_v29 = vld [vmem:[%s4295_s24 + $0x80] sm:$0xff] }
 0x463   : > { %7050 = vst [vmem:[#allocation27_spill] sm:$0xff] %v5199_v40  ;;  %v1546_v6 = vsel %vm276_vm0, %v5199_v40, -inf  ;;  %v1609_v50 = vsel %vm276_vm0, %v5202_v21, -inf  ;;  %v1673_v42 = vsel %vm276_vm0, %v5199_v40, 0.0  ;;  %v1736_v13 = vsel %vm276_vm0, %v5202_v21, 0.0 }
 0x464   : > { %7051 = vst [vmem:[#allocation10_spill] sm:$0xff] %v5202_v21 }
 0x466   : > { %v1348_v24 = vpop.permute.xlu1 %1347 }
 0x467   : > { %v5153_v11 = vmul.f32 %v4153_v15, %v1348_v24  ;;  %v5156_v9 = vmul.f32 %v4154_v62, %v1348_v24 }
 0x468   : > { %v1356_v37 = vpop.permute.xlu0 %1355  ;;  %v1376_v10 = vpop.permute.xlu2 %1375 }
 0x469   : > { %7042 = vst [vmem:[#allocation22_spill] sm:$0xff] %v5153_v11  ;;  %v1664_v18 = vsel %vm276_vm0, %v5153_v11, 0.0  ;;  %v1727_v47 = vsel %vm276_vm0, %v5156_v9, 0.0  ;;  %v5163_v36 = vmul.f32 %v4155_v16, %v1356_v37  ;;  %v5166_v26 = vmul.f32 %v4156_v30, %v1356_v37 }
 0x46a   : > { %7043 = vst [vmem:[#allocation6_spill] sm:$0xff] %v5156_v9  ;;  %v1666_v22 = vadd.f32 %v1665_v28, %v1664_v18  ;;  %v1729_v17 = vadd.f32 %v1728_v5, %v1727_v47  ;;  %v5231_v24 = vmul.f32 %v4165_v39, %v1376_v10  ;;  %v5234_v48 = vmul.f32 %v4166_v61, %v1376_v10 }
 0x46b   : > { %7044 = vst [vmem:[#allocation23_spill] sm:$0xff] %v5163_v36  ;;  %v1667_v59 = vsel %vm276_vm0, %v5163_v36, 0.0  ;;  %v1730_v54 = vsel %vm276_vm0, %v5166_v26, 0.0  ;;  %v1540_v37 = vsel %vm276_vm0, %v5163_v36, -inf  ;;  %v1603_v18 = vsel %vm276_vm0, %v5166_v26, -inf }
 0x46c   : > { %7045 = vst [vmem:[#allocation25_spill] sm:$0xff] %v5166_v26  ;;  %v1668_v0 = vadd.f32 %v1667_v59, %v1666_v22  ;;  %v1731_v52 = vadd.f32 %v1730_v54, %v1729_v17  ;;  %v1543_v30 = vmax.f32 %v1539_v1, %v1542_v33  ;;  %v1606_v28 = vmax.f32 %v1602_v58, %v1605_v7  ;;  %v4172_v7 = vld [vmem:[%s4295_s24 + $0xa8] sm:$0xff] }
 0x46d   : > { %7054 = vst [vmem:[#allocation13_spill] sm:$0xff] %v5231_v24  ;;  %v1538_v10 = vsel %vm276_vm0, %v5153_v11, -inf  ;;  %v1601_v5 = vsel %vm276_vm0, %v5156_v9, -inf  ;;  %v1550_v41 = vsel %vm276_vm0, %v5231_v24, -inf }
 0x46e   : > { %v1364_v20 = vpop.permute.xlu1 %1363  ;;  %v1670_v4 = vadd.f32 %v1669_v57, %v1668_v0  ;;  %v1733_v32 = vadd.f32 %v1732_v60, %v1731_v52  ;;  %7055 = vst [vmem:[#allocation21_spill] sm:$0xff] %v5234_v48  ;;  %v1547_v59 = vmax.f32 %v1543_v30, %v1546_v6  ;;  %v1610_v54 = vmax.f32 %v1606_v28, %v1609_v50  ;;  %v4168_v52 = vld [vmem:[%s4295_s24 + $0x98] sm:$0xff] }
 0x46f   : > { %v5183_v31 = vmul.f32 %v4159_v53, %v1364_v20  ;;  %v5186_v2 = vmul.f32 %v4160_v23, %v1364_v20  ;;  %v1541_v20 = vmax.f32 %v1538_v10, %v1540_v37  ;;  %v1604_v45 = vmax.f32 %v1601_v5, %v1603_v18  ;;  %v4167_v23 = vld [vmem:[%s4295_s24 + $0x90] sm:$0xff] }
 0x470   : > { %v1384_v25 = vpop.permute.xlu0 %1383  ;;  %v5188_v14 = vpop.permute.xlu2 %1387  ;;  %v1613_v53 = vsel %vm276_vm0, %v5234_v48, -inf }
 0x471   : > { %7048 = vst [vmem:[#allocation28_spill] sm:$0xff] %v5183_v31  ;;  %v1671_v8 = vsel %vm276_vm0, %v5183_v31, 0.0  ;;  %v1734_v51 = vsel %vm276_vm0, %v5186_v2, 0.0  ;;  %v5253_v0 = vmul.f32 %v4167_v23, %v1384_v25  ;;  %v5256_v57 = vmul.f32 %v4168_v52, %v1384_v25  ;;  %v4175_v23 = vld [vmem:[%s4295_s24 + $0xb0] sm:$0xff] }
 0x472   : > { %7049 = vst [vmem:[#allocation8_spill] sm:$0xff] %v5186_v2  ;;  %v1672_v55 = vadd.f32 %v1671_v8, %v1670_v4  ;;  %v1735_v38 = vadd.f32 %v1734_v51, %v1733_v32  ;;  %v1677_v8 = vsel %vm276_vm0, %v5231_v24, 0.0  ;;  %v1740_v51 = vsel %vm276_vm0, %v5234_v48, 0.0  ;;  %v4170_v4 = vld [vmem:[%s4295_s24 + $0x88] sm:$0xff] }
 0x473   : > { %7056 = vst [vmem:[#allocation14_spill] sm:$0xff] %v5253_v0  ;;  %v1544_v1 = vsel %vm276_vm0, %v5183_v31, -inf  ;;  %v1607_v25 = vsel %vm276_vm0, %v5186_v2, -inf  ;;  %v1744_v37 = vsel %vm276_vm0, %v5256_v57, 0.0 }
 0x474   : > { %v1674_v47 = vadd.f32 %v1673_v42, %v1672_v55  ;;  %v1737_v16 = vadd.f32 %v1736_v13, %v1735_v38  ;;  %7057 = vst [vmem:[#allocation18_spill] sm:$0xff] %v5256_v57  ;;  %v1554_v42 = vsel %vm276_vm0, %v5253_v0, -inf  ;;  %v1617_v13 = vsel %vm276_vm0, %v5256_v57, -inf }
 0x475   : > { %v1608_v30 = vmax.f32 %v1604_v45, %v1607_v25 }
 0x476   : > { %v1372_v43 = vpop.permute.xlu1 %1371 }
 0x477   : > { %v5213_v34 = vmul.f32 %v4163_v12, %v1372_v43  ;;  %v5216_v27 = vmul.f32 %v4164_v49, %v1372_v43  ;;  %v4171_v43 = vld [vmem:[%s4295_s24 + $0xa0] sm:$0xff]  ;;  %v5280_v12 = vmul.f32 %v4172_v7, %v5188_v14 }
 0x478   : > { %v5226_v3 = vpop.permute.xlu0 %1395  ;;  %v5228_v56 = vpop.permute.xlu2 %1399  ;;  %v5276_v33 = vmul.f32 %v4171_v43, %v5188_v14  ;;  %v1614_v14 = vmax.f32 %v1610_v54, %v1613_v53 }
 0x479   : > { %7052 = vst [vmem:[#allocation9_spill] sm:$0xff] %v5213_v34  ;;  %v1675_v15 = vsel %vm276_vm0, %v5213_v34, 0.0  ;;  %v1738_v62 = vsel %vm276_vm0, %v5216_v27, 0.0 }
 0x47a   : > { %7053 = vst [vmem:[#allocation19_spill] sm:$0xff] %v5216_v27  ;;  %v1676_v22 = vadd.f32 %v1675_v15, %v1674_v47  ;;  %v1739_v17 = vadd.f32 %v1738_v62, %v1737_v16  ;;  %v1551_v15 = vmax.f32 %v1547_v59, %v1550_v41  ;;  %v1681_v62 = vsel %vm276_vm0, %v5253_v0, 0.0  ;;  %v4174_v41 = vld [vmem:[%s4295_s24 + $0xc8] sm:$0xff] }
 0x47b   : > { %7060 = vst [vmem:[#allocation17_spill] sm:$0xff] %v5276_v33  ;;  %v1545_v16 = vmax.f32 %v1541_v20, %v1544_v1  ;;  %v5298_v10 = vmax.f32 %v1614_v14, %v1617_v13  ;;  %v1683_v5 = vsel %vm276_vm0, %v5276_v33, 0.0  ;;  %v1611_v59 = vsel %vm276_vm0, %v5216_v27, -inf  ;;  %v4173_v20 = vld [vmem:[%s4295_s24 + $0xc0] sm:$0xff] }
 0x47c   : > { %v1678_v58 = vadd.f32 %v1677_v8, %v1676_v22  ;;  %v1741_v55 = vadd.f32 %v1740_v51, %v1739_v17  ;;  %7061 = vst [vmem:[#allocation11_spill] sm:$0xff] %v5280_v12  ;;  %v5296_v28 = vmax.f32 %v1551_v15, %v1554_v42  ;;  %v1746_v22 = vsel %vm276_vm0, %v5280_v12, 0.0  ;;  %v4177_v51 = vld [vmem:[%s4295_s24 + $0xd0] sm:$0xff] }
 0x47d   : > { %v1548_v17 = vsel %vm276_vm0, %v5213_v34, -inf  ;;  %v5310_v45 = vmul.f32 %v4173_v20, %v5226_v3  ;;  %v5314_v53 = vmul.f32 %v4174_v41, %v5226_v3  ;;  %v1612_v42 = vmax.f32 %v1608_v30, %v1611_v59  ;;  %v4179_v20 = vld [vmem:[%s4295_s24 + $0xf0] sm:$0xff] }
 0x47e   : > { %v1380_v60 = vpop.permute.xlu1 %1379 }
 0x47f   : > { %v5263_v44 = vmul.f32 %v4169_v29, %v1380_v60  ;;  %v5266_v32 = vmul.f32 %v4170_v4, %v1380_v60  ;;  %7062 = vst [vmem:[#allocation15_spill] sm:$0xff] %v5310_v45  ;;  %v4176_v60 = vld [vmem:[%s4295_s24 + $0xb8] sm:$0xff]  ;;  %v5324_v29 = vmul.f32 %v4177_v51, %v5228_v56  ;;  %v1687_v15 = vsel %vm276_vm0, %v5310_v45, 0.0 }
 0x480   : > { %v5272_v38 = vpop.permute.xlu0 %1407  ;;  %v5286_v50 = vpop.permute.xlu2 %1411  ;;  %7063 = vst [vmem:[#allocation29_spill] sm:$0xff] %v5314_v53  ;;  %v4178_v4 = vld [vmem:[%s4295_s24 + $0xd8] sm:$0xff]  ;;  %v1750_v14 = vsel %vm276_vm0, %v5314_v53, 0.0  ;;  %v1560_v30 = vsel %vm276_vm0, %v5310_v45, -inf }
 0x481   : > { %7058 = vst [vmem:[#allocation24_spill] sm:$0xff] %v5263_v44  ;;  %v1679_v49 = vsel %vm276_vm0, %v5263_v44, 0.0  ;;  %v1742_v6 = vsel %vm276_vm0, %v5266_v32, 0.0  ;;  %v5328_v1 = vmul.f32 %v4178_v4, %v5228_v56  ;;  %v1552_v3 = vsel %vm276_vm0, %v5263_v44, -inf  ;;  %v4181_v4 = vld [vmem:[%s4295_s24 + $0x100] sm:$0xff] }
 0x482   : > { %7059 = vst [vmem:[#allocation26_spill] sm:$0xff] %v5266_v32  ;;  %v1680_v39 = vadd.f32 %v1679_v49, %v1678_v58  ;;  %v1743_v61 = vadd.f32 %v1742_v6, %v1741_v55  ;;  %v1615_v43 = vsel %vm276_vm0, %v5266_v32, -inf  ;;  %v1549_v6 = vmax.f32 %v1545_v16, %v1548_v17  ;;  %v4199_v32 = vld [vmem:[%s4295_s24 + $0x190] sm:$0xff] }
 0x483   : > { %7066 = vst [vmem:[#allocation31_spill] sm:$0xff] %v5324_v29  ;;  %v1625_v17 = vsel %vm276_vm0, %v5328_v1, -inf  ;;  %v1689_v59 = vsel %vm276_vm0, %v5324_v29, 0.0  ;;  %v5362_v41 = vmul.f32 %v4179_v20, %v5272_v38 }
 0x484   : > { %v1682_v18 = vadd.f32 %v1681_v62, %v1680_v39  ;;  %v1745_v47 = vadd.f32 %v1744_v37, %v1743_v61  ;;  %7067 = vst [vmem:[#allocation32_spill] sm:$0xff] %v5328_v1  ;;  %v1556_v39 = vsel %vm276_vm0, %v5276_v33, -inf  ;;  %v1619_v61 = vsel %vm276_vm0, %v5280_v12, -inf }
 0x485   : > { %v1553_v37 = vmax.f32 %v1549_v6, %v1552_v3  ;;  %7068 = vst [vmem:[#allocation33_spill] sm:$0xff] %v5362_v41 }
 0x486   : > { %v1392_v54 = vpop.permute.xlu1 %1391  ;;  %v1684_v25 = vadd.f32 %v1683_v5, %v1682_v18  ;;  %v1747_v58 = vadd.f32 %v1746_v22, %v1745_v47  ;;  %v1616_v18 = vmax.f32 %v1612_v42, %v1615_v43  ;;  %v1623_v5 = vsel %vm276_vm0, %v5314_v53, -inf  ;;  %v4183_v43 = vld [vmem:[%s4295_s24 + $0xe0] sm:$0xff] }
 0x487   : > { %v5317_v52 = vmul.f32 %v4175_v23, %v1392_v54  ;;  %v5320_v8 = vmul.f32 %v4176_v60, %v1392_v54  ;;  %v1562_v22 = vsel %vm276_vm0, %v5324_v29, -inf  ;;  %v1752_v54 = vsel %vm276_vm0, %v5328_v1, 0.0  ;;  %v4180_v23 = vld [vmem:[%s4295_s24 + $0xf8] sm:$0xff]  ;;  %v4189_v1 = vld [vmem:[%s4295_s24 + $0x110] sm:$0xff] }
 0x488   : > { %v5330_v55 = vpop.permute.xlu0 %1419  ;;  %v1424_v62 = vpop.permute.xlu2 %1423  ;;  %v5366_v60 = vmul.f32 %v4180_v23, %v5272_v38  ;;  %v1557_v42 = vmax.f32 %v1553_v37, %v1556_v39  ;;  %v5392_v39 = vsel %vm276_vm0, %v5362_v41, -inf }
 0x489   : > { %7064 = vst [vmem:[#allocation16_spill] sm:$0xff] %v5317_v52  ;;  %v1685_v7 = vsel %vm276_vm0, %v5317_v52, 0.0  ;;  %v1748_v49 = vsel %vm276_vm0, %v5320_v8, 0.0 }
 0x48a   : > { %7065 = vst [vmem:[#allocation30_spill] sm:$0xff] %v5320_v8  ;;  %v1686_v56 = vadd.f32 %v1685_v7, %v1684_v25  ;;  %v1749_v13 = vadd.f32 %v1748_v49, %v1747_v58  ;;  %v5370_v25 = vmul.f32 %v4181_v4, %v5286_v50  ;;  %v4182_v58 = vld [vmem:[%s4295_s24 + $0x108] sm:$0xff] }
 0x48b   : > { %7069 = vst [vmem:[#allocation34_spill] sm:$0xff] %v5366_v60  ;;  %v5374_v3 = vmul.f32 %v4182_v58, %v5286_v50  ;;  %v4184_v49 = vld [vmem:[%s4295_s24 + $0xe8] sm:$0xff] }
 0x48c   : > { %v1688_v47 = vadd.f32 %v1687_v15, %v1686_v56  ;;  %v1751_v16 = vadd.f32 %v1750_v14, %v1749_v13  ;;  %7070 = vst [vmem:[#allocation35_spill] sm:$0xff] %v5370_v25  ;;  %v1620_v56 = vmax.f32 %v1616_v18, %v1619_v61  ;;  %v1558_v15 = vsel %vm276_vm0, %v5317_v52, -inf }
 0x48d   : > { %7071 = vst [vmem:[#allocation36_spill] sm:$0xff] %v5374_v3  ;;  %v1621_v14 = vsel %vm276_vm0, %v5320_v8, -inf  ;;  %v5396_v61 = vsel %vm276_vm0, %v5366_v60, -inf }
 0x48e   : > { %v1404_v51 = vpop.permute.xlu1 %1403  ;;  %v1690_v13 = vadd.f32 %v1689_v59, %v1688_v47  ;;  %v1753_v38 = vadd.f32 %v1752_v54, %v1751_v16  ;;  %v1693_v47 = vsel %vm276_vm0, %v5362_v41, 0.0  ;;  %v1756_v16 = vsel %vm276_vm0, %v5366_v60, 0.0 }
 0x48f   : > { %v5377_v7 = vmul.f32 %v4183_v43, %v1404_v51  ;;  %v5380_v6 = vmul.f32 %v4184_v49, %v1404_v51  ;;  %v1568_v59 = vsel %vm276_vm0, %v5370_v25, -inf  ;;  %v1631_v54 = vsel %vm276_vm0, %v5374_v3, -inf }
 0x490   : > { %v1432_v23 = vpop.permute.xlu0 %1431  ;;  %v1559_v51 = vmax.f32 %v5296_v28, %v1558_v15  ;;  %v1622_v4 = vmax.f32 %v5298_v10, %v1621_v14  ;;  %v1695_v49 = vsel %vm276_vm0, %v5370_v25, 0.0  ;;  %v1436_v28 = vpop.permute.xlu2 %1435  ;;  %v4187_v10 = vld [vmem:[%s4295_s24 + $0x130] sm:$0xff]  ;;  %v4188_v14 = vld [vmem:[%s4295_s24 + $0x138] sm:$0xff] }
 0x491   : > { %7072 = vst [vmem:[#allocation37_spill] sm:$0xff] %v5377_v7  ;;  %v1691_v50 = vsel %vm276_vm0, %v5377_v7, 0.0  ;;  %v1754_v20 = vsel %vm276_vm0, %v5380_v6, 0.0  ;;  %v5421_v15 = vmul.f32 %v4187_v10, %v1424_v62 }
 0x492   : > { %7073 = vst [vmem:[#allocation38_spill] sm:$0xff] %v5380_v6  ;;  %v1692_v37 = vadd.f32 %v1691_v50, %v1690_v13  ;;  %v1755_v18 = vadd.f32 %v1754_v20, %v1753_v38  ;;  %v1758_v13 = vsel %vm276_vm0, %v5374_v3, 0.0  ;;  %v4185_v38 = vld [vmem:[%s4295_s24 + $0x120] sm:$0xff]  ;;  %v4186_v20 = vld [vmem:[%s4295_s24 + $0x128] sm:$0xff]  ;;  %v1564_v3 = vsel %vm276_vm0, %v5377_v7, -inf }
 0x493   : > { %v5414_v50 = vmul.f32 %v4185_v38, %v5330_v55  ;;  %v5418_v60 = vmul.f32 %v4186_v20, %v5330_v55  ;;  %7076 = vst [vmem:[#allocation41_spill] sm:$0xff] %v5421_v15  ;;  %v1627_v38 = vsel %vm276_vm0, %v5380_v6, -inf  ;;  %v4190_v55 = vld [vmem:[%s4295_s24 + $0x118] sm:$0xff]  ;;  %v1563_v10 = vmax.f32 %v1559_v51, %v1562_v22  ;;  %v4193_v6 = vld [vmem:[%s4295_s24 + $0x160] sm:$0xff] }
 0x494   : > { %v1694_v58 = vadd.f32 %v1693_v47, %v1692_v37  ;;  %v1757_v43 = vadd.f32 %v1756_v16, %v1755_v18  ;;  %v5424_v37 = vmul.f32 %v4188_v14, %v1424_v62  ;;  %v1561_v18 = vmax.f32 %v1557_v42, %v1560_v30 }
 0x495   : > { %7074 = vst [vmem:[#allocation39_spill] sm:$0xff] %v5414_v50  ;;  %v1624_v47 = vmax.f32 %v1620_v56, %v1623_v5  ;;  %v1626_v8 = vmax.f32 %v1622_v4, %v1625_v17  ;;  %v5438_v30 = vsel %vm276_vm0, %v5414_v50, -inf  ;;  %v5442_v5 = vsel %vm276_vm0, %v5418_v60, -inf }
 0x496   : > { %7075 = vst [vmem:[#allocation40_spill] sm:$0xff] %v5418_v60  ;;  %v1416_v16 = vpop.permute.xlu1 %1415  ;;  %v1696_v62 = vadd.f32 %v1695_v49, %v1694_v58  ;;  %v1759_v14 = vadd.f32 %v1758_v13, %v1757_v43  ;;  %v1565_v22 = vmax.f32 %v1561_v18, %v1564_v3  ;;  %v1699_v4 = vsel %vm276_vm0, %v5414_v50, 0.0  ;;  %v4191_v13 = vld [vmem:[%s4295_s24 + $0x150] sm:$0xff] }
 0x497   : > { %7077 = vst [vmem:[#allocation42_spill] sm:$0xff] %v5424_v37  ;;  %v5431_v53 = vmul.f32 %v4189_v1, %v1416_v16  ;;  %v5434_v20 = vmul.f32 %v4190_v55, %v1416_v16  ;;  %v1628_v17 = vmax.f32 %v1624_v47, %v1627_v38  ;;  %v1762_v58 = vsel %vm276_vm0, %v5418_v60, 0.0  ;;  %v4192_v47 = vld [vmem:[%s4295_s24 + $0x158] sm:$0xff] }
 0x498   : > { %v5454_v43 = vsel %vm276_vm0, %v5421_v15, -inf  ;;  %v5458_v49 = vsel %vm276_vm0, %v5424_v37, -inf  ;;  %v1444_v3 = vpop.permute.xlu0 %1443  ;;  %v5461_v18 = vmul.f32 %v4191_v13, %v1432_v23  ;;  %v5464_v16 = vmul.f32 %v4192_v47, %v1432_v23  ;;  %v4194_v23 = vld [vmem:[%s4295_s24 + $0x168] sm:$0xff]  ;;  %v1448_v47 = vpop.permute.xlu2 %1447 }
 0x499   : > { %7078 = vst [vmem:[#allocation43_spill] sm:$0xff] %v5431_v53  ;;  %v1697_v1 = vsel %vm276_vm0, %v5431_v53, 0.0  ;;  %v1760_v42 = vsel %vm276_vm0, %v5434_v20, 0.0  ;;  %v1569_v60 = vmax.f32 %v1565_v22, %v1568_v59  ;;  %v1632_v13 = vmax.f32 %v1628_v17, %v1631_v54 }
 0x49a   : > { %7079 = vst [vmem:[#allocation44_spill] sm:$0xff] %v5434_v20  ;;  %v1698_v56 = vadd.f32 %v1697_v1, %v1696_v62  ;;  %v1761_v51 = vadd.f32 %v1760_v42, %v1759_v14  ;;  %v1701_v62 = vsel %vm276_vm0, %v5421_v15, 0.0  ;;  %v1764_v14 = vsel %vm276_vm0, %v5424_v37, 0.0  ;;  %v4195_v37 = vld [vmem:[%s4295_s24 + $0x140] sm:$0xff] }
 0x49b   : > { %7080 = vst [vmem:[#allocation45_spill] sm:$0xff] %v5461_v18  ;;  %v1567_v1 = vmax.f32 %v1563_v10, %v5392_v39  ;;  %v1630_v42 = vmax.f32 %v1626_v8, %v5396_v61  ;;  %v5473_v12 = vmul.f32 %v4193_v6, %v1436_v28  ;;  %v4196_v8 = vld [vmem:[%s4295_s24 + $0x148] sm:$0xff]  ;;  %v5490_v6 = vsel %vm276_vm0, %v5461_v18, -inf }
 0x49c   : > { %7081 = vst [vmem:[#allocation46_spill] sm:$0xff] %v5464_v16  ;;  %v1700_v38 = vadd.f32 %v1699_v4, %v1698_v56  ;;  %v1763_v55 = vadd.f32 %v1762_v58, %v1761_v51  ;;  %v5476_v56 = vmul.f32 %v4194_v23, %v1436_v28  ;;  %v1570_v4 = vsel %vm276_vm0, %v5431_v53, -inf }
 0x49d   : > { %7082 = vst [vmem:[#allocation47_spill] sm:$0xff] %v5473_v12  ;;  %v1633_v58 = vsel %vm276_vm0, %v5434_v20, -inf  ;;  %v5494_v59 = vsel %vm276_vm0, %v5464_v16, -inf  ;;  %v1705_v10 = vsel %vm276_vm0, %v5461_v18, 0.0  ;;  %v1571_v23 = vmax.f32 %v1567_v1, %v1570_v4  ;;  %v4198_v1 = vld [vmem:[%s4295_s24 + $0x188] sm:$0xff] }
 0x49e   : > { %7083 = vst [vmem:[#allocation48_spill] sm:$0xff] %v5476_v56  ;;  %v1428_v51 = vpop.permute.xlu1 %1427  ;;  %v1702_v54 = vadd.f32 %v1701_v62, %v1700_v38  ;;  %v1765_v28 = vadd.f32 %v1764_v14, %v1763_v55  ;;  %v5506_v38 = vsel %vm276_vm0, %v5473_v12, -inf  ;;  %v5510_v55 = vsel %vm276_vm0, %v5476_v56, -inf  ;;  %v4197_v14 = vld [vmem:[%s4295_s24 + $0x180] sm:$0xff] }
 0x49f   : > { %v5483_v39 = vmul.f32 %v4195_v37, %v1428_v51  ;;  %v5486_v61 = vmul.f32 %v4196_v8, %v1428_v51  ;;  %v1768_v37 = vsel %vm276_vm0, %v5464_v16, 0.0  ;;  %v1634_v51 = vmax.f32 %v1630_v42, %v1633_v58 }
 0x4a0   : > { %v1707_v62 = vsel %vm276_vm0, %v5473_v12, 0.0  ;;  %v5515_v16 = vmul.f32 %v4197_v14, %v1444_v3  ;;  %v5518_v42 = vmul.f32 %v4198_v1, %v1444_v3  ;;  %v1456_v57 = vpop.permute.xlu0 %1455  ;;  %v1575_v3 = vmax.f32 %v1571_v23, %v5454_v43 }
 0x4a1   : > { %7084 = vst [vmem:[#allocation49_spill] sm:$0xff] %v5483_v39  ;;  %v1703_v22 = vsel %vm276_vm0, %v5483_v39, 0.0  ;;  %v1766_v17 = vsel %vm276_vm0, %v5486_v61, 0.0  ;;  %v1576_v4 = vsel %vm276_vm0, %v5483_v39, -inf  ;;  %v1639_v14 = vsel %vm276_vm0, %v5486_v61, -inf }
 0x4a2   : > { %7085 = vst [vmem:[#allocation50_spill] sm:$0xff] %v5486_v61  ;;  %v1704_v8 = vadd.f32 %v1703_v22, %v1702_v54  ;;  %v1767_v20 = vadd.f32 %v1766_v17, %v1765_v28  ;;  %v1770_v28 = vsel %vm276_vm0, %v5476_v56, 0.0  ;;  %v1573_v22 = vmax.f32 %v1569_v60, %v5438_v30  ;;  %v4202_v56 = vld [vmem:[%s4295_s24 + $0x178] sm:$0xff] }
 0x4a3   : > { %7086 = vst [vmem:[#allocation51_spill] sm:$0xff] %v5515_v16  ;;  %v1636_v17 = vmax.f32 %v1632_v13, %v5442_v5  ;;  %v1638_v1 = vmax.f32 %v1634_v51, %v5458_v49  ;;  %v1584_v60 = vsel %vm276_vm0, %v5515_v16, -inf  ;;  %v4201_v5 = vld [vmem:[%s4295_s24 + $0x170] sm:$0xff]  ;;  %v1711_v51 = vsel %vm276_vm0, %v5515_v16, 0.0  ;;  %v4204_v61 = vld [vmem:[%s4295_s24 + $0x1b8] sm:$0xff] }
 0x4a4   : > { %7087 = vst [vmem:[#allocation52_spill] sm:$0xff] %v5518_v42  ;;  %v1706_v58 = vadd.f32 %v1705_v10, %v1704_v8  ;;  %v1769_v54 = vadd.f32 %v1768_v37, %v1767_v20  ;;  %v5531_v10 = vmul.f32 %v4199_v32, %v1448_v47  ;;  %v4200_v20 = vld [vmem:[%s4295_s24 + $0x198] sm:$0xff]  ;;  %v1577_v30 = vmax.f32 %v1573_v22, %v1576_v4  ;;  %v1460_v4 = vpop.permute.xlu2 %1459 }
 0x4a5   : > { %v5534_v37 = vmul.f32 %v4200_v20, %v1448_v47  ;;  %v1647_v32 = vsel %vm276_vm0, %v5518_v42, -inf  ;;  %v1640_v49 = vmax.f32 %v1636_v17, %v1639_v14  ;;  %v1774_v20 = vsel %vm276_vm0, %v5518_v42, 0.0 }
 0x4a6   : > { %7088 = vst [vmem:[#allocation53_spill] sm:$0xff] %v5531_v10  ;;  %v1440_v8 = vpop.permute.xlu1 %1439  ;;  %v1708_v23 = vadd.f32 %v1707_v62, %v1706_v58  ;;  %v1771_v47 = vadd.f32 %v1770_v28, %v1769_v54  ;;  %v5558_v17 = vmul.f32 %v4204_v61, %v1456_v57  ;;  %v1586_v54 = vsel %vm276_vm0, %v5531_v10, -inf }
 0x4a7   : > { %7089 = vst [vmem:[#allocation54_spill] sm:$0xff] %v5534_v37  ;;  %v5539_v13 = vmul.f32 %v4201_v5, %v1440_v8  ;;  %v5542_v43 = vmul.f32 %v4202_v56, %v1440_v8  ;;  %v4203_v8 = vld [vmem:[%s4295_s24 + $0x1b0] sm:$0xff]  ;;  %v1649_v28 = vsel %vm276_vm0, %v5534_v37, -inf  ;;  %v1713_v14 = vsel %vm276_vm0, %v5531_v10, 0.0 }
 0x4a8   : > { %v5555_v5 = vmul.f32 %v4203_v8, %v1456_v57  ;;  %7093 = vst [vmem:[#allocation58_spill] sm:$0xff] %v5558_v17  ;;  %v1581_v42 = vmax.f32 %v1577_v30, %v5506_v38  ;;  %v1644_v8 = vmax.f32 %v1640_v49, %v5510_v55  ;;  %v5582_v55 = vsel %vm276_vm0, %v5558_v17, -inf  ;;  %v4205_v30 = vld [vmem:[%s4295_s24 + $0x1c0] sm:$0xff] }
 0x4a9   : > { %7090 = vst [vmem:[#allocation55_spill] sm:$0xff] %v5539_v13  ;;  %v1709_v22 = vsel %vm276_vm0, %v5539_v13, 0.0  ;;  %v1772_v56 = vsel %vm276_vm0, %v5542_v43, 0.0  ;;  %v1582_v57 = vsel %vm276_vm0, %v5539_v13, -inf  ;;  %v1645_v48 = vsel %vm276_vm0, %v5542_v43, -inf }
 0x4aa   : > { %7091 = vst [vmem:[#allocation56_spill] sm:$0xff] %v5542_v43  ;;  %v1710_v62 = vadd.f32 %v1709_v22, %v1708_v23  ;;  %v1773_v58 = vadd.f32 %v1772_v56, %v1771_v47  ;;  %v1776_v47 = vsel %vm276_vm0, %v5534_v37, 0.0  ;;  %v1579_v22 = vmax.f32 %v1575_v3, %v5490_v6  ;;  %v1468_v3 = vpop.permute.xlu0 %1467 }
 0x4ab   : > { %7092 = vst [vmem:[#allocation57_spill] sm:$0xff] %v5555_v5  ;;  %v1642_v56 = vmax.f32 %v1638_v1, %v5494_v59  ;;  %v5578_v38 = vsel %vm276_vm0, %v5555_v5, -inf  ;;  %v5585_v49 = vmul.f32 %v4205_v30, %v1460_v4  ;;  %v4207_v1 = vld [vmem:[%s4295_s24 + $0x1a0] sm:$0xff]  ;;  %v1585_v43 = vmax.f32 %v1581_v42, %v1584_v60  ;;  %v4210_v42 = vld [vmem:[%s4295_s24 + $0x1e8] sm:$0xff] }
 0x4ac   : > { %v1712_v61 = vadd.f32 %v1711_v51, %v1710_v62  ;;  %v1775_v23 = vadd.f32 %v1774_v20, %v1773_v58  ;;  %v4206_v51 = vld [vmem:[%s4295_s24 + $0x1c8] sm:$0xff]  ;;  %v1583_v59 = vmax.f32 %v1579_v22, %v1582_v57  ;;  %v1648_v21 = vmax.f32 %v1644_v8, %v1647_v32 }
 0x4ad   : > { %7094 = vst [vmem:[#allocation59_spill] sm:$0xff] %v5585_v49  ;;  %v5588_v20 = vmul.f32 %v4206_v51, %v1460_v4  ;;  %v4208_v58 = vld [vmem:[%s4295_s24 + $0x1a8] sm:$0xff]  ;;  %v1646_v27 = vmax.f32 %v1642_v56, %v1645_v48  ;;  %v5608_v48 = vmul.f32 %v4210_v42, %v1468_v3  ;;  %v1780_v8 = vsel %vm276_vm0, %v5558_v17, 0.0  ;;  %v4213_v42 = vld [vmem:[%s4295_s24 + $0x1d0] sm:$0xff] }
 0x4ae   : > { %v1452_v6 = vpop.permute.xlu1 %1451  ;;  %v1714_v2 = vadd.f32 %v1713_v14, %v1712_v61  ;;  %v1777_v30 = vadd.f32 %v1776_v47, %v1775_v23  ;;  %v1717_v14 = vsel %vm276_vm0, %v5555_v5, 0.0  ;;  %v1587_v61 = vmax.f32 %v1583_v59, %v1586_v54  ;;  %v1472_v23 = vpop.permute.xlu2 %1471  ;;  %v4212_v59 = vld [vmem:[%s4295_s24 + $0x1f8] sm:$0xff] }
 0x4af   : > { %7095 = vst [vmem:[#allocation60_spill] sm:$0xff] %v5588_v20  ;;  %v5591_v62 = vmul.f32 %v4207_v1, %v1452_v6  ;;  %v5594_v37 = vmul.f32 %v4208_v58, %v1452_v6  ;;  %v4209_v1 = vld [vmem:[%s4295_s24 + $0x1e0] sm:$0xff]  ;;  %v1650_v56 = vmax.f32 %v1646_v27, %v1649_v28  ;;  %v1782_v54 = vsel %vm276_vm0, %v5588_v20, 0.0 }
 0x4b0   : > { %v5605_v6 = vmul.f32 %v4209_v1, %v1468_v3  ;;  %7099 = vst [vmem:[#allocation64_spill] sm:$0xff] %v5608_v48  ;;  %v1659_v27 = vsel %vm276_vm0, %v5608_v48, -inf }
 0x4b1   : > { %7096 = vst [vmem:[#allocation61_spill] sm:$0xff] %v5591_v62  ;;  %v1588_v4 = vsel %vm276_vm0, %v5591_v62, -inf  ;;  %v1651_v51 = vsel %vm276_vm0, %v5594_v37, -inf  ;;  %v1715_v57 = vsel %vm276_vm0, %v5591_v62, 0.0  ;;  %v1778_v22 = vsel %vm276_vm0, %v5594_v37, 0.0 }
 0x4b2   : > { %7097 = vst [vmem:[#allocation62_spill] sm:$0xff] %v5594_v37  ;;  %v1716_v60 = vadd.f32 %v1715_v57, %v1714_v2  ;;  %v1779_v32 = vadd.f32 %v1778_v22, %v1777_v30  ;;  %v1652_v47 = vmax.f32 %v1648_v21, %v1651_v51  ;;  %v1589_v58 = vmax.f32 %v1585_v43, %v1588_v4  ;;  %v4211_v43 = vld [vmem:[%s4295_s24 + $0x1f0] sm:$0xff] }
 0x4b3   : > { %7098 = vst [vmem:[#allocation63_spill] sm:$0xff] %v5605_v6  ;;  %v1592_v2 = vsel %vm276_vm0, %v5585_v49, -inf  ;;  %v1655_v30 = vsel %vm276_vm0, %v5588_v20, -inf  ;;  %v1719_v57 = vsel %vm276_vm0, %v5585_v49, 0.0  ;;  %v1596_v21 = vsel %vm276_vm0, %v5605_v6, -inf }
 0x4b4   : > { %v1718_v1 = vadd.f32 %v1717_v14, %v1716_v60  ;;  %v1781_v3 = vadd.f32 %v1780_v8, %v1779_v32  ;;  %v5627_v28 = vmul.f32 %v4211_v43, %v1472_v23  ;;  %v5630_v4 = vmul.f32 %v4212_v59, %v1472_v23  ;;  %v4214_v32 = vld [vmem:[%s4295_s24 + $0x1d8] sm:$0xff]  ;;  %s4248_s24 = smov 124  }
 0x4b5   : > { %v1656_v22 = vmax.f32 %v1652_v47, %v1655_v30  ;;  %v1591_v8 = vmax.f32 %v1587_v61, %v5578_v38  ;;  %v1593_v20 = vmax.f32 %v1589_v58, %v1592_v2  ;;  %v1654_v17 = vmax.f32 %v1650_v56, %v5582_v55 }
 0x4b6   : > { %7100 = vst [vmem:[#allocation65_spill] sm:$0xff] %v5627_v28  ;;  %v1464_v51 = vpop.permute.xlu1 %1463  ;;  %v1720_v37 = vadd.f32 %v1719_v57, %v1718_v1  ;;  %v1783_v46 = vadd.f32 %v1782_v54, %v1781_v3  ;;  %v1723_v55 = vsel %vm276_vm0, %v5605_v6, 0.0  ;;  %v1598_v56 = vsel %vm276_vm0, %v5627_v28, -inf }
 0x4b7   : > { %7101 = vst [vmem:[#allocation66_spill] sm:$0xff] %v5630_v4  ;;  %v5633_v60 = vmul.f32 %v4213_v42, %v1464_v51  ;;  %v5636_v14 = vmul.f32 %v4214_v32, %v1464_v51  ;;  %v1661_v58 = vsel %vm276_vm0, %v5630_v4, -inf  ;;  %v1660_v1 = vmax.f32 %v1656_v22, %v1659_v27 }
 0x4b8   : > { %v1597_v2 = vmax.f32 %v1593_v20, %v1596_v21  ;;  %v1786_v42 = vsel %vm276_vm0, %v5608_v48, 0.0  ;;  %v1788_v27 = vsel %vm276_vm0, %v5630_v4, 0.0 }
 0x4b9   : > { %7102 = vst [vmem:[#allocation67_spill] sm:$0xff] %v5633_v60  ;;  %v1594_v43 = vsel %vm276_vm0, %v5633_v60, -inf  ;;  %v1657_v23 = vsel %vm276_vm0, %v5636_v14, -inf  ;;  %v1721_v47 = vsel %vm276_vm0, %v5633_v60, 0.0  ;;  %v1784_v30 = vsel %vm276_vm0, %v5636_v14, 0.0 }
 0x4ba   : > { %7103 = vst [vmem:[#allocation68_spill] sm:$0xff] %v5636_v14  ;;  %v1595_v59 = vmax.f32 %v1591_v8, %v1594_v43  ;;  %v1658_v51 = vmax.f32 %v1654_v17, %v1657_v23  ;;  %v1722_v38 = vadd.f32 %v1721_v47, %v1720_v37  ;;  %v1785_v61 = vadd.f32 %v1784_v30, %v1783_v46 }
 0x4bb   : > { %v1725_v46 = vsel %vm276_vm0, %v5627_v28, 0.0 }
 0x4bc   : > { %v1662_v3 = vmax.f32 %v1658_v51, %v1661_v58  ;;  %v1599_v57 = vmax.f32 %v1595_v59, %v1598_v56  ;;  %v1724_v54 = vadd.f32 %v1723_v55, %v1722_v38  ;;  %v1787_v8 = vadd.f32 %v1786_v42, %v1785_v61 }
 0x4be   : > { %v1663_v37 = vmax.f32 %v1660_v1, %v1662_v3  ;;  %v1600_v17 = vmax.f32 %v1597_v2, %v1599_v57  ;;  %v1726_v32 = vadd.f32 %v1725_v46, %v1724_v54  ;;  %v1789_v20 = vadd.f32 %v1788_v27, %v1787_v8 }
 0x4bf   : > { %v1853_v1 = vstv %s3995_s10  ;;  %v1881_v3 = vstv %s5664_s11  ;;  %v1909_v27 = vstv %s3999_s12  ;;  %s4033_s10 = sld [smem:[#allocation2 + $0x14]] }
 0x4c0   : > { %1796 = vrot.lane.b32.xlu0 %v1663_v37, %s4244_s9  ;;  %1794 = vrot.lane.b32.xlu1 %v1600_v17, %s4244_s9  ;;  %v1790_v43 = vmul.f32 0.03125, %v1726_v32  ;;  %v1791_v21 = vmul.f32 0.03125, %v1789_v20  ;;  %s4037_s11 = sld [smem:[#allocation2 + $0x16]] }
 0x4c1   : > { %s4039_s12 = sld [smem:[#allocation2 + $0x17]] }
 0x4c2   : > { %1819 = vrot.lane.b32.xlu2 %v1790_v43, %s4244_s9 }
 0x4c8   : > { %1821 = vrot.lane.b32.xlu1 %v1791_v21, %s4244_s9  ;;  %s4031_s9 = sld [smem:[#allocation2 + $0x13]] }
 0x51c   : > { %v1820_v22 = vpop.permute.xlu2 %1819 }
 0x51d   : > { %v1825_v23 = vsel %vm1800_vm12, 0.0, %v1820_v22 }
 0x51e   : > { %v5662_v47 = vsel %vm1803_vm13, %v1825_v23, 0.0 }
 0x51f   : > { %v6951_v8 = vrot.slane %v5662_v47, 5 }
 0x532   : > { %v1797_v30 = vpop.permute.xlu0 %1796  ;;  %v1795_v59 = vpop.permute.xlu1 %1794 }
 0x533   : > { %v1802_v51 = vsel %vm1800_vm12, 0.0, %v1797_v30  ;;  %v1801_v38 = vsel %vm1800_vm12, 0.0, %v1795_v59  ;;  %v1937_v30 = vstv %s4001_s17  ;;  %v1965_v59 = vstv %s4003_s18  ;;  %s4041_s17 = sld [smem:[#allocation2 + $0x18]] }
 0x534   : > { %v1805_v61 = vsel %vm1803_vm13, %v1802_v51, 0.0  ;;  %v1804_v55 = vsel %vm1803_vm13, %v1801_v38, 0.0  ;;  %s4043_s18 = sld [smem:[#allocation2 + $0x19]] }
 0x535   : > { %v1810_v56 = vrot.slane %v1805_v61, 5  ;;  %v1809_v58 = vrot.slane %v1804_v55, 5  ;;  %v1993_v55 = vstv %s4005_s20  ;;  %s4045_s20 = sld [smem:[#allocation2 + $0x1a]] }
 0x537   : > { %v5672_v2 = vsel %vm1808_vm14, %v1809_v58, %v1810_v56  ;;  %v5675_v57 = vsel %vm1808_vm14, 0.0, %v1809_v58  ;;  %v5709_v58 = vsel %vm1808_vm14, %v1810_v56, 0.0 }
 0x538   : > { %v1854_v54 = vmul.f32 %v1853_v1, %v5675_v57  ;;  %v1883_v42 = vmul.f32 %v1881_v3, %v5672_v2  ;;  %v1855_v46 = vmul.f32 %v1853_v1, %v5672_v2  ;;  %v1911_v21 = vmul.f32 %v1909_v27, %v5672_v2 }
 0x539   : > { %v1910_v22 = vmul.f32 %v1909_v27, %v5675_v57  ;;  %v1882_v23 = vmul.f32 %v1881_v3, %v5675_v57  ;;  %v1938_v51 = vmul.f32 %v1937_v30, %v5675_v57  ;;  %v1967_v38 = vmul.f32 %v1965_v59, %v5672_v2 }
 0x53a   : > { %1858 = vrot.lane.b32.xlu0 %v1854_v54, %s4245_s13  ;;  %1888 = vrot.lane.b32.xlu1 %v1883_v42, %s4246_s14  ;;  %v1822_v37 = vpop.permute.xlu1 %1821  ;;  %v1939_v61 = vmul.f32 %v1937_v30, %v5672_v2  ;;  %v2056_v1 = vstv %s4009_s22  ;;  %v2098_v3 = vstv %s4011_s23  ;;  %v1995_v54 = vmul.f32 %v1993_v55, %v5672_v2  ;;  %s4047_s22 = sld [smem:[#allocation2 + $0x1b]] }
 0x53b   : > { %1860 = vrot.lane.b32.xlu2 %v1855_v46, %s4245_s13  ;;  %v1826_v17 = vsel %vm1800_vm12, 0.0, %v1822_v37  ;;  %v1994_v42 = vmul.f32 %v1993_v55, %v5675_v57  ;;  %v1966_v46 = vmul.f32 %v1965_v59, %v5675_v57  ;;  %v2057_v37 = vmul.f32 %v2056_v1, %v5675_v57  ;;  %s4051_s23 = sld [smem:[#allocation2 + $0x1d]] }
 0x53c   : > { %v5685_v32 = vsel %vm1803_vm13, %v1826_v17, 0.0  ;;  %v2058_v17 = vmul.f32 %v2056_v1, %v5672_v2  ;;  %v2100_v27 = vmul.f32 %v2098_v3, %v5672_v2  ;;  %v2059_v56 = vmul.f32 %v2056_v1, %v5709_v58 }
 0x53d   : > { %v6950_v43 = vrot.slane %v5685_v32, 5  ;;  %v7114_v33 = vrot.slane %v5685_v32, 5 }
 0x53e   : > { %v2064_v30 = vrot.slane %v2058_v17, 1  ;;  %v2106_v59 = vrot.slane %v2100_v27, 1 }
 0x53f   : > { %v5694_v20 = vsel %vm1808_vm14, %v6951_v8, %v6950_v43  ;;  %v2798_v8 = vstv %s4045_s20  ;;  %s4002_s20 = sld [smem:[#allocation2 + $0x35]] }
 0x542   : > { %1916 = vrot.lane.b32.xlu0 %v1911_v21, %s4247_s19  ;;  %1914 = vrot.lane.b32.xlu1 %v1910_v22, %s4247_s19  ;;  %v2101_v21 = vmul.f32 %v2098_v3, %v5709_v58  ;;  %v2140_v22 = vstv %s4013_s26  ;;  %s4053_s26 = sld [smem:[#allocation2 + $0x1e]] }
 0x543   : > { %1886 = vrot.lane.b32.xlu2 %v1882_v23, %s4246_s14  ;;  %v2063_v23 = vrot.slane %v2057_v37, 1  ;;  %v2141_v1 = vmul.f32 %v2140_v22, %v5675_v57  ;;  %v2099_v37 = vmul.f32 %v2098_v3, %v5675_v57 }
 0x545   : > { %v2065_v55 = vsel %vm2028_vm15, %v2063_v23, %v2064_v30  ;;  %v2105_v23 = vrot.slane %v2099_v37, 1 }
 0x548   : > { %v2959_v48 = vstv %s4053_s26  ;;  %s4010_s26 = sld [smem:[#allocation2 + $0x39]] }
 0x54a   : > { %1942 = vrot.lane.b32.xlu0 %v1938_v51, %s4248_s24  ;;  %1972 = vrot.lane.b32.xlu1 %v1967_v38, %s4249_s25  ;;  %v2108_v51 = vrot.slane %v2101_v21, 1  ;;  %v2066_v38 = vrot.slane %v2059_v56, 1  ;;  %v2147_v21 = vrot.slane %v2141_v1, 1  ;;  %v2182_v56 = vstv %s4015_s28  ;;  %s4055_s28 = sld [smem:[#allocation2 + $0x1f]] }
 0x54b   : > { %1944 = vrot.lane.b32.xlu2 %v1939_v61, %s4248_s24  ;;  %v2142_v61 = vmul.f32 %v2140_v22, %v5672_v2  ;;  %v2183_v43 = vmul.f32 %v2182_v56, %v5675_v57 }
 0x54d   : > { %v2148_v17 = vrot.slane %v2142_v61, 1  ;;  %v2185_v61 = vmul.f32 %v2182_v56, %v5709_v58  ;;  %v2189_v1 = vrot.slane %v2183_v43, 1 }
 0x54e   : > { %v2076_v24 = vstv %s4010_s26  ;;  %s6192_s26 = sld [smem:[#allocation2 + $0x31]] }
 0x552   : > { %2000 = vrot.lane.b32.xlu0 %v1995_v54, %s4250_s27  ;;  %1998 = vrot.lane.b32.xlu1 %v1994_v42, %s4250_s27  ;;  %v2109_v54 = vsel %vm2028_vm15, %v2106_v59, %v2108_v51  ;;  %v2143_v42 = vmul.f32 %v2140_v22, %v5709_v58  ;;  %v2224_v51 = vstv %s4017_s29  ;;  %v2184_v22 = vmul.f32 %v2182_v56, %v5672_v2  ;;  %s4057_s29 = sld [smem:[#allocation2 + $0x20]] }
 0x553   : > { %1970 = vrot.lane.b32.xlu2 %v1966_v46, %s4249_s25  ;;  %v2067_v46 = vsel %vm2028_vm15, %v2064_v30, %v2066_v38  ;;  %v2226_v30 = vmul.f32 %v2224_v51, %v5672_v2  ;;  %v2227_v3 = vmul.f32 %v2224_v51, %v5709_v58  ;;  %v2107_v38 = vsel %vm2028_vm15, %v2105_v23, %v2106_v59 }
 0x554   : > { %v2150_v27 = vrot.slane %v2143_v42, 1  ;;  %v2266_v42 = vstv %s4019_s30  ;;  %v2225_v23 = vmul.f32 %v2224_v51, %v5675_v57  ;;  %s4059_s30 = sld [smem:[#allocation2 + $0x21]] }
 0x555   : > { %v2232_v37 = vrot.slane %v2226_v30, 1  ;;  %v2269_v59 = vmul.f32 %v2266_v42, %v5709_v58  ;;  %v2267_v56 = vmul.f32 %v2266_v42, %v5675_v57 }
 0x557   : > { %v2276_v30 = vrot.slane %v2269_v59, 1 }
 0x55a   : > { %2068 = vrot.lane.b32.xlu0 %v2065_v55, %s4245_s13  ;;  %2112 = vrot.lane.b32.xlu1 %v2109_v54, %s4246_s14  ;;  %v2151_v55 = vsel %vm2028_vm15, %v2148_v17, %v2150_v27  ;;  %v2149_v54 = vsel %vm2028_vm15, %v2147_v21, %v2148_v17  ;;  %v2234_v27 = vrot.slane %v2227_v3, 1  ;;  %v2192_v17 = vrot.slane %v2185_v61, 1 }
 0x55b   : > { %2070 = vrot.lane.b32.xlu2 %v2067_v46, %s4245_s13  ;;  %v2190_v46 = vrot.slane %v2184_v22, 1  ;;  %v2268_v21 = vmul.f32 %v2266_v42, %v5672_v2  ;;  %v2273_v3 = vrot.slane %v2267_v56, 1  ;;  %v2231_v61 = vrot.slane %v2225_v23, 1 }
 0x55c   : > { %v3085_v6 = vstv %s4059_s30  ;;  %s4016_s30 = sld [smem:[#allocation2 + $0x3c]] }
 0x55d   : > { %v2193_v43 = vsel %vm2028_vm15, %v2190_v46, %v2192_v17  ;;  %v2274_v22 = vrot.slane %v2268_v21, 1  ;;  %v2233_v17 = vsel %vm2028_vm15, %v2231_v61, %v2232_v37  ;;  %v3088_v60 = vmul.f32 %v3085_v6, %v5709_v58 }
 0x55f   : > { %v3095_v5 = vrot.slane %v3088_v60, 4 }
 0x562   : > { %2154 = vrot.lane.b32.xlu0 %v2151_v55, %s4247_s19  ;;  %2152 = vrot.lane.b32.xlu1 %v2149_v54, %s4247_s19  ;;  %v2191_v55 = vsel %vm2028_vm15, %v2189_v1, %v2190_v46  ;;  %v2235_v54 = vsel %vm2028_vm15, %v2232_v37, %v2234_v27  ;;  %v2385_v1 = vstv %s4025_s6  ;;  %s4065_s6 = sld [smem:[#allocation2 + $0x24]] }
 0x563   : > { %2110 = vrot.lane.b32.xlu2 %v2107_v38, %s4246_s14  ;;  %v2343_v38 = vstv %s4023_s5  ;;  %v2387_v46 = vmul.f32 %v2385_v1, %v5672_v2  ;;  %v2388_v51 = vmul.f32 %v2385_v1, %v5709_v58  ;;  %s4061_s5 = sld [smem:[#allocation2 + $0x22]] }
 0x564   : > { %v2344_v27 = vmul.f32 %v2343_v38, %v5675_v57  ;;  %v2345_v42 = vmul.f32 %v2343_v38, %v5672_v2  ;;  %v2346_v21 = vmul.f32 %v2343_v38, %v5709_v58 }
 0x565   : > { %v2395_v23 = vrot.slane %v2388_v51, 2 }
 0x566   : > { %v2350_v59 = vrot.slane %v2344_v27, 2  ;;  %v2351_v56 = vrot.slane %v2345_v42, 2  ;;  %v2386_v27 = vmul.f32 %v2385_v1, %v5675_v57 }
 0x569   : > { %v3127_v62 = vstv %s4061_s5  ;;  %s4018_s5 = sld [smem:[#allocation2 + $0x3d]] }
 0x56a   : > { %2194 = vrot.lane.b32.xlu0 %v2191_v55, %s4248_s24  ;;  %2238 = vrot.lane.b32.xlu1 %v2235_v54, %s4249_s25  ;;  %v2277_v55 = vsel %vm2028_vm15, %v2274_v22, %v2276_v30  ;;  %v2275_v54 = vsel %vm2028_vm15, %v2273_v3, %v2274_v22  ;;  %v2353_v22 = vrot.slane %v2346_v21, 2  ;;  %v2427_v30 = vstv %s4027_s7  ;;  %s4067_s7 = sld [smem:[#allocation2 + $0x25]] }
 0x56b   : > { %2196 = vrot.lane.b32.xlu2 %v2193_v43, %s4248_s24  ;;  %v2393_v43 = vrot.slane %v2387_v46, 2  ;;  %v2352_v3 = vsel %vm2315_vm1, %v2350_v59, %v2351_v56  ;;  %v2430_v37 = vmul.f32 %v2427_v30, %v5709_v58  ;;  %v2428_v38 = vmul.f32 %v2427_v30, %v5675_v57 }
 0x56c   : > { %v2354_v61 = vsel %vm2315_vm1, %v2351_v56, %v2353_v22  ;;  %v2392_v21 = vrot.slane %v2386_v27, 2  ;;  %v2511_v59 = vstv %s4031_s9  ;;  %s4071_s9 = sld [smem:[#allocation2 + $0x27]] }
 0x56d   : > { %v2437_v46 = vrot.slane %v2430_v37, 2  ;;  %v2434_v51 = vrot.slane %v2428_v38, 2  ;;  %v2513_v56 = vmul.f32 %v2511_v59, %v5672_v2  ;;  %v2514_v1 = vmul.f32 %v2511_v59, %v5709_v58 }
 0x56e   : > { %v2394_v22 = vsel %vm2315_vm1, %v2392_v21, %v2393_v43  ;;  %v2553_v37 = vstv %s4033_s10  ;;  %s4073_s10 = sld [smem:[#allocation2 + $0x28]] }
 0x56f   : > { %v2519_v27 = vrot.slane %v2513_v56, 2 }
 0x570   : > { %v3245_v16 = vstv %s4067_s7  ;;  %s4024_s7 = sld [smem:[#allocation2 + $0x40]] }
 0x572   : > { %2280 = vrot.lane.b32.xlu0 %v2277_v55, %s4250_s27  ;;  %2278 = vrot.lane.b32.xlu1 %v2275_v54, %s4250_s27  ;;  %v2396_v55 = vsel %vm2315_vm1, %v2393_v43, %v2395_v23  ;;  %v2429_v54 = vmul.f32 %v2427_v30, %v5672_v2  ;;  %v2556_v43 = vmul.f32 %v2553_v37, %v5709_v58 }
 0x573   : > { %2236 = vrot.lane.b32.xlu2 %v2233_v17, %s4249_s25  ;;  %v2469_v17 = vstv %s4029_s8  ;;  %s4069_s8 = sld [smem:[#allocation2 + $0x26]] }
 0x574   : > { %v2435_v42 = vrot.slane %v2429_v54, 2  ;;  %v2470_v23 = vmul.f32 %v2469_v17, %v5675_v57  ;;  %v2471_v30 = vmul.f32 %v2469_v17, %v5672_v2  ;;  %v2472_v54 = vmul.f32 %v2469_v17, %v5709_v58 }
 0x575   : > { %v2554_v17 = vmul.f32 %v2553_v37, %v5675_v57  ;;  %v2563_v56 = vrot.slane %v2556_v43, 2  ;;  %v2714_v43 = vstv %s4041_s17  ;;  %s3998_s17 = sld [smem:[#allocation2 + $0x33]] }
 0x576   : > { %v2476_v38 = vrot.slane %v2470_v23, 2  ;;  %v2512_v23 = vmul.f32 %v2511_v59, %v5675_v57 }
 0x579   : > { %v3287_v39 = vstv %s4069_s8  ;;  %s4026_s8 = sld [smem:[#allocation2 + $0x41]] }
 0x57a   : > { %2355 = vrot.lane.b32.xlu0 %v2352_v3, %s4245_s13  ;;  %2399 = vrot.lane.b32.xlu1 %v2396_v55, %s4246_s14  ;;  %v2438_v3 = vsel %vm2315_vm1, %v2435_v42, %v2437_v46  ;;  %v2436_v55 = vsel %vm2315_vm1, %v2434_v51, %v2435_v42  ;;  %v2521_v46 = vrot.slane %v2514_v1, 2  ;;  %v2479_v42 = vrot.slane %v2472_v54, 2 }
 0x57b   : > { %2357 = vrot.lane.b32.xlu2 %v2354_v61, %s4245_s13  ;;  %v2477_v61 = vrot.slane %v2471_v30, 2  ;;  %v2555_v51 = vmul.f32 %v2553_v37, %v5672_v2  ;;  %v2560_v1 = vrot.slane %v2554_v17, 2  ;;  %v2518_v54 = vrot.slane %v2512_v23, 2 }
 0x57d   : > { %v2480_v21 = vsel %vm2315_vm1, %v2477_v61, %v2479_v42  ;;  %v2561_v30 = vrot.slane %v2555_v51, 2  ;;  %v2520_v42 = vsel %vm2315_vm1, %v2518_v54, %v2519_v27  ;;  %v2715_v54 = vmul.f32 %v2714_v43, %v5675_v57 }
 0x582   : > { %2441 = vrot.lane.b32.xlu0 %v2438_v3, %s4247_s19  ;;  %2439 = vrot.lane.b32.xlu1 %v2436_v55, %s4247_s19  ;;  %v2478_v3 = vsel %vm2315_vm1, %v2476_v38, %v2477_v61  ;;  %v2522_v55 = vsel %vm2315_vm1, %v2519_v27, %v2521_v46  ;;  %v2672_v38 = vstv %s4039_s12  ;;  %s3996_s12 = sld [smem:[#allocation2 + $0x32]] }
 0x583   : > { %2397 = vrot.lane.b32.xlu2 %v2394_v22, %s4246_s14  ;;  %v2630_v22 = vstv %s4037_s11  ;;  %v2674_v61 = vmul.f32 %v2672_v38, %v5672_v2  ;;  %v2675_v59 = vmul.f32 %v2672_v38, %v5709_v58  ;;  %s4075_s11 = sld [smem:[#allocation2 + $0x29]] }
 0x584   : > { %v2631_v46 = vmul.f32 %v2630_v22, %v5675_v57  ;;  %v2632_v37 = vmul.f32 %v2630_v22, %v5672_v2  ;;  %v2633_v51 = vmul.f32 %v2630_v22, %v5709_v58  ;;  %v2717_v22 = vmul.f32 %v2714_v43, %v5709_v58 }
 0x586   : > { %v2638_v23 = vrot.slane %v2632_v37, 3  ;;  %v2673_v37 = vmul.f32 %v2672_v38, %v5675_v57  ;;  %v2800_v38 = vmul.f32 %v2798_v8, %v5672_v2 }
 0x58a   : > { %2481 = vrot.lane.b32.xlu0 %v2478_v3, %s4248_s24  ;;  %2525 = vrot.lane.b32.xlu1 %v2522_v55, %s4249_s25  ;;  %v2564_v3 = vsel %vm2315_vm1, %v2561_v30, %v2563_v56  ;;  %v2562_v55 = vsel %vm2315_vm1, %v2560_v1, %v2561_v30  ;;  %v2680_v30 = vrot.slane %v2674_v61, 3  ;;  %v2682_v56 = vrot.slane %v2675_v59, 3 }
 0x58b   : > { %2483 = vrot.lane.b32.xlu2 %v2480_v21, %s4248_s24  ;;  %v2637_v21 = vrot.slane %v2631_v46, 3  ;;  %v2640_v1 = vrot.slane %v2633_v51, 3  ;;  %v2721_v51 = vrot.slane %v2715_v54, 3 }
 0x58c   : > { %v2683_v27 = vsel %vm2602_vm2, %v2680_v30, %v2682_v56  ;;  %v2679_v56 = vrot.slane %v2673_v37, 3 }
 0x58d   : > { %v2641_v46 = vsel %vm2602_vm2, %v2638_v23, %v2640_v1  ;;  %v2801_v1 = vmul.f32 %v2798_v8, %v5709_v58 }
 0x592   : > { %2567 = vrot.lane.b32.xlu0 %v2564_v3, %s4250_s27  ;;  %2565 = vrot.lane.b32.xlu1 %v2562_v55, %s4250_s27  ;;  %v2716_v3 = vmul.f32 %v2714_v43, %v5672_v2  ;;  %v2639_v55 = vsel %vm2602_vm2, %v2637_v21, %v2638_v23  ;;  %v2756_v21 = vstv %s4043_s18  ;;  %s4000_s18 = sld [smem:[#allocation2 + $0x34]] }
 0x593   : > { %2523 = vrot.lane.b32.xlu2 %v2520_v42, %s4249_s25  ;;  %v2724_v42 = vrot.slane %v2717_v22, 3  ;;  %v2757_v43 = vmul.f32 %v2756_v21, %v5675_v57  ;;  %v2759_v22 = vmul.f32 %v2756_v21, %v5709_v58 }
 0x594   : > { %v2722_v59 = vrot.slane %v2716_v3, 3  ;;  %v2681_v3 = vsel %vm2602_vm2, %v2679_v56, %v2680_v30 }
 0x595   : > { %v5806_v17 = vpop.permute.xlu2 %1860  ;;  %v2763_v54 = vrot.slane %v2757_v43, 3  ;;  %v2766_v4 = vrot.slane %v2759_v22, 3 }
 0x596   : > { %v2723_v23 = vsel %vm2602_vm2, %v2721_v51, %v2722_v59  ;;  %v2840_v51 = vstv %s4047_s22  ;;  %s4004_s22 = sld [smem:[#allocation2 + $0x36]] }
 0x597   : > { %v2841_v56 = vmul.f32 %v2840_v51, %v5675_v57 }
 0x59a   : > { %2642 = vrot.lane.b32.xlu0 %v2639_v55, %s4245_s13  ;;  %2686 = vrot.lane.b32.xlu1 %v2683_v27, %s4246_s14  ;;  %v2758_v55 = vmul.f32 %v2756_v21, %v5672_v2  ;;  %v2725_v27 = vsel %vm2602_vm2, %v2722_v59, %v2724_v42  ;;  %v2806_v42 = vrot.slane %v2800_v38, 3  ;;  %v2808_v59 = vrot.slane %v2801_v1, 3 }
 0x59b   : > { %2644 = vrot.lane.b32.xlu2 %v2641_v46, %s4245_s13 }
 0x59c   : > { %v2764_v37 = vrot.slane %v2758_v55, 3  ;;  %v2809_v21 = vsel %vm2602_vm2, %v2806_v42, %v2808_v59  ;;  %v2799_v55 = vmul.f32 %v2798_v8, %v5675_v57  ;;  %v2847_v59 = vrot.slane %v2841_v56, 3 }
 0x59d   : > { %v5818_v61 = vpop.permute.xlu2 %1886 }
 0x59e   : > { %v2765_v30 = vsel %vm2602_vm2, %v2763_v54, %v2764_v37  ;;  %v2767_v43 = vsel %vm2602_vm2, %v2764_v37, %v2766_v4 }
 0x5a2   : > { %2728 = vrot.lane.b32.xlu0 %v2725_v27, %s4247_s19  ;;  %2726 = vrot.lane.b32.xlu1 %v2723_v23, %s4247_s19  ;;  %v2842_v27 = vmul.f32 %v2840_v51, %v5672_v2  ;;  %v2843_v23 = vmul.f32 %v2840_v51, %v5709_v58  ;;  %v2917_v51 = vstv %s4051_s23  ;;  %s4006_s23 = sld [smem:[#allocation2 + $0x37]] }
 0x5a3   : > { %2684 = vrot.lane.b32.xlu2 %v2681_v3, %s4246_s14  ;;  %v2918_v4 = vmul.f32 %v2917_v51, %v5675_v57  ;;  %v2919_v37 = vmul.f32 %v2917_v51, %v5672_v2  ;;  %v2920_v56 = vmul.f32 %v2917_v51, %v5709_v58 }
 0x5a4   : > { %v2848_v3 = vrot.slane %v2842_v27, 3  ;;  %v2850_v22 = vrot.slane %v2843_v23, 3  ;;  %v2962_v27 = vmul.f32 %v2959_v48, %v5709_v58 }
 0x5a5   : > { %v5831_v46 = vpop.permute.xlu2 %1944  ;;  %v2924_v14 = vrot.slane %v2918_v4, 4  ;;  %v2925_v26 = vrot.slane %v2919_v37, 4  ;;  %v2960_v37 = vmul.f32 %v2959_v48, %v5675_v57 }
 0x5a6   : > { %v2849_v8 = vsel %vm2602_vm2, %v2847_v59, %v2848_v3  ;;  %v2969_v9 = vrot.slane %v2962_v27, 4 }
 0x5a7   : > { %v2926_v51 = vsel %vm2889_vm3, %v2924_v14, %v2925_v26 }
 0x5a8   : > { %v2006_v0 = vstv %s4006_s23  ;;  %s4046_s23 = sld [smem:[#allocation2 + $0x4b]] }
 0x5a9   : > { %v2008_v44 = vmul.f32 %v2006_v0, %v5694_v20 }
 0x5aa   : > { %2768 = vrot.lane.b32.xlu0 %v2765_v30, %s4248_s24  ;;  %2812 = vrot.lane.b32.xlu1 %v2809_v21, %s4249_s25  ;;  %v2805_v30 = vrot.slane %v2799_v55, 3  ;;  %v2851_v21 = vsel %vm2602_vm2, %v2848_v3, %v2850_v22  ;;  %v3001_v3 = vstv %s4055_s28  ;;  %s4012_s28 = sld [smem:[#allocation2 + $0x3a]] }
 0x5ab   : > { %2770 = vrot.lane.b32.xlu2 %v2767_v43, %s4248_s24  ;;  %v2961_v43 = vmul.f32 %v2959_v48, %v5672_v2 }
 0x5ac   : > { %v5843_v38 = vpop.permute.xlu0 %1858  ;;  %v5845_v1 = vpop.permute.xlu1 %1888  ;;  %v2807_v23 = vsel %vm2602_vm2, %v2805_v30, %v2806_v42  ;;  %v3003_v42 = vmul.f32 %v3001_v3, %v5672_v2 }
 0x5ad   : > { %v5847_v54 = vpop.permute.xlu2 %1970  ;;  %v2967_v63 = vrot.slane %v2961_v43, 4 }
 0x5af   : > { %v2970_v30 = vsel %vm2889_vm3, %v2967_v63, %v2969_v9  ;;  %v3009_v9 = vrot.slane %v3003_v42, 4 }
 0x5b0   : > { %v2118_v34 = vstv %s4012_s28  ;;  %s6197_s28 = sld [smem:[#allocation2]] }
 0x5b2   : > { %2854 = vrot.lane.b32.xlu0 %v2851_v21, %s4250_s27  ;;  %2852 = vrot.lane.b32.xlu1 %v2849_v8, %s4250_s27  ;;  %v2927_v21 = vrot.slane %v2920_v56, 4  ;;  %v3004_v8 = vmul.f32 %v3001_v3, %v5709_v58 }
 0x5b3   : > { %2810 = vrot.lane.b32.xlu2 %v2807_v23, %s4249_s25  ;;  %v3002_v23 = vmul.f32 %v3001_v3, %v5675_v57  ;;  %v3043_v3 = vstv %s4057_s29  ;;  %s4014_s29 = sld [smem:[#allocation2 + $0x3b]] }
 0x5b4   : > { %v5860_v55 = vpop.permute.xlu0 %1916  ;;  %v5862_v22 = vpop.permute.xlu1 %1914  ;;  %v2928_v4 = vsel %vm2889_vm3, %v2925_v26, %v2927_v21  ;;  %v3011_v56 = vrot.slane %v3004_v8, 4  ;;  %v3045_v26 = vmul.f32 %v3043_v3, %v5672_v2  ;;  %v3046_v8 = vmul.f32 %v3043_v3, %v5709_v58 }
 0x5b5   : > { %v5864_v59 = vpop.permute.xlu2 %2070  ;;  %v3008_v28 = vrot.slane %v3002_v23, 4 }
 0x5b6   : > { %v3012_v48 = vsel %vm2889_vm3, %v3009_v9, %v3011_v56 }
 0x5b7   : > { %v3010_v21 = vsel %vm2889_vm3, %v3008_v28, %v3009_v9  ;;  %v3051_v9 = vrot.slane %v3045_v26, 4 }
 0x5ba   : > { %2929 = vrot.lane.b32.xlu0 %v2926_v51, %s4245_s13  ;;  %2973 = vrot.lane.b32.xlu1 %v2970_v30, %s4246_s14  ;;  %v2966_v51 = vrot.slane %v2960_v37, 4  ;;  %v3044_v30 = vmul.f32 %v3043_v3, %v5675_v57  ;;  %v3130_v3 = vmul.f32 %v3127_v62, %v5709_v58 }
 0x5bb   : > { %2931 = vrot.lane.b32.xlu2 %v2928_v4, %s4245_s13  ;;  %v3087_v4 = vmul.f32 %v3085_v6, %v5672_v2 }
 0x5bc   : > { %v5876_v43 = vpop.permute.xlu0 %1942  ;;  %v5878_v27 = vpop.permute.xlu1 %1972  ;;  %v2968_v42 = vsel %vm2889_vm3, %v2966_v51, %v2967_v63  ;;  %v3050_v56 = vrot.slane %v3044_v30, 4  ;;  %v3129_v63 = vmul.f32 %v3127_v62, %v5672_v2  ;;  %v3086_v30 = vmul.f32 %v3085_v6, %v5675_v57 }
 0x5bd   : > { %v5880_v14 = vpop.permute.xlu2 %2110  ;;  %v3093_v49 = vrot.slane %v3087_v4, 4 }
 0x5be   : > { %v3052_v51 = vsel %vm2889_vm3, %v3050_v56, %v3051_v9  ;;  %v3137_v56 = vrot.slane %v3130_v3, 4 }
 0x5c2   : > { %3015 = vrot.lane.b32.xlu0 %v3012_v48, %s4247_s19  ;;  %3013 = vrot.lane.b32.xlu1 %v3010_v21, %s4247_s19  ;;  %v3053_v48 = vrot.slane %v3046_v8, 4  ;;  %v3096_v21 = vsel %vm2889_vm3, %v3093_v49, %v3095_v5  ;;  %v3135_v8 = vrot.slane %v3129_v63, 4  ;;  %v3248_v63 = vmul.f32 %v3245_v16, %v5709_v58 }
 0x5c3   : > { %2971 = vrot.lane.b32.xlu2 %v2968_v42, %s4246_s14  ;;  %v3128_v42 = vmul.f32 %v3127_v62, %v5675_v57  ;;  %v3203_v62 = vstv %s4065_s6  ;;  %s4020_s6 = sld [smem:[#allocation2 + $0x3e]] }
 0x5c4   : > { %v5893_v23 = vpop.permute.xlu0 %2000  ;;  %v5895_v37 = vpop.permute.xlu1 %1998  ;;  %v3054_v60 = vsel %vm2889_vm3, %v3051_v9, %v3053_v48  ;;  %v3204_v9 = vmul.f32 %v3203_v62, %v5675_v57  ;;  %v3205_v48 = vmul.f32 %v3203_v62, %v5672_v2  ;;  %v3255_v18 = vrot.slane %v3248_v63, 5 }
 0x5c5   : > { %v5897_v28 = vpop.permute.xlu2 %2196  ;;  %v3134_v5 = vrot.slane %v3128_v42, 4  ;;  %v3206_v42 = vmul.f32 %v3203_v62, %v5709_v58 }
 0x5c6   : > { %v3211_v13 = vrot.slane %v3205_v48, 5  ;;  %v3246_v48 = vmul.f32 %v3245_v16, %v5675_v57 }
 0x5c7   : > { %v3136_v6 = vsel %vm2889_vm3, %v3134_v5, %v3135_v8 }
 0x5c8   : > { %v3252_v50 = vrot.slane %v3246_v48, 5 }
 0x5ca   : > { %3055 = vrot.lane.b32.xlu0 %v3052_v51, %s4248_s24  ;;  %3099 = vrot.lane.b32.xlu1 %v3096_v21, %s4249_s25  ;;  %v3092_v51 = vrot.slane %v3086_v30, 4  ;;  %v3138_v21 = vsel %vm2889_vm3, %v3135_v8, %v3137_v56  ;;  %v3210_v8 = vrot.slane %v3204_v9, 5 }
 0x5cb   : > { %3057 = vrot.lane.b32.xlu2 %v3054_v60, %s4248_s24  ;;  %v3247_v60 = vmul.f32 %v3245_v16, %v5672_v2 }
 0x5cc   : > { %v5909_v26 = vpop.permute.xlu0 %2068  ;;  %v5911_v4 = vpop.permute.xlu1 %2112  ;;  %v3094_v3 = vsel %vm2889_vm3, %v3092_v51, %v3093_v49  ;;  %v3289_v49 = vmul.f32 %v3287_v39, %v5672_v2  ;;  %v3212_v62 = vsel %vm1808_vm14, %v3210_v8, %v3211_v13 }
 0x5cd   : > { %v5913_v10 = vpop.permute.xlu2 %2236  ;;  %v3253_v12 = vrot.slane %v3247_v60, 5 }
 0x5cf   : > { %v3256_v51 = vsel %vm1808_vm14, %v3253_v12, %v3255_v18  ;;  %v3295_v18 = vrot.slane %v3289_v49, 5  ;;  %v3254_v49 = vsel %vm1808_vm14, %v3252_v50, %v3253_v12 }
 0x5d2   : > { %3141 = vrot.lane.b32.xlu0 %v3138_v21, %s4250_s27  ;;  %3139 = vrot.lane.b32.xlu1 %v3136_v6, %s4250_s27  ;;  %v3213_v21 = vrot.slane %v3206_v42, 5  ;;  %v3290_v6 = vmul.f32 %v3287_v39, %v5709_v58 }
 0x5d3   : > { %3097 = vrot.lane.b32.xlu2 %v3094_v3, %s4249_s25  ;;  %v3288_v3 = vmul.f32 %v3287_v39, %v5675_v57  ;;  %v3329_v39 = vstv %s4071_s9  ;;  %s4028_s9 = sld [smem:[#allocation2 + $0x42]] }
 0x5d4   : > { %v5926_v30 = vpop.permute.xlu0 %2154  ;;  %v5928_v56 = vpop.permute.xlu1 %2152  ;;  %v3214_v9 = vsel %vm1808_vm14, %v3211_v13, %v3213_v21  ;;  %v3297_v8 = vrot.slane %v3290_v6, 5  ;;  %v3331_v13 = vmul.f32 %v3329_v39, %v5672_v2  ;;  %v3332_v6 = vmul.f32 %v3329_v39, %v5709_v58 }
 0x5d5   : > { %v5930_v5 = vpop.permute.xlu2 %2357  ;;  %v3294_v15 = vrot.slane %v3288_v3, 5 }
 0x5d6   : > { %v3298_v16 = vsel %vm1808_vm14, %v3295_v18, %v3297_v8  ;;  %v3339_v7 = vrot.slane %v3332_v6, 5 }
 0x5d7   : > { %v3296_v21 = vsel %vm1808_vm14, %v3294_v15, %v3295_v18  ;;  %v3337_v15 = vrot.slane %v3331_v13, 5 }
 0x5da   : > { %3215 = vrot.lane.b32.xlu0 %v3212_v62, %s4245_s13  ;;  %3259 = vrot.lane.b32.xlu1 %v3256_v51, %s4246_s14  ;;  %v3371_v62 = vstv %s4073_s10  ;;  %v3330_v51 = vmul.f32 %v3329_v39, %v5675_v57  ;;  %s4030_s10 = sld [smem:[#allocation2 + $0x43]] }
 0x5db   : > { %3217 = vrot.lane.b32.xlu2 %v3214_v9, %s4245_s13  ;;  %v3373_v9 = vmul.f32 %v3371_v62, %v5672_v2  ;;  %v3374_v53 = vmul.f32 %v3371_v62, %v5709_v58 }
 0x5dc   : > { %v5942_v60 = vpop.permute.xlu0 %2194  ;;  %v5944_v63 = vpop.permute.xlu1 %2238  ;;  %v3336_v8 = vrot.slane %v3330_v51, 5  ;;  %v3340_v51 = vsel %vm1808_vm14, %v3337_v15, %v3339_v7 }
 0x5dd   : > { %v5946_v42 = vpop.permute.xlu2 %2397  ;;  %v3379_v25 = vrot.slane %v3373_v9, 5  ;;  %v3381_v41 = vrot.slane %v3374_v53, 5  ;;  %v3372_v53 = vmul.f32 %v3371_v62, %v5675_v57 }
 0x5df   : > { %v3382_v12 = vsel %vm1808_vm14, %v3379_v25, %v3381_v41 }
 0x5e2   : > { %3301 = vrot.lane.b32.xlu0 %v3298_v16, %s4247_s19  ;;  %3299 = vrot.lane.b32.xlu1 %v3296_v21, %s4247_s19  ;;  %v3413_v16 = vstv %s4075_s11  ;;  %v3338_v21 = vsel %vm1808_vm14, %v3336_v8, %v3337_v15  ;;  %s4032_s11 = sld [smem:[#allocation2 + $0x44]] }
 0x5e3   : > { %3257 = vrot.lane.b32.xlu2 %v3254_v49, %s4246_s14  ;;  %v3415_v50 = vmul.f32 %v3413_v16, %v5672_v2  ;;  %v3416_v39 = vmul.f32 %v3413_v16, %v5709_v58  ;;  %v3414_v49 = vmul.f32 %v3413_v16, %v5675_v57  ;;  %v3378_v16 = vrot.slane %v3372_v53, 5 }
 0x5e4   : > { %v5959_v3 = vpop.permute.xlu0 %2280  ;;  %v5961_v48 = vpop.permute.xlu1 %2278  ;;  %v1894_v53 = vstv %s3998_s17  ;;  %s4038_s17 = sld [smem:[#allocation2 + $0x47]] }
 0x5e5   : > { %v5963_v18 = vpop.permute.xlu2 %2483  ;;  %v3421_v6 = vrot.slane %v3415_v50, 5  ;;  %v3423_v8 = vrot.slane %v3416_v39, 5  ;;  %v3420_v29 = vrot.slane %v3414_v49, 5  ;;  %v3380_v62 = vsel %vm1808_vm14, %v3378_v16, %v3379_v25 }
 0x5e6   : > { %v7105_v50 = vrot.slane %v5662_v47, 5 }
 0x5e7   : > { %v3422_v7 = vsel %vm1808_vm14, %v3420_v29, %v3421_v6  ;;  %v1866_v29 = vstv %s3996_s12  ;;  %s4034_s12 = sld [smem:[#allocation2 + $0x45]] }
 0x5e8   : > { %v5994_v39 = vsel %vm1808_vm14, 0.0, %v7105_v50  ;;  %v1868_v25 = vmul.f32 %v1866_v29, %v5694_v20 }
 0x5ea   : > { %3341 = vrot.lane.b32.xlu0 %v3338_v21, %s4248_s24  ;;  %3385 = vrot.lane.b32.xlu1 %v3382_v12, %s4249_s25  ;;  %v3424_v21 = vsel %vm1808_vm14, %v3421_v6, %v3423_v8  ;;  %v1896_v6 = vmul.f32 %v1894_v53, %v5694_v20 }
 0x5eb   : > { %3343 = vrot.lane.b32.xlu2 %v3340_v51, %s4248_s24  ;;  %v1867_v51 = vmul.f32 %v1866_v29, %v5994_v39 }
 0x5ec   : > { %v5975_v13 = vpop.permute.xlu0 %2355  ;;  %v5977_v9 = vpop.permute.xlu1 %2399 }
 0x5ed   : > { %v5979_v41 = vpop.permute.xlu2 %2523 }
 0x5ee   : > { %7104 = vst [vmem:[#allocation69_spill] sm:$0xff] %v5979_v41 }
 0x5f2   : > { %3427 = vrot.lane.b32.xlu0 %v3424_v21, %s4250_s27  ;;  %3425 = vrot.lane.b32.xlu1 %v3422_v7, %s4250_s27  ;;  %v1922_v21 = vstv %s4000_s18  ;;  %s4040_s18 = sld [smem:[#allocation2 + $0x48]] }
 0x5f3   : > { %3383 = vrot.lane.b32.xlu2 %v3380_v62, %s4249_s25  ;;  %v1924_v7 = vmul.f32 %v1922_v21, %v5694_v20  ;;  %v1895_v62 = vmul.f32 %v1894_v53, %v5994_v39  ;;  %v1923_v50 = vmul.f32 %v1922_v21, %v5994_v39  ;;  %v1978_v53 = vstv %s4004_s22  ;;  %s4044_s22 = sld [smem:[#allocation2 + $0x4a]] }
 0x5f4   : > { %v5987_v15 = vpop.permute.xlu0 %2441  ;;  %v5989_v12 = vpop.permute.xlu1 %2439  ;;  %v1980_v21 = vmul.f32 %v1978_v53, %v5694_v20 }
 0x5f5   : > { %v5996_v49 = vpop.permute.xlu2 %2644 }
 0x5f6   : > { %7106 = vst [vmem:[#allocation70_spill] sm:$0xff] %v5996_v49 }
 0x5fa   : > { %1871 = vrot.lane.b32.xlu1 %v1867_v51, %s4245_s13  ;;  %1873 = vrot.lane.b32.xlu0 %v1868_v25, %s4245_s13 }
 0x5fb   : > { %1901 = vrot.lane.b32.xlu2 %v1896_v6, %s4246_s14  ;;  %v1950_v6 = vstv %s4002_s20  ;;  %s4042_s20 = sld [smem:[#allocation2 + $0x49]] }
 0x5fc   : > { %v6004_v47 = vpop.permute.xlu0 %2481  ;;  %v6006_v8 = vpop.permute.xlu1 %2525  ;;  %v1951_v45 = vmul.f32 %v1950_v6, %v5994_v39  ;;  %v1952_v52 = vmul.f32 %v1950_v6, %v5694_v20  ;;  %v6037_v6 = vsel %vm1808_vm14, %v7114_v33, 0.0  ;;  %v2120_v33 = vmul.f32 %v2118_v34, %v5694_v20 }
 0x5fd   : > { %v6008_v16 = vpop.permute.xlu2 %2684  ;;  %v2079_v40 = vmul.f32 %v2076_v24, %v6037_v6  ;;  %v2121_v32 = vmul.f32 %v2118_v34, %v6037_v6 }
 0x5fe   : > { %7107 = vst [vmem:[#allocation71_spill] sm:$0xff] %v6008_v16  ;;  %v2126_v11 = vrot.slane %v2120_v33, 1 }
 0x5ff   : > { %v2086_v19 = vrot.slane %v2079_v40, 1  ;;  %v2119_v40 = vmul.f32 %v2118_v34, %v5994_v39 }
 0x602   : > { %1929 = vrot.lane.b32.xlu1 %v1924_v7, %s4247_s19  ;;  %1899 = vrot.lane.b32.xlu0 %v1895_v62, %s4246_s14 }
 0x603   : > { %1927 = vrot.lane.b32.xlu2 %v1923_v50, %s4247_s19 }
 0x604   : > { %v6016_v29 = vpop.permute.xlu0 %2567  ;;  %v6018_v51 = vpop.permute.xlu1 %2565 }
 0x605   : > { %7108 = vst [vmem:[#allocation72_spill] sm:$0xff] %v6016_v29  ;;  %v6020_v25 = vpop.permute.xlu2 %2770 }
 0x606   : > { %7109 = vst [vmem:[#allocation73_spill] sm:$0xff] %v6018_v51 }
 0x607   : > { %7110 = vst [vmem:[#allocation74_spill] sm:$0xff] %v6020_v25 }
 0x60a   : > { %1955 = vrot.lane.b32.xlu1 %v1951_v45, %s4248_s24  ;;  %1957 = vrot.lane.b32.xlu0 %v1952_v52, %s4248_s24  ;;  %v1979_v45 = vmul.f32 %v1978_v53, %v5994_v39  ;;  %v2007_v52 = vmul.f32 %v2006_v0, %v5994_v39  ;;  %v2077_v53 = vmul.f32 %v2076_v24, %v5994_v39 }
 0x60b   : > { %1985 = vrot.lane.b32.xlu2 %v1980_v21, %s4249_s25  ;;  %v2078_v21 = vmul.f32 %v2076_v24, %v5694_v20 }
 0x60c   : > { %v6028_v7 = vpop.permute.xlu0 %2642  ;;  %v6030_v62 = vpop.permute.xlu1 %2686 }
 0x60d   : > { %7111 = vst [vmem:[#allocation75_spill] sm:$0xff] %v6028_v7  ;;  %v6032_v50 = vpop.permute.xlu2 %2810  ;;  %v2084_v36 = vrot.slane %v2078_v21, 1 }
 0x60e   : > { %7112 = vst [vmem:[#allocation76_spill] sm:$0xff] %v6030_v62 }
 0x60f   : > { %7113 = vst [vmem:[#allocation77_spill] sm:$0xff] %v6032_v50  ;;  %v2083_v50 = vrot.slane %v2077_v53, 1  ;;  %v2087_v16 = vsel %vm2028_vm15, %v2084_v36, %v2086_v19  ;;  %v2125_v53 = vrot.slane %v2119_v40, 1 }
 0x611   : > { %v2085_v25 = vsel %vm2028_vm15, %v2083_v50, %v2084_v36 }
 0x612   : > { %2013 = vrot.lane.b32.xlu1 %v2008_v44, %s4250_s27  ;;  %1983 = vrot.lane.b32.xlu0 %v1979_v45, %s4249_s25  ;;  %v2128_v44 = vrot.slane %v2121_v32, 1  ;;  %v2160_v45 = vstv %s4014_s29  ;;  %s4048_s29 = sld [smem:[#allocation2 + $0x4c]] }
 0x613   : > { %2011 = vrot.lane.b32.xlu2 %v2007_v52, %s4250_s27  ;;  %v2162_v52 = vmul.f32 %v2160_v45, %v5694_v20  ;;  %v2163_v24 = vmul.f32 %v2160_v45, %v6037_v6  ;;  %v2161_v19 = vmul.f32 %v2160_v45, %v5994_v39 }
 0x614   : > { %v6050_v31 = vpop.permute.xlu0 %2728  ;;  %v6052_v0 = vpop.permute.xlu1 %2726 }
 0x615   : > { %7115 = vst [vmem:[#allocation78_spill] sm:$0xff] %v6050_v31  ;;  %v6054_v35 = vpop.permute.xlu2 %2931  ;;  %v2168_v33 = vrot.slane %v2162_v52, 1  ;;  %v2170_v32 = vrot.slane %v2163_v24, 1 }
 0x616   : > { %7116 = vst [vmem:[#allocation79_spill] sm:$0xff] %v6052_v0  ;;  %v2244_v0 = vstv %s4018_s5  ;;  %s4054_s5 = sld [smem:[#allocation2 + $0x4f]] }
 0x617   : > { %7117 = vst [vmem:[#allocation80_spill] sm:$0xff] %v6054_v35  ;;  %v2129_v35 = vsel %vm2028_vm15, %v2126_v11, %v2128_v44  ;;  %v2127_v44 = vsel %vm2028_vm15, %v2125_v53, %v2126_v11  ;;  %v2171_v34 = vsel %vm2028_vm15, %v2168_v33, %v2170_v32  ;;  %v2246_v52 = vmul.f32 %v2244_v0, %v5694_v20 }
 0x618   : > { %v2247_v24 = vmul.f32 %v2244_v0, %v6037_v6  ;;  %v2860_v29 = vstv %s4048_s29  ;;  %s6407_s29 = sld [smem:[#allocation2 + $0x2b]] }
 0x619   : > { %v2862_v41 = vmul.f32 %v2860_v29, %v5694_v20 }
 0x61a   : > { %2088 = vrot.lane.b32.xlu1 %v2085_v25, %s4245_s13  ;;  %2090 = vrot.lane.b32.xlu0 %v2087_v16, %s4245_s13  ;;  %v2167_v25 = vrot.slane %v2161_v19, 1  ;;  %v2202_v16 = vstv %s4016_s30  ;;  %s4052_s30 = sld [smem:[#allocation2 + $0x4e]] }
 0x61b   : > { %2132 = vrot.lane.b32.xlu2 %v2129_v35, %s4246_s14  ;;  %v2204_v35 = vmul.f32 %v2202_v16, %v5694_v20  ;;  %v2203_v11 = vmul.f32 %v2202_v16, %v5994_v39 }
 0x61c   : > { %v6065_v21 = vpop.permute.xlu0 %2768  ;;  %v6067_v50 = vpop.permute.xlu1 %2812  ;;  %v2169_v45 = vsel %vm2028_vm15, %v2167_v25, %v2168_v33  ;;  %v2254_v33 = vrot.slane %v2247_v24, 1 }
 0x61d   : > { %7118 = vst [vmem:[#allocation81_spill] sm:$0xff] %v6065_v21  ;;  %v6070_v36 = vpop.permute.xlu2 %2971  ;;  %v2205_v21 = vmul.f32 %v2202_v16, %v6037_v6  ;;  %v2210_v53 = vrot.slane %v2204_v35, 1  ;;  %v2209_v25 = vrot.slane %v2203_v11, 1 }
 0x61e   : > { %7119 = vst [vmem:[#allocation82_spill] sm:$0xff] %v6067_v50 }
 0x61f   : > { %7120 = vst [vmem:[#allocation83_spill] sm:$0xff] %v6070_v36  ;;  %v2252_v36 = vrot.slane %v2246_v52, 1 }
 0x622   : > { %2174 = vrot.lane.b32.xlu1 %v2171_v34, %s4247_s19  ;;  %2130 = vrot.lane.b32.xlu0 %v2127_v44, %s4246_s14  ;;  %v2212_v34 = vrot.slane %v2205_v21, 1  ;;  %v2286_v44 = vstv %s4020_s6  ;;  %v2245_v21 = vmul.f32 %v2244_v0, %v5994_v39  ;;  %s4056_s6 = sld [smem:[#allocation2 + $0x50]] }
 0x623   : > { %2172 = vrot.lane.b32.xlu2 %v2169_v45, %s4247_s19  ;;  %v2288_v50 = vmul.f32 %v2286_v44, %v5694_v20  ;;  %v2289_v31 = vmul.f32 %v2286_v44, %v6037_v6  ;;  %v2211_v45 = vsel %vm2028_vm15, %v2209_v25, %v2210_v53  ;;  %v2287_v25 = vmul.f32 %v2286_v44, %v5994_v39 }
 0x624   : > { %v6083_v40 = vpop.permute.xlu0 %2854  ;;  %v6085_v19 = vpop.permute.xlu1 %2852  ;;  %v2213_v16 = vsel %vm2028_vm15, %v2210_v53, %v2212_v34  ;;  %v2251_v34 = vrot.slane %v2245_v21, 1 }
 0x625   : > { %7121 = vst [vmem:[#allocation84_spill] sm:$0xff] %v6083_v40  ;;  %v6087_v32 = vpop.permute.xlu2 %3057  ;;  %v2294_v24 = vrot.slane %v2288_v50, 1  ;;  %v2296_v11 = vrot.slane %v2289_v31, 1 }
 0x626   : > { %7122 = vst [vmem:[#allocation85_spill] sm:$0xff] %v6085_v19  ;;  %v2363_v19 = vstv %s4024_s7  ;;  %s4007_s7 = sld [smem:[#allocation2 + $0x7]] }
 0x627   : > { %7123 = vst [vmem:[#allocation86_spill] sm:$0xff] %v6087_v32  ;;  %v2255_v32 = vsel %vm2028_vm15, %v2252_v36, %v2254_v33  ;;  %v2293_v33 = vrot.slane %v2287_v25, 1  ;;  %v2365_v0 = vmul.f32 %v2363_v19, %v5694_v20  ;;  %v2364_v21 = vmul.f32 %v2363_v19, %v5994_v39 }
 0x629   : > { %v2295_v31 = vsel %vm2028_vm15, %v2293_v33, %v2294_v24  ;;  %v2370_v33 = vrot.slane %v2364_v21, 2 }
 0x62a   : > { %2214 = vrot.lane.b32.xlu1 %v2211_v45, %s4248_s24  ;;  %2216 = vrot.lane.b32.xlu0 %v2213_v16, %s4248_s24  ;;  %v2297_v45 = vsel %vm2028_vm15, %v2294_v24, %v2296_v11  ;;  %v2405_v16 = vstv %s4026_s8  ;;  %s6262_s8 = sld [smem:[#allocation2 + $0x51]] }
 0x62b   : > { %2258 = vrot.lane.b32.xlu2 %v2255_v32, %s4249_s25  ;;  %v2253_v32 = vsel %vm2028_vm15, %v2251_v34, %v2252_v36  ;;  %v2407_v50 = vmul.f32 %v2405_v16, %v5694_v20  ;;  %v2408_v44 = vmul.f32 %v2405_v16, %v6037_v6  ;;  %v2371_v34 = vrot.slane %v2365_v0, 2 }
 0x62c   : > { %v6098_v35 = vpop.permute.xlu0 %2929  ;;  %v6100_v52 = vpop.permute.xlu1 %2973 }
 0x62d   : > { %7124 = vst [vmem:[#allocation87_spill] sm:$0xff] %v6098_v35  ;;  %v6103_v53 = vpop.permute.xlu2 %3097  ;;  %v2366_v35 = vmul.f32 %v2363_v19, %v6037_v6  ;;  %v2415_v24 = vrot.slane %v2408_v44, 2 }
 0x62e   : > { %7125 = vst [vmem:[#allocation88_spill] sm:$0xff] %v6100_v52  ;;  %v2372_v52 = vsel %vm2315_vm1, %v2370_v33, %v2371_v34 }
 0x62f   : > { %7126 = vst [vmem:[#allocation89_spill] sm:$0xff] %v6103_v53  ;;  %v2413_v53 = vrot.slane %v2407_v50, 2 }
 0x632   : > { %2300 = vrot.lane.b32.xlu1 %v2297_v45, %s4250_s27  ;;  %2256 = vrot.lane.b32.xlu0 %v2253_v32, %s4249_s25  ;;  %v2373_v45 = vrot.slane %v2366_v35, 2  ;;  %v2447_v32 = vstv %s4028_s9  ;;  %v2406_v35 = vmul.f32 %v2405_v16, %v5994_v39  ;;  %s4060_s9 = sld [smem:[#allocation2 + $0x52]] }
 0x633   : > { %2298 = vrot.lane.b32.xlu2 %v2295_v31, %s4250_s27  ;;  %v2449_v31 = vmul.f32 %v2447_v32, %v5694_v20  ;;  %v2450_v19 = vmul.f32 %v2447_v32, %v6037_v6  ;;  %v2448_v44 = vmul.f32 %v2447_v32, %v5994_v39 }
 0x634   : > { %v6116_v36 = vpop.permute.xlu0 %3015  ;;  %v6118_v11 = vpop.permute.xlu1 %3013  ;;  %v2374_v40 = vsel %vm2315_vm1, %v2371_v34, %v2373_v45  ;;  %v2412_v33 = vrot.slane %v2406_v35, 2 }
 0x635   : > { %7127 = vst [vmem:[#allocation90_spill] sm:$0xff] %v6116_v36  ;;  %v6120_v25 = vpop.permute.xlu2 %3217  ;;  %v2455_v34 = vrot.slane %v2449_v31, 2  ;;  %v2457_v45 = vrot.slane %v2450_v19, 2 }
 0x636   : > { %7128 = vst [vmem:[#allocation91_spill] sm:$0xff] %v6118_v11  ;;  %v2454_v11 = vrot.slane %v2448_v44, 2  ;;  %v2414_v16 = vsel %vm2315_vm1, %v2412_v33, %v2413_v53 }
 0x637   : > { %7129 = vst [vmem:[#allocation92_spill] sm:$0xff] %v6120_v25  ;;  %v2416_v25 = vsel %vm2315_vm1, %v2413_v53, %v2415_v24 }
 0x638   : > { %v2456_v32 = vsel %vm2315_vm1, %v2454_v11, %v2455_v34 }
 0x63a   : > { %2375 = vrot.lane.b32.xlu1 %v2372_v52, %s4245_s13  ;;  %2377 = vrot.lane.b32.xlu0 %v2374_v40, %s4245_s13  ;;  %v2489_v52 = vstv %s4030_s10  ;;  %v2458_v40 = vsel %vm2315_vm1, %v2455_v34, %v2457_v45  ;;  %s4008_s10 = sld [smem:[#allocation2 + $0x38]] }
 0x63b   : > { %2419 = vrot.lane.b32.xlu2 %v2416_v25, %s4246_s14  ;;  %v2491_v24 = vmul.f32 %v2489_v52, %v5694_v20  ;;  %v2531_v25 = vstv %s4032_s11  ;;  %v2490_v35 = vmul.f32 %v2489_v52, %v5994_v39  ;;  %s6288_s11 = sld [smem:[#allocation2 + $0x53]] }
 0x63c   : > { %v6131_v0 = vpop.permute.xlu0 %3055  ;;  %v6133_v50 = vpop.permute.xlu1 %3099  ;;  %v2533_v31 = vmul.f32 %v2531_v25, %v5694_v20  ;;  %v2534_v19 = vmul.f32 %v2531_v25, %v6037_v6 }
 0x63d   : > { %7130 = vst [vmem:[#allocation93_spill] sm:$0xff] %v6131_v0  ;;  %v6136_v21 = vpop.permute.xlu2 %3257  ;;  %v2492_v0 = vmul.f32 %v2489_v52, %v6037_v6  ;;  %v2497_v33 = vrot.slane %v2491_v24, 2  ;;  %v2496_v34 = vrot.slane %v2490_v35, 2 }
 0x63e   : > { %7131 = vst [vmem:[#allocation94_spill] sm:$0xff] %v6133_v50  ;;  %v2541_v11 = vrot.slane %v2534_v19, 2 }
 0x63f   : > { %7132 = vst [vmem:[#allocation95_spill] sm:$0xff] %v6136_v21  ;;  %v2539_v21 = vrot.slane %v2533_v31, 2  ;;  %v2498_v50 = vsel %vm2315_vm1, %v2496_v34, %v2497_v33 }
 0x642   : > { %2461 = vrot.lane.b32.xlu1 %v2458_v40, %s4247_s19  ;;  %2417 = vrot.lane.b32.xlu0 %v2414_v16, %s4246_s14  ;;  %v2499_v40 = vrot.slane %v2492_v0, 2  ;;  %v2573_v16 = vstv %s4034_s12  ;;  %v2532_v0 = vmul.f32 %v2531_v25, %v5994_v39  ;;  %s6315_s12 = sld [smem:[#allocation2 + $0x55]] }
 0x643   : > { %2459 = vrot.lane.b32.xlu2 %v2456_v32, %s4247_s19  ;;  %v2575_v52 = vmul.f32 %v2573_v16, %v5694_v20  ;;  %v2574_v19 = vmul.f32 %v2573_v16, %v5994_v39 }
 0x644   : > { %v6149_v44 = vpop.permute.xlu0 %3141  ;;  %v6151_v53 = vpop.permute.xlu1 %3139  ;;  %v2500_v32 = vsel %vm2315_vm1, %v2497_v33, %v2499_v40  ;;  %v2538_v34 = vrot.slane %v2532_v0, 2 }
 0x645   : > { %7133 = vst [vmem:[#allocation96_spill] sm:$0xff] %v6149_v44  ;;  %v6153_v45 = vpop.permute.xlu2 %3343  ;;  %v2576_v44 = vmul.f32 %v2573_v16, %v6037_v6  ;;  %v2581_v33 = vrot.slane %v2575_v52, 2 }
 0x646   : > { %7134 = vst [vmem:[#allocation97_spill] sm:$0xff] %v6151_v53  ;;  %v2650_v53 = vstv %s4038_s17  ;;  %s6320_s17 = sld [smem:[#allocation2 + $0x56]] }
 0x647   : > { %7135 = vst [vmem:[#allocation98_spill] sm:$0xff] %v6153_v45  ;;  %v2542_v45 = vsel %vm2315_vm1, %v2539_v21, %v2541_v11  ;;  %v2583_v40 = vrot.slane %v2576_v44, 2  ;;  %v2692_v11 = vstv %s4040_s18  ;;  %v2652_v25 = vmul.f32 %v2650_v53, %v5694_v20  ;;  %s4070_s18 = sld [smem:[#allocation2 + $0x57]] }
 0x648   : > { %v2694_v44 = vmul.f32 %v2692_v11, %v5694_v20  ;;  %v2695_v52 = vmul.f32 %v2692_v11, %v6037_v6  ;;  %v2651_v0 = vmul.f32 %v2650_v53, %v5994_v39 }
 0x64a   : > { %2501 = vrot.lane.b32.xlu1 %v2498_v50, %s4248_s24  ;;  %2503 = vrot.lane.b32.xlu0 %v2500_v32, %s4248_s24  ;;  %v2580_v50 = vrot.slane %v2574_v19, 2  ;;  %v2584_v32 = vsel %vm2315_vm1, %v2581_v33, %v2583_v40 }
 0x64b   : > { %2545 = vrot.lane.b32.xlu2 %v2542_v45, %s4249_s25  ;;  %v2540_v45 = vsel %vm2315_vm1, %v2538_v34, %v2539_v21  ;;  %v2658_v34 = vrot.slane %v2652_v25, 3  ;;  %v2693_v25 = vmul.f32 %v2692_v11, %v5994_v39 }
 0x64c   : > { %v6164_v24 = vpop.permute.xlu0 %3215  ;;  %v6166_v31 = vpop.permute.xlu1 %3259  ;;  %v2582_v16 = vsel %vm2315_vm1, %v2580_v50, %v2581_v33  ;;  %v2702_v33 = vrot.slane %v2695_v52, 3  ;;  %v2657_v50 = vrot.slane %v2651_v0, 3 }
 0x64d   : > { %7136 = vst [vmem:[#allocation99_spill] sm:$0xff] %v6164_v24  ;;  %v6169_v35 = vpop.permute.xlu2 %3383  ;;  %v2653_v24 = vmul.f32 %v2650_v53, %v6037_v6 }
 0x64e   : > { %7137 = vst [vmem:[#allocation100_spill] sm:$0xff] %v6166_v31  ;;  %v2659_v31 = vsel %vm2602_vm2, %v2657_v50, %v2658_v34 }
 0x64f   : > { %7138 = vst [vmem:[#allocation101_spill] sm:$0xff] %v6169_v35  ;;  %v2700_v35 = vrot.slane %v2694_v44, 3 }
 0x652   : > { %2587 = vrot.lane.b32.xlu1 %v2584_v32, %s4250_s27  ;;  %2543 = vrot.lane.b32.xlu0 %v2540_v45, %s4249_s25  ;;  %v2660_v32 = vrot.slane %v2653_v24, 3  ;;  %v2734_v45 = vstv %s4042_s20  ;;  %v2703_v24 = vsel %vm2602_vm2, %v2700_v35, %v2702_v33  ;;  %v2699_v33 = vrot.slane %v2693_v25, 3  ;;  %s6342_s20 = sld [smem:[#allocation2 + $0xe]] }
 0x653   : > { %2585 = vrot.lane.b32.xlu2 %v2582_v16, %s4250_s27  ;;  %v2736_v16 = vmul.f32 %v2734_v45, %v5694_v20  ;;  %v2737_v53 = vmul.f32 %v2734_v45, %v6037_v6  ;;  %v2735_v0 = vmul.f32 %v2734_v45, %v5994_v39  ;;  %v1841_v25 = vstv %s6197_s28  ;;  %s6385_s28 = sld [smem:[#allocation2 + $0x5a]] }
 0x654   : > { %v6182_v19 = vpop.permute.xlu0 %3301  ;;  %v6184_v21 = vpop.permute.xlu1 %3299  ;;  %v2661_v36 = vsel %vm2602_vm2, %v2658_v34, %v2660_v32  ;;  %v1842_v49 = vmul.f32 %v1841_v25, %v5675_v57 }
 0x655   : > { %7139 = vst [vmem:[#allocation102_spill] sm:$0xff] %v6182_v19  ;;  %v6186_v40 = vpop.permute.xlu2 %1901  ;;  %v2742_v32 = vrot.slane %v2736_v16, 3  ;;  %v2741_v50 = vrot.slane %v2735_v0, 3  ;;  %v1846_v0 = vstv %s6192_s26  ;;  %s6366_s26 = sld [smem:[#allocation2 + $0x59]] }
 0x656   : > { %7140 = vst [vmem:[#allocation103_spill] sm:$0xff] %v6184_v21 }
 0x657   : > { %v2743_v45 = vsel %vm2602_vm2, %v2741_v50, %v2742_v32 }
 0x65a   : > { %2662 = vrot.lane.b32.xlu1 %v2659_v31, %s4245_s13  ;;  %2664 = vrot.lane.b32.xlu0 %v2661_v36, %s4245_s13  ;;  %v2744_v31 = vrot.slane %v2737_v53, 3  ;;  %v2776_v36 = vstv %s4044_s22  ;;  %s4072_s22 = sld [smem:[#allocation2 + $0x58]] }
 0x65b   : > { %2706 = vrot.lane.b32.xlu2 %v2703_v24, %s4246_s14  ;;  %v2778_v21 = vmul.f32 %v2776_v36, %v5694_v20  ;;  %v2701_v24 = vsel %vm2602_vm2, %v2699_v33, %v2700_v35  ;;  %v1848_v35 = vmul.f32 %v1846_v0, %v5694_v20 }
 0x65c   : > { %v6201_v44 = vpop.permute.xlu0 %3341  ;;  %v6203_v52 = vpop.permute.xlu1 %3385  ;;  %v2745_v11 = vsel %vm2602_vm2, %v2742_v32, %v2744_v31  ;;  %v2777_v31 = vmul.f32 %v2776_v36, %v5994_v39 }
 0x65d   : > { %7141 = vst [vmem:[#allocation104_spill] sm:$0xff] %v6201_v44  ;;  %v6206_v34 = vpop.permute.xlu2 %1927  ;;  %v2818_v44 = vstv %s4046_s23  ;;  %v2784_v50 = vrot.slane %v2778_v21, 3  ;;  %v2863_v21 = vmul.f32 %v2860_v29, %v6037_v6  ;;  %s4022_s23 = sld [smem:[#allocation2 + $0x3f]] }
 0x65e   : > { %7142 = vst [vmem:[#allocation105_spill] sm:$0xff] %v6203_v52  ;;  %v2779_v52 = vmul.f32 %v2776_v36, %v6037_v6  ;;  %v2820_v16 = vmul.f32 %v2818_v44, %v5694_v20  ;;  %v2821_v53 = vmul.f32 %v2818_v44, %v6037_v6  ;;  %v1847_v36 = vmul.f32 %v1846_v0, %v5994_v39 }
 0x660   : > { %v2826_v7 = vrot.slane %v2820_v16, 3  ;;  %v2828_v62 = vrot.slane %v2821_v53, 3  ;;  %v2819_v16 = vmul.f32 %v2818_v44, %v5994_v39 }
 0x662   : > { %2748 = vrot.lane.b32.xlu1 %v2745_v11, %s4247_s19  ;;  %2704 = vrot.lane.b32.xlu0 %v2701_v24, %s4246_s14  ;;  %v2786_v11 = vrot.slane %v2779_v52, 3  ;;  %v1843_v24 = vmul.f32 %v1841_v25, %v5672_v2  ;;  %v2829_v52 = vsel %vm2602_vm2, %v2826_v7, %v2828_v62  ;;  %v1849_v25 = vadd.f32 %v1847_v36, %v1842_v49 }
 0x663   : > { %2746 = vrot.lane.b32.xlu2 %v2743_v45, %s4247_s19  ;;  %v2783_v45 = vrot.slane %v2777_v31, 3  ;;  %v2868_v62 = vrot.slane %v2862_v41, 3 }
 0x664   : > { %v6222_v33 = vpop.permute.xlu0 %3427  ;;  %v6224_v19 = vpop.permute.xlu1 %3425  ;;  %v1850_v51 = vadd.f32 %v1848_v35, %v1843_v24  ;;  %v2861_v35 = vmul.f32 %v2860_v29, %v5994_v39 }
 0x665   : > { %7143 = vst [vmem:[#allocation106_spill] sm:$0xff] %v6222_v33  ;;  %v6226_v32 = vpop.permute.xlu2 %1985  ;;  %v2785_v33 = vsel %vm2602_vm2, %v2783_v45, %v2784_v50  ;;  %v2870_v45 = vrot.slane %v2863_v21, 3 }
 0x666   : > { %7144 = vst [vmem:[#allocation107_spill] sm:$0xff] %v6224_v19  ;;  %v2787_v19 = vsel %vm2602_vm2, %v2784_v50, %v2786_v11  ;;  %v1865_v53 = vadd.f32 %v5806_v17, %v1850_v51  ;;  %v2937_v50 = vstv %s4052_s30  ;;  %v1864_v11 = vadd.f32 %v5843_v38, %v1849_v25  ;;  %s6411_s30 = sld [smem:[#allocation2 + $0x5c]] }
 0x667   : > { %v2867_v49 = vrot.slane %v2861_v35, 3  ;;  %v2938_v36 = vmul.f32 %v2937_v50, %v5994_v39  ;;  %v2939_v29 = vmul.f32 %v2937_v50, %v5694_v20  ;;  %v2871_v38 = vsel %vm2602_vm2, %v2868_v62, %v2870_v45 }
 0x668   : > { %v2979_v25 = vstv %s4054_s5  ;;  %v2940_v41 = vmul.f32 %v2937_v50, %v6037_v6  ;;  %v3021_v45 = vstv %s4056_s6  ;;  %s4081_s5 = sld [smem:[#allocation2 + $0x2c]] }
 0x669   : > { %v2982_v21 = vmul.f32 %v2979_v25, %v6037_v6  ;;  %v2945_v35 = vrot.slane %v2939_v29, 4  ;;  %v3022_v29 = vmul.f32 %v3021_v45, %v5994_v39  ;;  %s6448_s6 = sld [smem:[#allocation2 + $0x15]] }
 0x66a   : > { %2788 = vrot.lane.b32.xlu1 %v2785_v33, %s4248_s24  ;;  %2790 = vrot.lane.b32.xlu0 %v2787_v19, %s4248_s24  ;;  %v2825_v19 = vrot.slane %v2819_v16, 3 }
 0x66b   : > { %2832 = vrot.lane.b32.xlu2 %v2829_v52, %s4249_s25 }
 0x66c   : > { %v1874_v0 = vpop.permute.xlu0 %1873  ;;  %v1872_v31 = vpop.permute.xlu1 %1871  ;;  %v2827_v51 = vsel %vm2602_vm2, %v2825_v19, %v2826_v7  ;;  %v2981_v7 = vmul.f32 %v2979_v25, %v5694_v20 }
 0x66d   : > { %v6243_v24 = vpop.permute.xlu2 %2011  ;;  %v1878_v33 = vadd.f32 %v1874_v0, %v1865_v53  ;;  %v1877_v17 = vadd.f32 %v1872_v31, %v1864_v11  ;;  %v2944_v31 = vrot.slane %v2938_v36, 4 }
 0x66e   : > { %v2987_v19 = vrot.slane %v2981_v7, 4 }
 0x66f   : > { %v1893_v44 = vadd.f32 %v5845_v1, %v1878_v33  ;;  %v2869_v1 = vsel %vm2602_vm2, %v2867_v49, %v2868_v62  ;;  %v1892_v16 = vadd.f32 %v5818_v61, %v1877_v17  ;;  %v2947_v62 = vrot.slane %v2940_v41, 4 }
 0x670   : > { %v3023_v61 = vmul.f32 %v3021_v45, %v5694_v20  ;;  %v3024_v17 = vmul.f32 %v3021_v45, %v6037_v6  ;;  %v2946_v49 = vsel %vm2889_vm3, %v2944_v31, %v2945_v35  ;;  %v3105_v45 = vstv %s4060_s9  ;;  %s4036_s9 = sld [smem:[#allocation2 + $0x46]] }
 0x671   : > { %v1906_v52 = vadd.f32 %v6186_v40, %v1893_v44  ;;  %v2989_v44 = vrot.slane %v2982_v21, 4 }
 0x672   : > { %2874 = vrot.lane.b32.xlu1 %v2871_v38, %s4250_s27  ;;  %2830 = vrot.lane.b32.xlu0 %v2827_v51, %s4249_s25  ;;  %v2948_v51 = vsel %vm2889_vm3, %v2945_v35, %v2947_v62  ;;  %v3029_v41 = vrot.slane %v3023_v61, 4  ;;  %v3028_v35 = vrot.slane %v3022_v29, 4  ;;  %v3063_v62 = vstv %s6262_s8  ;;  %s4082_s8 = sld [smem:[#allocation2 + $0x5d]] }
 0x673   : > { %2872 = vrot.lane.b32.xlu2 %v2869_v1, %s4250_s27  ;;  %v1921_v40 = vadd.f32 %v5860_v55, %v1906_v52  ;;  %v2021_v52 = vstv %s4007_s7  ;;  %v2990_v38 = vsel %vm2889_vm3, %v2987_v19, %v2989_v44  ;;  %v3031_v1 = vrot.slane %v3024_v17, 4  ;;  %s4083_s7 = sld [smem:[#allocation2 + $0x2d]] }
 0x674   : > { %v1900_v53 = vpop.permute.xlu0 %1899  ;;  %v1930_v0 = vpop.permute.xlu1 %1929  ;;  %v2038_v44 = vstv %s4008_s10  ;;  %v3065_v29 = vmul.f32 %v3063_v62, %v5694_v20  ;;  %s6480_s10 = sld [smem:[#allocation2 + $0x5e]] }
 0x675   : > { %v6260_v50 = vpop.permute.xlu2 %2132  ;;  %v1905_v11 = vadd.f32 %v1900_v53, %v1892_v16  ;;  %v1934_v33 = vadd.f32 %v1930_v0, %v1921_v40  ;;  %v6279_v40 = vmul.f32 %v2021_v52, %v5672_v2  ;;  %v2024_v53 = vmul.f32 %v2021_v52, %v5709_v58 }
 0x677   : > { %v1920_v55 = vadd.f32 %v5862_v22, %v1905_v11  ;;  %v2980_v22 = vmul.f32 %v2979_v25, %v5994_v39  ;;  %v1949_v7 = vadd.f32 %v5831_v46, %v1934_v33  ;;  %v3032_v11 = vsel %vm2889_vm3, %v3029_v41, %v3031_v1 }
 0x678   : > { %v2030_v61 = vrot.slane %v6279_v40, 1  ;;  %v2032_v17 = vrot.slane %v2024_v53, 1  ;;  %v2022_v1 = vmul.f32 %v2021_v52, %v5675_v57  ;;  %v3071_v52 = vrot.slane %v3065_v29, 4 }
 0x679   : > { %v1933_v36 = vadd.f32 %v6206_v34, %v1920_v55  ;;  %v2986_v25 = vrot.slane %v2980_v22, 4  ;;  %v2040_v55 = vmul.f32 %v2038_v44, %v5694_v20  ;;  %v3064_v22 = vmul.f32 %v3063_v62, %v5994_v39 }
 0x67a   : > { %2949 = vrot.lane.b32.xlu1 %v2946_v49, %s4245_s13  ;;  %2951 = vrot.lane.b32.xlu0 %v2948_v51, %s4245_s13  ;;  %v2041_v49 = vmul.f32 %v2038_v44, %v6037_v6 }
 0x67b   : > { %2993 = vrot.lane.b32.xlu2 %v2990_v38, %s4246_s14  ;;  %v1948_v34 = vadd.f32 %v5876_v43, %v1933_v36  ;;  %v3030_v43 = vsel %vm2889_vm3, %v3028_v35, %v3029_v41  ;;  %v2988_v51 = vsel %vm2889_vm3, %v2986_v25, %v2987_v19  ;;  %v6300_v38 = vmul.f32 %v3105_v45, %v5694_v20 }
 0x67c   : > { %v1958_v21 = vpop.permute.xlu0 %1957  ;;  %v1956_v16 = vpop.permute.xlu1 %1955  ;;  %v3108_v41 = vmul.f32 %v3105_v45, %v6037_v6  ;;  %v2048_v40 = vrot.slane %v2041_v49, 1 }
 0x67d   : > { %v6282_v0 = vpop.permute.xlu2 %2172  ;;  %v1962_v31 = vadd.f32 %v1958_v21, %v1949_v7  ;;  %v1961_v33 = vadd.f32 %v1956_v16, %v1948_v34  ;;  %v2033_v34 = vsel %vm2028_vm15, %v2030_v61, %v2032_v17  ;;  %v2046_v16 = vrot.slane %v2040_v55, 1 }
 0x67e   : > { %v3113_v25 = vrot.slane %v6300_v38, 4  ;;  %v3147_v17 = vstv %s6288_s11  ;;  %s6506_s11 = sld [smem:[#allocation2 + $0x5f]] }
 0x67f   : > { %v1977_v46 = vadd.f32 %v5878_v27, %v1962_v31  ;;  %v3066_v27 = vmul.f32 %v3063_v62, %v6037_v6  ;;  %v1976_v19 = vadd.f32 %v5847_v54, %v1961_v33  ;;  %v3115_v54 = vrot.slane %v3108_v41, 4 }
 0x680   : > { %v2049_v55 = vsel %vm2028_vm15, %v2046_v16, %v2048_v40  ;;  %v3149_v49 = vmul.f32 %v3147_v17, %v5694_v20  ;;  %v3148_v40 = vmul.f32 %v3147_v17, %v5994_v39 }
 0x681   : > { %v1990_v36 = vadd.f32 %v6226_v32, %v1977_v46  ;;  %v2029_v46 = vrot.slane %v2022_v1, 1 }
 0x682   : > { %3035 = vrot.lane.b32.xlu1 %v3032_v11, %s4247_s19  ;;  %2991 = vrot.lane.b32.xlu0 %v2988_v51, %s4246_s14  ;;  %v3073_v11 = vrot.slane %v3066_v27, 4  ;;  %v3150_v51 = vmul.f32 %v3147_v17, %v6037_v6  ;;  %v3116_v27 = vsel %vm2889_vm3, %v3113_v25, %v3115_v54 }
 0x683   : > { %3033 = vrot.lane.b32.xlu2 %v3030_v43, %s4247_s19  ;;  %v2005_v32 = vadd.f32 %v5893_v23, %v1990_v36  ;;  %v2039_v23 = vmul.f32 %v2038_v44, %v5994_v39  ;;  %v3070_v43 = vrot.slane %v3064_v22, 4  ;;  %v2031_v38 = vsel %vm2028_vm15, %v2029_v46, %v2030_v61 }
 0x684   : > { %v1984_v7 = vpop.permute.xlu0 %1983  ;;  %v2014_v21 = vpop.permute.xlu1 %2013  ;;  %v3074_v44 = vsel %vm2889_vm3, %v3071_v52, %v3073_v11 }
 0x685   : > { %v6309_v53 = vpop.permute.xlu2 %2258  ;;  %v1989_v31 = vadd.f32 %v1984_v7, %v1976_v19  ;;  %v2018_v35 = vadd.f32 %v2014_v21, %v2005_v32  ;;  %v3072_v29 = vsel %vm2889_vm3, %v3070_v43, %v3071_v52  ;;  %v2045_v41 = vrot.slane %v2039_v23, 1 }
 0x686   : > { %v3106_v19 = vmul.f32 %v3105_v45, %v5994_v39  ;;  %v3157_v21 = vrot.slane %v3150_v51, 4  ;;  %v3223_v45 = vstv %s6315_s12  ;;  %v3265_v23 = vstv %s6320_s17  ;;  %s4087_s12 = sld [smem:[#allocation2 + $0x2f]] }
 0x687   : > { %v2004_v62 = vadd.f32 %v5895_v37, %v1989_v31  ;;  %v2037_v33 = vadd.f32 %v2033_v34, %v2018_v35  ;;  %v2047_v22 = vsel %vm2028_vm15, %v2045_v41, %v2046_v16  ;;  %v3155_v34 = vrot.slane %v3149_v49, 4  ;;  %s4089_s17 = sld [smem:[#allocation2 + $0x30]] }
 0x688   : > { %v3112_v11 = vrot.slane %v3106_v19, 4  ;;  %v3154_v16 = vrot.slane %v3148_v40, 4  ;;  %v3225_v46 = vmul.f32 %v3223_v45, %v5694_v20  ;;  %v3226_v17 = vmul.f32 %v3223_v45, %v6037_v6 }
 0x689   : > { %v2017_v36 = vadd.f32 %v6243_v24, %v2004_v62  ;;  %v2053_v37 = vadd.f32 %v2049_v55, %v2037_v33  ;;  %v3158_v54 = vsel %vm2889_vm3, %v3155_v34, %v3157_v21  ;;  %v3268_v55 = vmul.f32 %v3265_v23, %v6037_v6 }
 0x68a   : > { %3075 = vrot.lane.b32.xlu1 %v3072_v29, %s4248_s24  ;;  %3077 = vrot.lane.b32.xlu0 %v3074_v44, %s4248_s24  ;;  %v3114_v33 = vsel %vm2889_vm3, %v3112_v11, %v3113_v25  ;;  %v3231_v29 = vrot.slane %v3225_v46, 5  ;;  %v3307_v41 = vstv %s4070_s18  ;;  %s4050_s18 = sld [smem:[#allocation2 + $0x4d]] }
 0x68b   : > { %3119 = vrot.lane.b32.xlu2 %v3116_v27, %s4249_s25  ;;  %v2075_v1 = vadd.f32 %v5864_v59, %v2053_v37  ;;  %v2036_v24 = vadd.f32 %v2031_v38, %v2017_v36  ;;  %v3233_v38 = vrot.slane %v3226_v17, 5  ;;  %v3309_v19 = vmul.f32 %v3307_v41, %v5694_v20 }
 0x68c   : > { %v2091_v32 = vpop.permute.xlu0 %2090  ;;  %v2089_v7 = vpop.permute.xlu1 %2088 }
 0x68d   : > { %v6334_v31 = vpop.permute.xlu2 %2298  ;;  %v2095_v61 = vadd.f32 %v2091_v32, %v2075_v1  ;;  %v2052_v35 = vadd.f32 %v2047_v22, %v2036_v24  ;;  %v3275_v24 = vrot.slane %v3268_v55, 5  ;;  %v3266_v22 = vmul.f32 %v3265_v23, %v5994_v39 }
 0x68e   : > { %v3234_v21 = vsel %vm1808_vm14, %v3231_v29, %v3233_v38  ;;  %v2325_v55 = vstv %s4022_s23 }
 0x68f   : > { %v2117_v59 = vadd.f32 %v5911_v4, %v2095_v61  ;;  %v2074_v52 = vadd.f32 %v5909_v26, %v2052_v35  ;;  %v3156_v26 = vsel %vm2889_vm3, %v3154_v16, %v3155_v34  ;;  %v3267_v4 = vmul.f32 %v3265_v23, %v5694_v20 }
 0x690   : > { %v3272_v16 = vrot.slane %v3266_v22, 5 }
 0x691   : > { %v2094_v62 = vadd.f32 %v2089_v7, %v2074_v52  ;;  %v2137_v43 = vadd.f32 %v6260_v50, %v2117_v59  ;;  %v3224_v50 = vmul.f32 %v3223_v45, %v5994_v39  ;;  %v3273_v1 = vrot.slane %v3267_v4, 5 }
 0x692   : > { %3161 = vrot.lane.b32.xlu1 %v3158_v54, %s4250_s27  ;;  %3117 = vrot.lane.b32.xlu0 %v3114_v33, %s4249_s25  ;;  %v2308_v7 = vstv %s6342_s20  ;;  %v3308_v59 = vmul.f32 %v3307_v41, %v5994_v39  ;;  %s6571_s20 = sld [smem:[#allocation2 + $0x61]] }
 0x693   : > { %3159 = vrot.lane.b32.xlu2 %v3156_v26, %s4250_s27  ;;  %v2116_v49 = vadd.f32 %v5880_v14, %v2094_v62  ;;  %v2159_v25 = vadd.f32 %v5926_v30, %v2137_v43  ;;  %v3310_v14 = vmul.f32 %v3307_v41, %v6037_v6  ;;  %v3230_v32 = vrot.slane %v3224_v50, 5 }
 0x694   : > { %v2131_v51 = vpop.permute.xlu0 %2130  ;;  %v2175_v36 = vpop.permute.xlu1 %2174  ;;  %v3276_v61 = vsel %vm1808_vm14, %v3273_v1, %v3275_v24  ;;  %v2311_v62 = vmul.f32 %v2308_v7, %v5709_v58  ;;  %v3314_v43 = vrot.slane %v3308_v59, 5  ;;  %v3274_v17 = vsel %vm1808_vm14, %v3272_v16, %v3273_v1 }
 0x695   : > { %v6356_v44 = vpop.permute.xlu2 %2419  ;;  %v2136_v37 = vadd.f32 %v2131_v51, %v2116_v49  ;;  %v2179_v27 = vadd.f32 %v2175_v36, %v2159_v25  ;;  %v3232_v34 = vsel %vm1808_vm14, %v3230_v32, %v3231_v29  ;;  %v3317_v35 = vrot.slane %v3310_v14, 5 }
 0x696   : > { %v2327_v50 = vmul.f32 %v2325_v55, %v5694_v20  ;;  %v2328_v51 = vmul.f32 %v2325_v55, %v6037_v6  ;;  %v2319_v29 = vrot.slane %v2311_v62, 2  ;;  %v2309_v41 = vmul.f32 %v2308_v7, %v5675_v57 }
 0x697   : > { %v2158_v30 = vadd.f32 %v5928_v56, %v2136_v37  ;;  %v3315_v56 = vrot.slane %v3309_v19, 5  ;;  %v2201_v52 = vadd.f32 %v5897_v28, %v2179_v27  ;;  %v3349_v28 = vstv %s4072_s22  ;;  %s4078_s22 = sld [smem:[#allocation2 + $0x5b]] }
 0x698   : > { %v3351_v25 = vmul.f32 %v3349_v28, %v5694_v20  ;;  %v3391_v37 = vstv %s6366_s26  ;;  %v3350_v24 = vmul.f32 %v3349_v28, %v5994_v39  ;;  %v2333_v32 = vrot.slane %v2327_v50, 2 }
 0x699   : > { %v2178_v40 = vadd.f32 %v6282_v0, %v2158_v30  ;;  %v6376_v0 = vmul.f32 %v2308_v7, %v5672_v2  ;;  %v3318_v33 = vsel %vm1808_vm14, %v3315_v56, %v3317_v35  ;;  %v3316_v49 = vsel %vm1808_vm14, %v3314_v43, %v3315_v56 }
 0x69a   : > { %3235 = vrot.lane.b32.xlu1 %v3232_v34, %s4245_s13  ;;  %3237 = vrot.lane.b32.xlu0 %v3234_v21, %s4245_s13  ;;  %v3393_v27 = vmul.f32 %v3391_v37, %v5694_v20  ;;  %v3394_v38 = vmul.f32 %v3391_v37, %v6037_v6  ;;  %v3357_v30 = vrot.slane %v3351_v25, 5  ;;  %v2335_v22 = vrot.slane %v2328_v51, 2 }
 0x69b   : > { %3279 = vrot.lane.b32.xlu2 %v3276_v61, %s4246_s14  ;;  %v2200_v11 = vadd.f32 %v5942_v60, %v2178_v40  ;;  %v2317_v4 = vrot.slane %v6376_v0, 2  ;;  %v3433_v0 = vstv %s6385_s28  ;;  %s6663_s28 = scalar_lea.vmem %s6898_s4, %s4093_s21 }
 0x69c   : > { %v2217_v45 = vpop.permute.xlu0 %2216  ;;  %v2215_v54 = vpop.permute.xlu1 %2214  ;;  %v3399_v56 = vrot.slane %v3393_v27, 5  ;;  %v3401_v35 = vrot.slane %v3394_v38, 5  ;;  %v3436_v16 = vmul.f32 %v3433_v0, %v6037_v6  ;;  %v3490_v27 = vstv %s6407_s29 }
 0x69d   : > { %v6378_v46 = vpop.permute.xlu2 %2459  ;;  %v2221_v23 = vadd.f32 %v2217_v45, %v2201_v52  ;;  %v2220_v26 = vadd.f32 %v2215_v54, %v2200_v11  ;;  %v2320_v40 = vsel %vm2315_vm1, %v2317_v4, %v2319_v29  ;;  %v3356_v11 = vrot.slane %v3350_v24, 5 }
 0x69e   : > { %v2336_v45 = vsel %vm2315_vm1, %v2333_v32, %v2335_v22  ;;  %v3435_v54 = vmul.f32 %v3433_v0, %v5694_v20  ;;  %v3443_v51 = vrot.slane %v3436_v16, 5  ;;  %v3491_v22 = vmul.f32 %v3490_v27, %v5675_v57 }
 0x69f   : > { %v2243_v60 = vadd.f32 %v5944_v63, %v2221_v23  ;;  %v3352_v63 = vmul.f32 %v3349_v28, %v6037_v6  ;;  %v2242_v1 = vadd.f32 %v5913_v10, %v2220_v26  ;;  %v2316_v10 = vrot.slane %v2309_v41, 2 }
 0x6a0   : > { %v3358_v62 = vsel %vm1808_vm14, %v3356_v11, %v3357_v30  ;;  %v3441_v50 = vrot.slane %v3435_v54, 5  ;;  %v3510_v41 = vstv %s6411_s30  ;;  %v3497_v11 = vrot.slane %v3491_v22, 6 }
 0x6a1   : > { %v2263_v36 = vadd.f32 %v6309_v53, %v2243_v60  ;;  %v3359_v61 = vrot.slane %v3352_v63, 5  ;;  %v3392_v60 = vmul.f32 %v3391_v37, %v5994_v39 }
 0x6a2   : > { %3321 = vrot.lane.b32.xlu1 %v3318_v33, %s4247_s19  ;;  %3277 = vrot.lane.b32.xlu0 %v3274_v17, %s4246_s14  ;;  %v2318_v17 = vsel %vm2315_vm1, %v2316_v10, %v2317_v4 }
 0x6a3   : > { %3319 = vrot.lane.b32.xlu2 %v3316_v49, %s4247_s19  ;;  %v2285_v53 = vadd.f32 %v5959_v3, %v2263_v36  ;;  %v2326_v3 = vmul.f32 %v2325_v55, %v5994_v39  ;;  %v3360_v33 = vsel %vm1808_vm14, %v3357_v30, %v3359_v61  ;;  %v3434_v36 = vmul.f32 %v3433_v0, %v5994_v39 }
 0x6a4   : > { %v2257_v19 = vpop.permute.xlu0 %2256  ;;  %v2301_v14 = vpop.permute.xlu1 %2300  ;;  %v3398_v37 = vrot.slane %v3392_v60, 5  ;;  %v2595_v60 = vstv %s6448_s6 }
 0x6a5   : > { %v6403_v34 = vpop.permute.xlu2 %2545  ;;  %v2262_v21 = vadd.f32 %v2257_v19, %v2242_v1  ;;  %v2305_v7 = vadd.f32 %v2301_v14, %v2285_v53  ;;  %v2332_v28 = vrot.slane %v2326_v3, 2  ;;  %v3444_v1 = vsel %vm1808_vm14, %v3441_v50, %v3443_v51 }
 0x6a6   : > { %v3440_v53 = vrot.slane %v3434_v36, 5  ;;  %v3400_v24 = vsel %vm1808_vm14, %v3398_v37, %v3399_v56  ;;  %v3512_v19 = vmul.f32 %v3510_v41, %v5694_v20  ;;  %v3574_v51 = vstv %s4083_s7 }
 0x6a7   : > { %v2284_v59 = vadd.f32 %v5961_v48, %v2262_v21  ;;  %v2324_v52 = vadd.f32 %v2320_v40, %v2305_v7  ;;  %v3402_v48 = vsel %vm1808_vm14, %v3399_v56, %v3401_v35  ;;  %v2334_v49 = vsel %vm2315_vm1, %v2332_v28, %v2333_v32 }
 0x6a8   : > { %v3492_v32 = vmul.f32 %v3490_v27, %v5672_v2  ;;  %v3518_v56 = vrot.slane %v3512_v19, 6  ;;  %v3532_v35 = vstv %s4081_s5  ;;  %v3552_v37 = vstv %s4082_s8 }
 0x6a9   : > { %v2304_v23 = vadd.f32 %v6334_v31, %v2284_v59  ;;  %v2340_v43 = vadd.f32 %v2336_v45, %v2324_v52  ;;  %v3533_v54 = vmul.f32 %v3532_v35, %v5675_v57  ;;  %v3534_v16 = vmul.f32 %v3532_v35, %v5672_v2 }
 0x6aa   : > { %3361 = vrot.lane.b32.xlu1 %v3358_v62, %s4248_s24  ;;  %3363 = vrot.lane.b32.xlu0 %v3360_v33, %s4248_s24  ;;  %v3498_v52 = vrot.slane %v3492_v32, 6  ;;  %v3555_v22 = vmul.f32 %v3552_v37, %v6037_v6 }
 0x6ab   : > { %3405 = vrot.lane.b32.xlu2 %v3402_v48, %s4249_s25  ;;  %v2362_v31 = vadd.f32 %v5930_v5, %v2340_v43  ;;  %v2323_v26 = vadd.f32 %v2318_v17, %v2304_v23  ;;  %v3535_v43 = vmul.f32 %v3532_v35, %v5709_v58 }
 0x6ac   : > { %v2378_v55 = vpop.permute.xlu0 %2377  ;;  %v2376_v25 = vpop.permute.xlu1 %2375  ;;  %v3499_v62 = vsel %vm3462_vm4, %v3497_v11, %v3498_v52 }
 0x6ad   : > { %v6428_v4 = vpop.permute.xlu2 %2585  ;;  %v2382_v29 = vadd.f32 %v2378_v55, %v2362_v31  ;;  %v2339_v63 = vadd.f32 %v2334_v49, %v2323_v26  ;;  %v3539_v55 = vrot.slane %v3533_v54, 6 }
 0x6af   : > { %v2404_v38 = vadd.f32 %v5977_v9, %v2382_v29  ;;  %v2361_v5 = vadd.f32 %v5975_v13, %v2339_v63  ;;  %v3442_v9 = vsel %vm1808_vm14, %v3440_v53, %v3441_v50  ;;  %v3493_v13 = vmul.f32 %v3490_v27, %v5709_v58 }
 0x6b0   : > { %v3542_v50 = vrot.slane %v3535_v43, 6  ;;  %v2597_v29 = vmul.f32 %v2595_v60, %v5672_v2  ;;  %v2598_v63 = vmul.f32 %v2595_v60, %v5709_v58  ;;  %v3554_v27 = vmul.f32 %v3552_v37, %v5694_v20 }
 0x6b1   : > { %v2381_v14 = vadd.f32 %v2376_v25, %v2361_v5  ;;  %v2424_v30 = vadd.f32 %v6356_v44, %v2404_v38  ;;  %v3511_v44 = vmul.f32 %v3510_v41, %v5994_v39  ;;  %v3500_v0 = vrot.slane %v3493_v13, 6  ;;  %v7145_v13 = vld [vmem:[#allocation69_spill] sm:$0xff] }
 0x6b2   : > { %3447 = vrot.lane.b32.xlu1 %v3444_v1, %s4250_s27  ;;  %3403 = vrot.lane.b32.xlu0 %v3400_v24, %s4249_s25  ;;  %v3540_v25 = vrot.slane %v3534_v16, 6  ;;  %v2612_v38 = vstv %s4036_s9  ;;  %v3575_v5 = vmul.f32 %v3574_v51, %v5675_v57  ;;  %v2606_v32 = vrot.slane %v2598_v63, 3 }
 0x6b3   : > { %3445 = vrot.lane.b32.xlu2 %v3442_v9, %s4250_s27  ;;  %v2403_v21 = vadd.f32 %v5946_v42, %v2381_v14  ;;  %v2446_v40 = vadd.f32 %v5987_v15, %v2424_v30  ;;  %v3513_v42 = vmul.f32 %v3510_v41, %v6037_v6  ;;  %v3517_v45 = vrot.slane %v3511_v44, 6 }
 0x6b4   : > { %v2418_v7 = vpop.permute.xlu0 %2417  ;;  %v2462_v61 = vpop.permute.xlu1 %2461  ;;  %v3501_v48 = vsel %vm3462_vm4, %v3498_v52, %v3500_v0  ;;  %v6476_v41 = vmul.f32 %v3574_v51, %v5672_v2  ;;  %v2614_v1 = vmul.f32 %v2612_v38, %v5694_v20  ;;  %v2615_v53 = vmul.f32 %v2612_v38, %v6037_v6 }
 0x6b5   : > { %v6450_v10 = vpop.permute.xlu2 %2706  ;;  %v2423_v3 = vadd.f32 %v2418_v7, %v2403_v21  ;;  %v2466_v59 = vadd.f32 %v2462_v61, %v2446_v40  ;;  %v3519_v23 = vsel %vm3462_vm4, %v3517_v45, %v3518_v56  ;;  %v3541_v24 = vsel %vm3462_vm4, %v3539_v55, %v3540_v25  ;;  %v7146_v40 = vld [vmem:[#allocation72_spill] sm:$0xff] }
 0x6b6   : > { %v3543_v19 = vsel %vm3462_vm4, %v3540_v25, %v3542_v50  ;;  %v3553_v14 = vmul.f32 %v3552_v37, %v5994_v39  ;;  %v2604_v30 = vrot.slane %v2597_v29, 3  ;;  %v2596_v9 = vmul.f32 %v2595_v60, %v5675_v57 }
 0x6b7   : > { %v2445_v15 = vadd.f32 %v5989_v12, %v2423_v3  ;;  %v3520_v12 = vrot.slane %v3513_v42, 6  ;;  %v2488_v17 = vadd.f32 %v5963_v18, %v2466_v59  ;;  %v3560_v7 = vrot.slane %v3554_v27, 6 }
 0x6b8   : > { %v3582_v35 = vrot.slane %v6476_v41, 6  ;;  %v2620_v3 = vrot.slane %v2614_v1, 3  ;;  %v2622_v59 = vrot.slane %v2615_v53, 3  ;;  %v3559_v42 = vrot.slane %v3553_v14, 6 }
 0x6b9   : > { %v2465_v33 = vadd.f32 %v6378_v46, %v2445_v15  ;;  %v3521_v36 = vsel %vm3462_vm4, %v3518_v56, %v3520_v12  ;;  %v3581_v56 = vrot.slane %v3575_v5, 6  ;;  %v2607_v15 = vsel %vm2602_vm2, %v2604_v30, %v2606_v32 }
 0x6ba   : > { %3522 = vrot.lane.b32.xlu1 %v3519_v23, %s4245_s13  ;;  %3502 = vrot.lane.b32.xlu0 %v3499_v62, %s4245_s13  ;;  %v3562_v45 = vrot.slane %v3555_v22, 6  ;;  %v2603_v54 = vrot.slane %v2596_v9, 3  ;;  %v2613_v16 = vmul.f32 %v2612_v38, %v5994_v39  ;;  %v7147_v23 = vld [vmem:[#allocation73_spill] sm:$0xff]  ;;  %v3561_v43 = vsel %vm3462_vm4, %v3559_v42, %v3560_v7 }
 0x6bb   : > { %3504 = vrot.lane.b32.xlu2 %v3501_v48, %s4245_s13  ;;  %v2487_v28 = vadd.f32 %v6004_v47, %v2465_v33  ;;  %v3583_v48 = vsel %vm3462_vm4, %v3581_v56, %v3582_v35  ;;  %v2623_v12 = vsel %vm2602_vm2, %v2620_v3, %v2622_v59  ;;  %v7151_v56 = vld [vmem:[#allocation71_spill] sm:$0xff] }
 0x6bc   : > { %v2504_v31 = vpop.permute.xlu0 %2503  ;;  %v2502_v26 = vpop.permute.xlu1 %2501  ;;  %v2605_v25 = vsel %vm2602_vm2, %v2603_v54, %v2604_v30  ;;  %v2619_v50 = vrot.slane %v2613_v16, 3 }
 0x6bd   : > { %v6467_v46 = vpop.permute.xlu2 %2746  ;;  %v2508_v49 = vadd.f32 %v2504_v31, %v2488_v17  ;;  %v2507_v47 = vadd.f32 %v2502_v26, %v2487_v28  ;;  %v3594_v17 = vstv %s6480_s10  ;;  %v3577_v28 = vmul.f32 %v3574_v51, %v5709_v58  ;;  %v7148_v51 = vld [vmem:[#allocation70_spill] sm:$0xff] }
 0x6be   : > { %v3596_v26 = vmul.f32 %v3594_v17, %v5694_v20  ;;  %v3597_v55 = vmul.f32 %v3594_v17, %v6037_v6  ;;  %v3595_v29 = vmul.f32 %v3594_v17, %v5994_v39  ;;  %v2621_v37 = vsel %vm2602_vm2, %v2619_v50, %v2620_v3  ;;  %v7152_v3 = vld [vmem:[#allocation78_spill] sm:$0xff] }
 0x6bf   : > { %v2530_v18 = vadd.f32 %v6006_v8, %v2508_v49  ;;  %v2529_v21 = vadd.f32 %v7145_v13, %v2507_v47  ;;  %v3563_v49 = vsel %vm3462_vm4, %v3560_v7, %v3562_v45  ;;  %v3584_v47 = vrot.slane %v3577_v28, 6 }
 0x6c0   : > { %v3602_v1 = vrot.slane %v3596_v26, 6  ;;  %v3604_v53 = vrot.slane %v3597_v55, 6  ;;  %v3601_v30 = vrot.slane %v3595_v29, 6  ;;  %v3636_v13 = vstv %s6506_s11  ;;  %v7155_v29 = vld [vmem:[#allocation81_spill] sm:$0xff] }
 0x6c1   : > { %v2550_v8 = vadd.f32 %v6403_v34, %v2530_v18  ;;  %v3585_v32 = vsel %vm3462_vm4, %v3582_v35, %v3584_v47  ;;  %v6531_v7 = vmul.f32 %v3636_v13, %v5694_v20 }
 0x6c2   : > { %3524 = vrot.lane.b32.xlu0 %v3521_v36, %s4245_s13  ;;  %3546 = vrot.lane.b32.xlu1 %v3543_v19, %s4246_s14  ;;  %s6494_s13 = sld [smem:[#allocation2 + $0x2e]] }
 0x6c3   : > { %3544 = vrot.lane.b32.xlu2 %v3541_v24, %s4246_s14  ;;  %v2572_v44 = vadd.f32 %v7146_v40, %v2550_v8  ;;  %v7149_v24 = vld [vmem:[#allocation76_spill] sm:$0xff]  ;;  %v7150_v8 = vld [vmem:[#allocation75_spill] sm:$0xff]  ;;  %v3605_v40 = vsel %vm3462_vm4, %v3602_v1, %v3604_v53 }
 0x6c4   : > { %v2544_v34 = vpop.permute.xlu0 %2543  ;;  %v2588_v61 = vpop.permute.xlu1 %2587 }
 0x6c5   : > { %v6496_v52 = vpop.permute.xlu2 %2832  ;;  %v2549_v11 = vadd.f32 %v2544_v34, %v2529_v21  ;;  %v2592_v0 = vadd.f32 %v2588_v61, %v2572_v44  ;;  %v3603_v34 = vsel %vm3462_vm4, %v3601_v30, %v3602_v1  ;;  %v3700_v1 = vstv %s4089_s17 }
 0x6c7   : > { %v2571_v62 = vadd.f32 %v7147_v23, %v2549_v11  ;;  %v2611_v33 = vadd.f32 %v2607_v15, %v2592_v0  ;;  %v3637_v11 = vmul.f32 %v3636_v13, %v5994_v39 }
 0x6c8   : > { %v3616_v27 = vstv %s6494_s13 }
 0x6c9   : > { %v2591_v60 = vadd.f32 %v6428_v4, %v2571_v62  ;;  %v2627_v31 = vadd.f32 %v2623_v12, %v2611_v33  ;;  %v3618_v22 = vmul.f32 %v3616_v27, %v5672_v2  ;;  %v3617_v9 = vmul.f32 %v3616_v27, %v5675_v57  ;;  %v7153_v12 = vld [vmem:[#allocation79_spill] sm:$0xff] }
 0x6ca   : > { %3564 = vrot.lane.b32.xlu0 %v3561_v43, %s4246_s14  ;;  %3586 = vrot.lane.b32.xlu1 %v3583_v48, %s4247_s19  ;;  %v3619_v61 = vmul.f32 %v3616_v27, %v5709_v58  ;;  %v3644_v62 = vrot.slane %v6531_v7, 6  ;;  %v3643_v28 = vrot.slane %v3637_v11, 6 }
 0x6cb   : > { %3566 = vrot.lane.b32.xlu2 %v3563_v49, %s4246_s14  ;;  %v2649_v36 = vadd.f32 %v7148_v51, %v2627_v31  ;;  %v2610_v4 = vadd.f32 %v2605_v25, %v2591_v60  ;;  %s4049_s14 = sld [smem:[#allocation2 + $0x1c]]  ;;  %v3624_v15 = vrot.slane %v3618_v22, 6  ;;  %v3623_v23 = vrot.slane %v3617_v9, 6 }
 0x6cc   : > { %v2665_v63 = vpop.permute.xlu0 %2664  ;;  %v2663_v18 = vpop.permute.xlu1 %2662  ;;  %v3626_v33 = vrot.slane %v3619_v61, 6  ;;  %v3639_v60 = vmul.f32 %v3636_v13, %v6037_v6  ;;  %v3645_v26 = vsel %vm3462_vm4, %v3643_v28, %v3644_v62  ;;  %v2899_v9 = vstv %s4050_s18 }
 0x6cd   : > { %v6520_v38 = vpop.permute.xlu2 %2872  ;;  %v2669_v5 = vadd.f32 %v2665_v63, %v2649_v36  ;;  %v2626_v41 = vadd.f32 %v2621_v37, %v2610_v4  ;;  %v3625_v31 = vsel %vm3462_vm4, %v3623_v23, %v3624_v15  ;;  %v7154_v36 = vld [vmem:[#allocation74_spill] sm:$0xff]  ;;  %v3701_v13 = vmul.f32 %v3700_v1, %v5675_v57 }
 0x6ce   : > { %v3627_v25 = vsel %vm3462_vm4, %v3624_v15, %v3626_v33 }
 0x6cf   : > { %v2691_v19 = vadd.f32 %v7149_v24, %v2669_v5  ;;  %v2648_v14 = vadd.f32 %v7150_v8, %v2626_v41  ;;  %v3646_v5 = vrot.slane %v3639_v60, 6  ;;  %v3707_v23 = vrot.slane %v3701_v13, 6 }
 0x6d1   : > { %v2668_v21 = vadd.f32 %v2663_v18, %v2648_v14  ;;  %v2711_v44 = vadd.f32 %v6450_v10, %v2691_v19  ;;  %v3658_v10 = vstv %s4087_s12  ;;  %v2882_v37 = vstv %s4049_s14  ;;  %v7156_v14 = vld [vmem:[#allocation82_spill] sm:$0xff] }
 0x6d2   : > { %3588 = vrot.lane.b32.xlu0 %v3585_v32, %s4247_s19  ;;  %3608 = vrot.lane.b32.xlu1 %v3605_v40, %s4247_s19  ;;  %v3659_v43 = vmul.f32 %v3658_v10, %v5675_v57  ;;  %v3660_v48 = vmul.f32 %v3658_v10, %v5672_v2  ;;  %v3661_v49 = vmul.f32 %v3658_v10, %v5709_v58  ;;  %v7157_v10 = vld [vmem:[#allocation77_spill] sm:$0xff] }
 0x6d3   : > { %3606 = vrot.lane.b32.xlu2 %v3603_v34, %s4247_s19  ;;  %v2690_v35 = vadd.f32 %v7151_v56, %v2668_v21  ;;  %v2733_v59 = vadd.f32 %v7152_v3, %v2711_v44  ;;  %s4088_s19 = sld [smem:[#allocation2 + $0x60]]  ;;  %v2884_v24 = vmul.f32 %v2882_v37, %v5672_v2  ;;  %v2885_v19 = vmul.f32 %v2882_v37, %v5709_v58 }
 0x6d4   : > { %v2705_v0 = vpop.permute.xlu0 %2704  ;;  %v2749_v42 = vpop.permute.xlu1 %2748  ;;  %v3665_v50 = vrot.slane %v3659_v43, 6  ;;  %v3666_v51 = vrot.slane %v3660_v48, 6  ;;  %v3668_v41 = vrot.slane %v3661_v49, 6  ;;  %v6567_v21 = vmul.f32 %v3700_v1, %v5672_v2  ;;  %v7159_v49 = vld [vmem:[#allocation85_spill] sm:$0xff] }
 0x6d5   : > { %v6541_v45 = vpop.permute.xlu2 %2993  ;;  %v2710_v54 = vadd.f32 %v2705_v0, %v2690_v35  ;;  %v2753_v16 = vadd.f32 %v2749_v42, %v2733_v59  ;;  %v2901_v40 = vmul.f32 %v2899_v9, %v5694_v20  ;;  %v2902_v44 = vmul.f32 %v2899_v9, %v6037_v6  ;;  %v7158_v42 = vld [vmem:[#allocation84_spill] sm:$0xff] }
 0x6d6   : > { %v3667_v53 = vsel %vm3462_vm4, %v3665_v50, %v3666_v51  ;;  %v3647_v7 = vsel %vm3462_vm4, %v3644_v62, %v3646_v5  ;;  %v3669_v34 = vsel %vm3462_vm4, %v3666_v51, %v3668_v41  ;;  %v2891_v35 = vrot.slane %v2884_v24, 4  ;;  %v7160_v24 = vld [vmem:[#allocation80_spill] sm:$0xff] }
 0x6d7   : > { %v2732_v17 = vadd.f32 %v7153_v12, %v2710_v54  ;;  %v2775_v4 = vadd.f32 %v7154_v36, %v2753_v16  ;;  %v2893_v3 = vrot.slane %v2885_v19, 4  ;;  %v2883_v11 = vmul.f32 %v2882_v37, %v5675_v57 }
 0x6d8   : > { %v3708_v62 = vrot.slane %v6567_v21, 6  ;;  %v2907_v33 = vrot.slane %v2901_v40, 4  ;;  %v2909_v43 = vrot.slane %v2902_v44, 4  ;;  %v7161_v44 = vld [vmem:[#allocation88_spill] sm:$0xff] }
 0x6d9   : > { %v2752_v55 = vadd.f32 %v6467_v46, %v2732_v17  ;;  %v3678_v8 = vstv %s4088_s19  ;;  %v2894_v60 = vsel %vm2889_vm3, %v2891_v35, %v2893_v3 }
 0x6da   : > { %3628 = vrot.lane.b32.xlu0 %v3625_v31, %s4248_s24  ;;  %3648 = vrot.lane.b32.xlu1 %v3645_v26, %s4248_s24  ;;  %v3680_v22 = vmul.f32 %v3678_v8, %v5694_v20  ;;  %v3679_v56 = vmul.f32 %v3678_v8, %v5994_v39  ;;  %v3681_v59 = vmul.f32 %v3678_v8, %v6037_v6  ;;  %v2890_v26 = vrot.slane %v2883_v11, 4 }
 0x6db   : > { %3630 = vrot.lane.b32.xlu2 %v3627_v25, %s4248_s24  ;;  %v2774_v63 = vadd.f32 %v7155_v29, %v2752_v55  ;;  %v2900_v55 = vmul.f32 %v2899_v9, %v5994_v39  ;;  %v3709_v36 = vsel %vm3462_vm4, %v3707_v23, %v3708_v62  ;;  %v3720_v29 = vstv %s6571_s20 }
 0x6dc   : > { %v2791_v18 = vpop.permute.xlu0 %2790  ;;  %v2789_v47 = vpop.permute.xlu1 %2788  ;;  %v3686_v54 = vrot.slane %v3680_v22, 6  ;;  %v3685_v28 = vrot.slane %v3679_v56, 6  ;;  %v3688_v31 = vrot.slane %v3681_v59, 6  ;;  %v2892_v41 = vsel %vm2889_vm3, %v2890_v26, %v2891_v35 }
 0x6dd   : > { %v6558_v46 = vpop.permute.xlu2 %3033  ;;  %v2795_v27 = vadd.f32 %v2791_v18, %v2775_v4  ;;  %v2794_v32 = vadd.f32 %v2789_v47, %v2774_v63  ;;  %v2910_v4 = vsel %vm2889_vm3, %v2907_v33, %v2909_v43  ;;  %v3703_v63 = vmul.f32 %v3700_v1, %v5709_v58  ;;  %v7165_v43 = vld [vmem:[#allocation91_spill] sm:$0xff] }
 0x6de   : > { %v3687_v51 = vsel %vm3462_vm4, %v3685_v28, %v3686_v54  ;;  %v3722_v47 = vmul.f32 %v3720_v29, %v5694_v20  ;;  %v3689_v5 = vsel %vm3462_vm4, %v3686_v54, %v3688_v31 }
 0x6df   : > { %v2817_v30 = vadd.f32 %v7156_v14, %v2795_v27  ;;  %v2816_v0 = vadd.f32 %v7157_v10, %v2794_v32  ;;  %v3723_v27 = vmul.f32 %v3720_v29, %v6037_v6  ;;  %v3710_v32 = vrot.slane %v3703_v63, 6 }
 0x6e0   : > { %v3728_v21 = vrot.slane %v3722_v47, 6 }
 0x6e1   : > { %v2837_v61 = vadd.f32 %v6496_v52, %v2817_v30  ;;  %v3721_v30 = vmul.f32 %v3720_v29, %v5994_v39  ;;  %v3730_v40 = vrot.slane %v3723_v27, 6  ;;  %v3711_v3 = vsel %vm3462_vm4, %v3708_v62, %v3710_v32 }
 0x6e2   : > { %3650 = vrot.lane.b32.xlu0 %v3647_v7, %s4248_s24  ;;  %3672 = vrot.lane.b32.xlu1 %v3669_v34, %s4249_s25  ;;  %v7162_v34 = vld [vmem:[#allocation87_spill] sm:$0xff]  ;;  %s4063_s24 = sld [smem:[#allocation2 + $0x23]] }
 0x6e3   : > { %3670 = vrot.lane.b32.xlu2 %v3667_v53, %s4249_s25  ;;  %v2859_v15 = vadd.f32 %v7158_v42, %v2837_v61  ;;  %v2906_v53 = vrot.slane %v2900_v55, 4  ;;  %v3727_v56 = vrot.slane %v3721_v30, 6  ;;  %v3731_v59 = vsel %vm3462_vm4, %v3728_v21, %v3730_v40 }
 0x6e4   : > { %v2831_v52 = vpop.permute.xlu0 %2830  ;;  %v2875_v16 = vpop.permute.xlu1 %2874 }
 0x6e5   : > { %v6585_v48 = vpop.permute.xlu2 %3119  ;;  %v2836_v12 = vadd.f32 %v2831_v52, %v2816_v0  ;;  %v2879_v17 = vadd.f32 %v2875_v16, %v2859_v15  ;;  %v2908_v8 = vsel %vm2889_vm3, %v2906_v53, %v2907_v33  ;;  %v3729_v10 = vsel %vm3462_vm4, %v3727_v56, %v3728_v21  ;;  %v7163_v0 = vld [vmem:[#allocation83_spill] sm:$0xff]  ;;  %v7164_v15 = vld [vmem:[#allocation90_spill] sm:$0xff]  ;;  %v7169_v53 = vld [vmem:[#allocation89_spill] sm:$0xff] }
 0x6e7   : > { %v2858_v25 = vadd.f32 %v7159_v49, %v2836_v12  ;;  %v2898_v50 = vadd.f32 %v2894_v60, %v2879_v17  ;;  %v7166_v17 = vld [vmem:[#allocation86_spill] sm:$0xff]  ;;  %v7167_v60 = vld [vmem:[#allocation93_spill] sm:$0xff] }
 0x6e8   : > { %v3169_v26 = vstv %s4063_s24 }
 0x6e9   : > { %v2878_v37 = vadd.f32 %v6520_v38, %v2858_v25  ;;  %v2914_v18 = vadd.f32 %v2910_v4, %v2898_v50  ;;  %v7168_v4 = vld [vmem:[#allocation94_spill] sm:$0xff] }
 0x6ea   : > { %3690 = vrot.lane.b32.xlu0 %v3687_v51, %s4249_s25  ;;  %3712 = vrot.lane.b32.xlu1 %v3709_v36, %s4250_s27  ;;  %v3171_v51 = vmul.f32 %v3169_v26, %v5672_v2  ;;  %v3172_v36 = vmul.f32 %v3169_v26, %v5709_v58 }
 0x6eb   : > { %3692 = vrot.lane.b32.xlu2 %v3689_v5, %s4249_s25  ;;  %v2936_v1 = vadd.f32 %v7160_v24, %v2914_v18  ;;  %v2897_v19 = vadd.f32 %v2892_v41, %v2878_v37  ;;  %s4064_s25 = sld [smem:[#allocation2 + $0x54]]  ;;  %v3170_v41 = vmul.f32 %v3169_v26, %v5675_v57 }
 0x6ec   : > { %v2952_v38 = vpop.permute.xlu0 %2951  ;;  %v2950_v14 = vpop.permute.xlu1 %2949  ;;  %v3177_v27 = vrot.slane %v3171_v51, 5  ;;  %v3179_v5 = vrot.slane %v3172_v36, 5 }
 0x6ed   : > { %v3160_v22 = vpop.permute.xlu2 %3159  ;;  %v2956_v9 = vadd.f32 %v2952_v38, %v2936_v1  ;;  %v2913_v13 = vadd.f32 %v2908_v8, %v2897_v19  ;;  %v7170_v1 = vld [vmem:[#allocation96_spill] sm:$0xff]  ;;  %v3176_v40 = vrot.slane %v3170_v41, 5 }
 0x6ee   : > { %v3180_v21 = vsel %vm1808_vm14, %v3177_v27, %v3179_v5 }
 0x6ef   : > { %v2978_v7 = vadd.f32 %v7161_v44, %v2956_v9  ;;  %v2935_v61 = vadd.f32 %v7162_v34, %v2913_v13  ;;  %v7171_v44 = vld [vmem:[#allocation97_spill] sm:$0xff] }
 0x6f1   : > { %v2955_v35 = vadd.f32 %v2950_v14, %v2935_v61  ;;  %v2998_v11 = vadd.f32 %v6541_v45, %v2978_v7  ;;  %v3185_v37 = vstv %s4064_s25 }
 0x6f2   : > { %3714 = vrot.lane.b32.xlu0 %v3711_v3, %s4250_s27  ;;  %3734 = vrot.lane.b32.xlu1 %v3731_v59, %s4250_s27  ;;  %v3187_v18 = vmul.f32 %v3185_v37, %v5694_v20  ;;  %v3178_v3 = vsel %vm1808_vm14, %v3176_v40, %v3177_v27  ;;  %v7181_v40 = vld [vmem:[#allocation106_spill] sm:$0xff] }
 0x6f3   : > { %3732 = vrot.lane.b32.xlu2 %v3729_v10, %s4250_s27  ;;  %v2977_v42 = vadd.f32 %v7163_v0, %v2955_v35  ;;  %v3020_v54 = vadd.f32 %v7164_v15, %v2998_v11  ;;  %v7172_v11 = vld [vmem:[#allocation92_spill] sm:$0xff]  ;;  %s4077_s27 = sld [smem:[#allocation2 + $0x2a]] }
 0x6f4   : > { %v2992_v52 = vpop.permute.xlu0 %2991  ;;  %v3036_v16 = vpop.permute.xlu1 %3035  ;;  %v3193_v14 = vrot.slane %v3187_v18, 5 }
 0x6f5   : > { %v3280_v23 = vpop.permute.xlu2 %3279  ;;  %v2997_v62 = vadd.f32 %v2992_v52, %v2977_v42  ;;  %v3040_v33 = vadd.f32 %v3036_v16, %v3020_v54 }
 0x6f7   : > { %v3019_v45 = vadd.f32 %v7165_v43, %v2997_v62  ;;  %v3062_v28 = vadd.f32 %v7166_v17, %v3040_v33  ;;  %v7173_v33 = vld [vmem:[#allocation100_spill] sm:$0xff] }
 0x6f9   : > { %v3039_v12 = vadd.f32 %v6558_v46, %v3019_v45  ;;  %v3188_v46 = vmul.f32 %v3185_v37, %v6037_v6  ;;  %v7174_v45 = vld [vmem:[#allocation99_spill] sm:$0xff]  ;;  %v3455_v18 = vstv %s4077_s27 }
 0x6fa   : > { %v3457_v5 = vmul.f32 %v3455_v18, %v5672_v2  ;;  %v3458_v41 = vmul.f32 %v3455_v18, %v5709_v58 }
 0x6fb   : > { %v3061_v31 = vadd.f32 %v7167_v60, %v3039_v12  ;;  %v3195_v30 = vrot.slane %v3188_v46, 5 }
 0x6fc   : > { %v3078_v55 = vpop.permute.xlu0 %3077  ;;  %v3076_v49 = vpop.permute.xlu1 %3075 }
 0x6fd   : > { %v3320_v25 = vpop.permute.xlu2 %3319  ;;  %v3082_v50 = vadd.f32 %v3078_v55, %v3062_v28  ;;  %v3081_v63 = vadd.f32 %v3076_v49, %v3061_v31  ;;  %v3196_v61 = vsel %vm1808_vm14, %v3193_v14, %v3195_v30  ;;  %v7175_v28 = vld [vmem:[#allocation95_spill] sm:$0xff]  ;;  %v7176_v31 = vld [vmem:[#allocation102_spill] sm:$0xff] }
 0x6ff   : > { %v3104_v29 = vadd.f32 %v7168_v4, %v3082_v50  ;;  %v3103_v24 = vadd.f32 %v7169_v53, %v3081_v63  ;;  %v7177_v4 = vld [vmem:[#allocation103_spill] sm:$0xff]  ;;  %v7178_v63 = vld [vmem:[#allocation98_spill] sm:$0xff]  ;;  %v7179_v53 = vld [vmem:[#allocation105_spill] sm:$0xff] }
 0x701   : > { %v3124_v47 = vadd.f32 %v6585_v48, %v3104_v29  ;;  %v3186_v48 = vmul.f32 %v3185_v37, %v5994_v39 }
 0x703   : > { %v3146_v19 = vadd.f32 %v7170_v1, %v3124_v47  ;;  %v3192_v59 = vrot.slane %v3186_v48, 5  ;;  %v3472_v1 = vstv %s4078_s22 }
 0x704   : > { %v3118_v38 = vpop.permute.xlu0 %3117  ;;  %v3162_v8 = vpop.permute.xlu1 %3161 }
 0x705   : > { %v3406_v32 = vpop.permute.xlu2 %3405  ;;  %v3123_v9 = vadd.f32 %v3118_v38, %v3103_v24  ;;  %v3166_v13 = vadd.f32 %v3162_v8, %v3146_v19  ;;  %v3194_v15 = vsel %vm1808_vm14, %v3192_v59, %v3193_v14  ;;  %v3474_v19 = vmul.f32 %v3472_v1, %v5694_v20  ;;  %v7180_v8 = vld [vmem:[#allocation104_spill] sm:$0xff] }
 0x706   : > { %v3475_v38 = vmul.f32 %v3472_v1, %v6037_v6  ;;  %v7182_v6 = vld [vmem:[#allocation101_spill] sm:$0xff] }
 0x707   : > { %v3145_v7 = vadd.f32 %v7171_v44, %v3123_v9  ;;  %v3184_v34 = vadd.f32 %v3180_v21, %v3166_v13  ;;  %v3464_v9 = vrot.slane %v3457_v5, 6  ;;  %v3466_v13 = vrot.slane %v3458_v41, 6 }
 0x708   : > { %v3480_v2 = vrot.slane %v3474_v19, 6 }
 0x709   : > { %v3165_v56 = vadd.f32 %v3160_v22, %v3145_v7  ;;  %v3200_v35 = vadd.f32 %v3196_v61, %v3184_v34  ;;  %v3482_v7 = vrot.slane %v3475_v38, 6  ;;  %v3467_v61 = vsel %vm3462_vm4, %v3464_v9, %v3466_v13 }
 0x70b   : > { %v3222_v10 = vadd.f32 %v7172_v11, %v3200_v35  ;;  %v3183_v0 = vadd.f32 %v3178_v3, %v3165_v56  ;;  %v3483_v20 = vsel %vm3462_vm4, %v3480_v2, %v3482_v7 }
 0x70c   : > { %v3238_v42 = vpop.permute.xlu0 %3237  ;;  %v3236_v54 = vpop.permute.xlu1 %3235 }
 0x70d   : > { %v3242_v52 = vadd.f32 %v3238_v42, %v3222_v10  ;;  %v3199_v16 = vadd.f32 %v3194_v15, %v3183_v0  ;;  %v3446_v62 = vpop.permute.xlu2 %3445  ;;  %v3456_v42 = vmul.f32 %v3455_v18, %v5675_v57  ;;  %v7183_v15 = vld [vmem:[#allocation107_spill] sm:$0xff] }
 0x70f   : > { %v3264_v43 = vadd.f32 %v7173_v33, %v3242_v52  ;;  %v3221_v12 = vadd.f32 %v7174_v45, %v3199_v16  ;;  %v3463_v52 = vrot.slane %v3456_v42, 6  ;;  %v3473_v33 = vmul.f32 %v3472_v1, %v5994_v39 }
 0x711   : > { %v3241_v17 = vadd.f32 %v3236_v54, %v3221_v12  ;;  %v3284_v22 = vadd.f32 %v3280_v23, %v3264_v43 }
 0x713   : > { %v3263_v60 = vadd.f32 %v7175_v28, %v3241_v17  ;;  %v3306_v26 = vadd.f32 %v7176_v31, %v3284_v22  ;;  %v3465_v17 = vsel %vm3462_vm4, %v3463_v52, %v3464_v9  ;;  %v3479_v31 = vrot.slane %v3473_v33, 6  ;;  %v7187_v52 = vld [vmem:[#allocation7_spill] sm:$0xff]  ;;  %v7188_v33 = vld [vmem:[#allocation28_spill] sm:$0xff] }
 0x714   : > { %v3278_v55 = vpop.permute.xlu0 %3277  ;;  %v3322_v49 = vpop.permute.xlu1 %3321 }
 0x715   : > { %v3283_v50 = vadd.f32 %v3278_v55, %v3263_v60  ;;  %v3326_v51 = vadd.f32 %v3322_v49, %v3306_v26  ;;  %v3505_v36 = vpop.permute.xlu2 %3504  ;;  %v3481_v55 = vsel %vm3462_vm4, %v3479_v31, %v3480_v2 }
 0x717   : > { %v3305_v29 = vadd.f32 %v7177_v4, %v3283_v50  ;;  %v3348_v37 = vadd.f32 %v7178_v63, %v3326_v51 }
 0x719   : > { %v3325_v23 = vadd.f32 %v3320_v25, %v3305_v29 }
 0x71b   : > { %v3347_v14 = vadd.f32 %v7180_v8, %v3325_v23 }
 0x71c   : > { %v3364_v46 = vpop.permute.xlu0 %3363  ;;  %v3362_v47 = vpop.permute.xlu1 %3361 }
 0x71d   : > { %v3368_v27 = vadd.f32 %v3364_v46, %v3348_v37  ;;  %v3545_v21 = vpop.permute.xlu2 %3544  ;;  %v3367_v58 = vadd.f32 %v3362_v47, %v3347_v14 }
 0x71f   : > { %v3390_v24 = vadd.f32 %v7179_v53, %v3368_v27  ;;  %v3389_v35 = vadd.f32 %v7182_v6, %v3367_v58 }
 0x721   : > { %v3410_v30 = vadd.f32 %v3406_v32, %v3390_v24 }
 0x723   : > { %v3432_v48 = vadd.f32 %v7181_v40, %v3410_v30 }
 0x724   : > { %v3404_v25 = vpop.permute.xlu0 %3403  ;;  %v3448_v44 = vpop.permute.xlu1 %3447 }
 0x725   : > { %v3452_v34 = vadd.f32 %v3448_v44, %v3432_v48  ;;  %v3409_v32 = vadd.f32 %v3404_v25, %v3389_v35  ;;  %v3567_v0 = vpop.permute.xlu2 %3566 }
 0x727   : > { %v3471_v56 = vadd.f32 %v3467_v61, %v3452_v34  ;;  %v3431_v54 = vadd.f32 %v7183_v15, %v3409_v32  ;;  %v7186_v15 = vld [vmem:[#allocation23_spill] sm:$0xff] }
 0x729   : > { %v3487_v3 = vadd.f32 %v3483_v20, %v3471_v56  ;;  %v3451_v16 = vadd.f32 %v3446_v62, %v3431_v54 }
 0x72b   : > { %v3509_v59 = vadd.f32 %v3505_v36, %v3487_v3  ;;  %v3470_v28 = vadd.f32 %v3465_v17, %v3451_v16 }
 0x72c   : > { %v3503_v11 = vpop.permute.xlu0 %3502  ;;  %v3523_v10 = vpop.permute.xlu1 %3522 }
 0x72d   : > { %v3607_v22 = vpop.permute.xlu2 %3606  ;;  %v3486_v49 = vadd.f32 %v3481_v55, %v3470_v28 }
 0x72f   : > { %v3508_v51 = vadd.f32 %v3503_v11, %v3486_v49  ;;  %v7184_v11 = vld [vmem:[#allocation22_spill] sm:$0xff] }
 0x730   : > { %v7193_v49 = vld [vmem:[#allocation14_spill] sm:$0xff] }
 0x731   : > { %v3528_v62 = vadd.f32 %v3523_v10, %v3508_v51  ;;  %v7194_v51 = vld [vmem:[#allocation17_spill] sm:$0xff] }
 0x733   : > { %v3550_v29 = vadd.f32 %v3545_v21, %v3528_v62 }
 0x734   : > { %v3525_v43 = vpop.permute.xlu0 %3524  ;;  %v3547_v45 = vpop.permute.xlu1 %3546 }
 0x735   : > { %v3529_v12 = vadd.f32 %v3525_v43, %v3509_v59  ;;  %v3631_v36 = vpop.permute.xlu2 %3630 }
 0x737   : > { %v3551_v60 = vadd.f32 %v3547_v45, %v3529_v12  ;;  %v7189_v45 = vld [vmem:[#allocation27_spill] sm:$0xff] }
 0x739   : > { %v3571_v26 = vadd.f32 %v3567_v0, %v3551_v60  ;;  %v7185_v0 = vld [vmem:[#allocation5_spill] sm:$0xff] }
 0x73a   : > { %v7191_v60 = vld [vmem:[#allocation13_spill] sm:$0xff] }
 0x73c   : > { %v3565_v57 = vpop.permute.xlu0 %3564  ;;  %v3587_v50 = vpop.permute.xlu1 %3586 }
 0x73d   : > { %v3570_v63 = vadd.f32 %v3565_v57, %v3550_v29  ;;  %v3671_v37 = vpop.permute.xlu2 %3670  ;;  %v7196_v29 = vld [vmem:[#allocation15_spill] sm:$0xff] }
 0x73f   : > { %v3592_v47 = vadd.f32 %v3587_v50, %v3570_v63 }
 0x741   : > { %v3612_v27 = vadd.f32 %v3607_v22, %v3592_v47  ;;  %v7190_v22 = vld [vmem:[#allocation9_spill] sm:$0xff] }
 0x744   : > { %v3589_v4 = vpop.permute.xlu0 %3588  ;;  %v3609_v39 = vpop.permute.xlu1 %3608 }
 0x745   : > { %v3693_v53 = vpop.permute.xlu2 %3692  ;;  %v3593_v44 = vadd.f32 %v3589_v4, %v3571_v26  ;;  %v7192_v26 = vld [vmem:[#allocation24_spill] sm:$0xff] }
 0x746   : > { %v7195_v4 = vld [vmem:[#allocation16_spill] sm:$0xff] }
 0x747   : > { %v3613_v34 = vadd.f32 %v3609_v39, %v3593_v44 }
 0x749   : > { %v3635_v35 = vadd.f32 %v3631_v36, %v3613_v34 }
 0x74c   : > { %v3629_v18 = vpop.permute.xlu0 %3628  ;;  %v3649_v46 = vpop.permute.xlu1 %3648 }
 0x74d   : > { %v3634_v23 = vadd.f32 %v3629_v18, %v3612_v27  ;;  %v3733_v30 = vpop.permute.xlu2 %3732  ;;  %v7197_v18 = vld [vmem:[#allocation31_spill] sm:$0xff]  ;;  %v7198_v27 = vld [vmem:[#allocation37_spill] sm:$0xff] }
 0x74f   : > { %v3654_v24 = vadd.f32 %v3649_v46, %v3634_v23 }
 0x751   : > { %v3676_v1 = vadd.f32 %v3671_v37, %v3654_v24  ;;  %v7200_v24 = vld [vmem:[#allocation35_spill] sm:$0xff] }
 0x754   : > { %v3651_v5 = vpop.permute.xlu0 %3650  ;;  %v3673_v41 = vpop.permute.xlu1 %3672 }
 0x755   : > { %v3655_v59 = vadd.f32 %v3651_v5, %v3635_v35 }
 0x757   : > { %v3677_v17 = vadd.f32 %v3673_v41, %v3655_v59  ;;  %v7199_v41 = vld [vmem:[#allocation33_spill] sm:$0xff] }
 0x759   : > { %v3697_v62 = vadd.f32 %v3693_v53, %v3677_v17 }
 0x75c   : > { %v3691_v19 = vpop.permute.xlu0 %3690  ;;  %v3713_v8 = vpop.permute.xlu1 %3712 }
 0x75d   : > { %v3696_v38 = vadd.f32 %v3691_v19, %v3676_v1 }
 0x75f   : > { %v3718_v14 = vadd.f32 %v3713_v8, %v3696_v38  ;;  %v7201_v38 = vld [vmem:[#allocation43_spill] sm:$0xff] }
 0x761   : > { %v3738_v9 = vadd.f32 %v3733_v30, %v3718_v14  ;;  %v7202_v14 = vld [vmem:[#allocation39_spill] sm:$0xff] }
 0x763   : > { %v3740_v13 = vsub.f32 0.0, %v3738_v9 }
 0x764   : > { %v3715_v50 = vpop.permute.xlu0 %3714  ;;  %v3735_v47 = vpop.permute.xlu1 %3734 }
 0x765   : > { %v3742_v21 = vmul.f32 1.442695, %v3740_v13  ;;  %v3719_v37 = vadd.f32 %v3715_v50, %v3697_v62  ;;  %v7203_v13 = vld [vmem:[#allocation41_spill] sm:$0xff] }
 0x766   : > { %v7218_v62 = vld [vmem:[#allocation25_spill] sm:$0xff] }
 0x767   : > { %4143 = vpow2.f32 %v3742_v21  ;;  %v3739_v5 = vadd.f32 %v3735_v47, %v3719_v37  ;;  %v7222_v47 = vld [vmem:[#allocation19_spill] sm:$0xff] }
 0x769   : > { %v3741_v19 = vsub.f32 0.0, %v3739_v5 }
 0x76b   : > { %v3744_v9 = vmul.f32 1.442695, %v3741_v19  ;;  %v7226_v19 = vld [vmem:[#allocation11_spill] sm:$0xff] }
 0x76d   : > { %v4144_v40 = vpop.eup %4143 }
 0x76e   : > { %v3746_v48 = vadd.f32 1.0, %v4144_v40  ;;  %v7204_v40 = vld [vmem:[#allocation49_spill] sm:$0xff] }
 0x770   : > { %4145 = vrcp.f32 %v3746_v48  ;;  %v3759_v58 = vand.u32 2147483648, %v3746_v48  ;;  %v3757_v56 = vand.u32 2147483647, %v3746_v48  ;;  %vm3753_vm6 = vweird.f32 %v3746_v48 }
 0x771   : > { %4147 = vpow2.f32 %v3744_v9 }
 0x772   : > { %v3760_v6 = vor.u32 1.1754944e-38, %v3759_v58  ;;  %vm3758_vm8 = vcmp.eq.f32.partialorder %v3757_v56, 8.507059e+37  ;;  %v7207_v58 = vld [vmem:[#allocation55_spill] sm:$0xff] }
 0x776   : > { %v4146_v25 = vpop.eup %4145 }
 0x777   : > { %v3749_v2 = vmul.f32 %v4146_v25, %v3746_v48  ;;  %vm3754_vm5 = vweird.f32 %v4146_v25  ;;  %v4148_v35 = vpop.eup %4147 }
 0x778   : > { %vm3755_vm7 = vmor %vm3753_vm6, %vm3754_vm5 }
 0x779   : > { %v3750_v7 = vsub.f32 1.0, %v3749_v2  ;;  %v7206_v2 = vld [vmem:[#allocation47_spill] sm:$0xff] }
 0x77b   : > { %v3751_v61 = vmul.f32 %v4146_v25, %v3750_v7 }
 0x77d   : > { %v3752_v20 = vadd.f32 %v4146_v25, %v3751_v61  ;;  %v7208_v61 = vld [vmem:[#allocation51_spill] sm:$0xff] }
 0x77f   : > { %v3756_v3 = vsel %vm3755_vm7, %v4146_v25, %v3752_v20  ;;  %v7205_v25 = vld [vmem:[#allocation45_spill] sm:$0xff] }
 0x780   : > { %v6665_v32 = vsel %vm3758_vm8, %v3760_v6, %v3756_v3  ;;  %v7209_v20 = vld [vmem:[#allocation53_spill] sm:$0xff] }
 0x781   : > { %v3778_v10 = vmul.f32 %v6665_v32, %v7184_v11  ;;  %v3780_v42 = vmul.f32 %v6665_v32, %v7185_v0  ;;  %v3782_v54 = vmul.f32 %v6665_v32, %v7186_v15  ;;  %v3784_v16 = vmul.f32 %v6665_v32, %v7187_v52  ;;  %v7210_v3 = vld [vmem:[#allocation61_spill] sm:$0xff] }
 0x782   : > { %v3786_v43 = vmul.f32 %v6665_v32, %v7188_v33  ;;  %v3788_v12 = vmul.f32 %v6665_v32, %v7189_v45  ;;  %v3790_v28 = vmul.f32 %v6665_v32, %v7190_v22  ;;  %v3792_v31 = vmul.f32 %v6665_v32, %v7191_v60  ;;  %v7211_v11 = vld [vmem:[#allocation57_spill] sm:$0xff] }
 0x783   : > { %3842 = vst.msk [vmem:[%s6663_s28] sm:$0xff] %vm276_vm0, %v3778_v10  ;;  %v3794_v55 = vmul.f32 %v6665_v32, %v7192_v26  ;;  %v3796_v57 = vmul.f32 %v6665_v32, %v7193_v49  ;;  %v3798_v36 = vmul.f32 %v6665_v32, %v7194_v51  ;;  %v3800_v39 = vmul.f32 %v6665_v32, %v7195_v4  ;;  %v7217_v51 = vld [vmem:[#allocation20_spill] sm:$0xff] }
 0x784   : > { %3844 = vst.msk [vmem:[%s6663_s28 + $0x10] sm:$0xff] %vm276_vm0, %v3780_v42  ;;  %v3802_v63 = vmul.f32 %v6665_v32, %v7196_v29  ;;  %v3804_v46 = vmul.f32 %v6665_v32, %v7197_v18  ;;  %v3806_v23 = vmul.f32 %v6665_v32, %v7198_v27  ;;  %v3808_v53 = vmul.f32 %v6665_v32, %v7199_v41  ;;  %v7212_v42 = vld [vmem:[#allocation59_spill] sm:$0xff]  ;;  %v7221_v18 = vld [vmem:[#allocation10_spill] sm:$0xff] }
 0x785   : > { %3846 = vst.msk [vmem:[%s6663_s28 + $0x20] sm:$0xff] %vm276_vm0, %v3782_v54  ;;  %v3810_v1 = vmul.f32 %v6665_v32, %v7200_v24  ;;  %v3812_v8 = vmul.f32 %v6665_v32, %v7201_v38  ;;  %v3814_v30 = vmul.f32 %v6665_v32, %v7202_v14  ;;  %v3816_v21 = vmul.f32 %v6665_v32, %v7203_v13  ;;  %v7213_v54 = vld [vmem:[#allocation67_spill] sm:$0xff]  ;;  %v7224_v41 = vld [vmem:[#allocation26_spill] sm:$0xff]  ;;  %v7229_v13 = vld [vmem:[#allocation32_spill] sm:$0xff] }
 0x786   : > { %3848 = vst.msk [vmem:[%s6663_s28 + $0x30] sm:$0xff] %vm276_vm0, %v3784_v16  ;;  %v3818_v48 = vmul.f32 %v6665_v32, %v7204_v40  ;;  %v3820_v44 = vmul.f32 %v6665_v32, %v7205_v25  ;;  %v3822_v7 = vmul.f32 %v6665_v32, %v7206_v2  ;;  %v3824_v34 = vmul.f32 %v6665_v32, %v7207_v58  ;;  %v7214_v16 = vld [vmem:[#allocation63_spill] sm:$0xff]  ;;  %v7225_v24 = vld [vmem:[#allocation18_spill] sm:$0xff]  ;;  %v7232_v2 = vld [vmem:[#allocation36_spill] sm:$0xff] }
 0x787   : > { %3850 = vst.msk [vmem:[%s6663_s28 + $0x40] sm:$0xff] %vm276_vm0, %v3786_v43  ;;  %v3826_v56 = vmul.f32 %v6665_v32, %v7208_v61  ;;  %v3828_v6 = vmul.f32 %v6665_v32, %v7209_v20  ;;  %v3830_v59 = vmul.f32 %v6665_v32, %v7210_v3  ;;  %v3832_v10 = vmul.f32 %v6665_v32, %v7211_v11  ;;  %v7215_v43 = vld [vmem:[#allocation65_spill] sm:$0xff]  ;;  %v7230_v40 = vld [vmem:[#allocation38_spill] sm:$0xff]  ;;  %v7233_v58 = vld [vmem:[#allocation44_spill] sm:$0xff] }
 0x788   : > { %3852 = vst.msk [vmem:[%s6663_s28 + $0x50] sm:$0xff] %vm276_vm0, %v3788_v12  ;;  %v3747_v0 = vadd.f32 1.0, %v4148_v35  ;;  %v3834_v15 = vmul.f32 %v6665_v32, %v7212_v42  ;;  %v3836_v52 = vmul.f32 %v6665_v32, %v7213_v54  ;;  %v3838_v33 = vmul.f32 %v6665_v32, %v7214_v16  ;;  %v7231_v25 = vld [vmem:[#allocation34_spill] sm:$0xff]  ;;  %v7234_v61 = vld [vmem:[#allocation40_spill] sm:$0xff] }
 0x789   : > { %3854 = vst.msk [vmem:[%s6663_s28 + $0x60] sm:$0xff] %vm276_vm0, %v3790_v28  ;;  %v3840_v45 = vmul.f32 %v6665_v32, %v7215_v43  ;;  %v7235_v20 = vld [vmem:[#allocation42_spill] sm:$0xff]  ;;  %v7239_v42 = vld [vmem:[#allocation56_spill] sm:$0xff] }
 0x78a   : > { %3856 = vst.msk [vmem:[%s6663_s28 + $0x70] sm:$0xff] %vm276_vm0, %v3792_v31  ;;  %4149 = vrcp.f32 %v3747_v0  ;;  %v3774_v28 = vand.u32 2147483648, %v3747_v0  ;;  %v3772_v31 = vand.u32 2147483647, %v3747_v0  ;;  %vm3768_vm10 = vweird.f32 %v3747_v0  ;;  %v7236_v35 = vld [vmem:[#allocation50_spill] sm:$0xff]  ;;  %v7240_v54 = vld [vmem:[#allocation52_spill] sm:$0xff] }
 0x78b   : > { %3858 = vst.msk [vmem:[%s6663_s28 + $0x80] sm:$0xff] %vm276_vm0, %v3794_v55  ;;  %v7241_v16 = vld [vmem:[#allocation54_spill] sm:$0xff] }
 0x78c   : > { %3860 = vst.msk [vmem:[%s6663_s28 + $0x90] sm:$0xff] %vm276_vm0, %v3796_v57  ;;  %v3775_v26 = vor.u32 1.1754944e-38, %v3774_v28  ;;  %vm3773_vm12 = vcmp.eq.f32.partialorder %v3772_v31, 8.507059e+37  ;;  %v7216_v57 = vld [vmem:[#allocation6_spill] sm:$0xff] }
 0x78d   : > { %3862 = vst.msk [vmem:[%s6663_s28 + $0xa0] sm:$0xff] %vm276_vm0, %v3798_v36  ;;  %v7242_v43 = vld [vmem:[#allocation62_spill] sm:$0xff] }
 0x78e   : > { %3864 = vst.msk [vmem:[%s6663_s28 + $0xb0] sm:$0xff] %vm276_vm0, %v3800_v39  ;;  %v7219_v39 = vld [vmem:[#allocation12_spill] sm:$0xff] }
 0x78f   : > { %3866 = vst.msk [vmem:[%s6663_s28 + $0xc0] sm:$0xff] %vm276_vm0, %v3802_v63  ;;  %v7220_v63 = vld [vmem:[#allocation8_spill] sm:$0xff] }
 0x790   : > { %3868 = vst.msk [vmem:[%s6663_s28 + $0xd0] sm:$0xff] %vm276_vm0, %v3804_v46  ;;  %v4150_v12 = vpop.eup %4149 }
 0x791   : > { %3870 = vst.msk [vmem:[%s6663_s28 + $0xe0] sm:$0xff] %vm276_vm0, %v3806_v23  ;;  %v3764_v17 = vmul.f32 %v4150_v12, %v3747_v0  ;;  %vm3769_vm9 = vweird.f32 %v4150_v12  ;;  %v7223_v23 = vld [vmem:[#allocation21_spill] sm:$0xff] }
 0x792   : > { %3872 = vst.msk [vmem:[%s6663_s28 + $0xf0] sm:$0xff] %vm276_vm0, %v3808_v53  ;;  %vm3770_vm11 = vmor %vm3768_vm10, %vm3769_vm9 }
 0x793   : > { %3874 = vst.msk [vmem:[%s6663_s28 + $0x100] sm:$0xff] %vm276_vm0, %v3810_v1  ;;  %v3765_v22 = vsub.f32 1.0, %v3764_v17 }
 0x794   : > { %3876 = vst.msk [vmem:[%s6663_s28 + $0x110] sm:$0xff] %vm276_vm0, %v3812_v8  ;;  %v7227_v8 = vld [vmem:[#allocation30_spill] sm:$0xff] }
 0x795   : > { %3878 = vst.msk [vmem:[%s6663_s28 + $0x120] sm:$0xff] %vm276_vm0, %v3814_v30  ;;  %v3766_v60 = vmul.f32 %v4150_v12, %v3765_v22  ;;  %v7228_v30 = vld [vmem:[#allocation29_spill] sm:$0xff]  ;;  %v7244_v22 = vld [vmem:[#allocation60_spill] sm:$0xff] }
 0x796   : > { %3880 = vst.msk [vmem:[%s6663_s28 + $0x130] sm:$0xff] %vm276_vm0, %v3816_v21 }
 0x797   : > { %3882 = vst.msk [vmem:[%s6663_s28 + $0x140] sm:$0xff] %vm276_vm0, %v3818_v48  ;;  %v3767_v32 = vadd.f32 %v4150_v12, %v3766_v60  ;;  %v7245_v60 = vld [vmem:[#allocation68_spill] sm:$0xff] }
 0x798   : > { %3884 = vst.msk [vmem:[%s6663_s28 + $0x150] sm:$0xff] %vm276_vm0, %v3820_v44 }
 0x799   : > { %3886 = vst.msk [vmem:[%s6663_s28 + $0x160] sm:$0xff] %vm276_vm0, %v3822_v7  ;;  %v3771_v55 = vsel %vm3770_vm11, %v4150_v12, %v3767_v32  ;;  %v7243_v12 = vld [vmem:[#allocation58_spill] sm:$0xff]  ;;  %v7246_v32 = vld [vmem:[#allocation64_spill] sm:$0xff] }
 0x79a   : > { %3888 = vst.msk [vmem:[%s6663_s28 + $0x170] sm:$0xff] %vm276_vm0, %v3824_v34  ;;  %v3776_v49 = vsel %vm3773_vm12, %v3775_v26, %v3771_v55  ;;  %v7247_v55 = vld [vmem:[#allocation66_spill] sm:$0xff] }
 0x79b   : > { %3890 = vst.msk [vmem:[%s6663_s28 + $0x180] sm:$0xff] %vm276_vm0, %v3826_v56  ;;  %v3779_v50 = vmul.f32 %v3776_v49, %v7216_v57  ;;  %v3781_v36 = vmul.f32 %v3776_v49, %v7217_v51  ;;  %v3783_v4 = vmul.f32 %v3776_v49, %v7218_v62  ;;  %v3785_v29 = vmul.f32 %v3776_v49, %v7219_v39 }
 0x79c   : > { %3892 = vst.msk [vmem:[%s6663_s28 + $0x190] sm:$0xff] %vm276_vm0, %v3828_v6  ;;  %v3787_v37 = vmul.f32 %v3776_v49, %v7220_v63  ;;  %v3789_v46 = vmul.f32 %v3776_v49, %v7221_v18  ;;  %v3791_v27 = vmul.f32 %v3776_v49, %v7222_v47  ;;  %v3793_v5 = vmul.f32 %v3776_v49, %v7223_v23 }
 0x79d   : > { %3894 = vst.msk [vmem:[%s6663_s28 + $0x1a0] sm:$0xff] %vm276_vm0, %v3830_v59  ;;  %v3795_v53 = vmul.f32 %v3776_v49, %v7224_v41  ;;  %v3797_v1 = vmul.f32 %v3776_v49, %v7225_v24  ;;  %v3799_v38 = vmul.f32 %v3776_v49, %v7226_v19  ;;  %v3801_v14 = vmul.f32 %v3776_v49, %v7227_v8  ;;  %v7237_v59 = vld [vmem:[#allocation46_spill] sm:$0xff] }
 0x79e   : > { %3896 = vst.msk [vmem:[%s6663_s28 + $0x1b0] sm:$0xff] %vm276_vm0, %v3832_v10  ;;  %v3803_v9 = vmul.f32 %v3776_v49, %v7228_v30  ;;  %v3805_v21 = vmul.f32 %v3776_v49, %v7229_v13  ;;  %v3807_v48 = vmul.f32 %v3776_v49, %v7230_v40  ;;  %v3809_v44 = vmul.f32 %v3776_v49, %v7231_v25  ;;  %v7238_v10 = vld [vmem:[#allocation48_spill] sm:$0xff] }
 0x79f   : > { %3898 = vst.msk [vmem:[%s6663_s28 + $0x1c0] sm:$0xff] %vm276_vm0, %v3834_v15  ;;  %v3811_v7 = vmul.f32 %v3776_v49, %v7232_v2  ;;  %v3813_v34 = vmul.f32 %v3776_v49, %v7233_v58  ;;  %v3815_v56 = vmul.f32 %v3776_v49, %v7234_v61  ;;  %v3817_v6 = vmul.f32 %v3776_v49, %v7235_v20 }
 0x7a0   : > { %3900 = vst.msk [vmem:[%s6663_s28 + $0x1d0] sm:$0xff] %vm276_vm0, %v3836_v52  ;;  %v3819_v3 = vmul.f32 %v3776_v49, %v7236_v35  ;;  %v3821_v11 = vmul.f32 %v3776_v49, %v7237_v59  ;;  %v3823_v0 = vmul.f32 %v3776_v49, %v7238_v10  ;;  %v3825_v15 = vmul.f32 %v3776_v49, %v7239_v42 }
 0x7a1   : > { %3902 = vst.msk [vmem:[%s6663_s28 + $0x1e0] sm:$0xff] %vm276_vm0, %v3838_v33  ;;  %v3827_v52 = vmul.f32 %v3776_v49, %v7240_v54  ;;  %v3829_v33 = vmul.f32 %v3776_v49, %v7241_v16  ;;  %v3833_v17 = vmul.f32 %v3776_v49, %v7243_v12  ;;  %v3835_v28 = vmul.f32 %v3776_v49, %v7244_v22 }
 0x7a2   : > { %3904 = vst.msk [vmem:[%s6663_s28 + $0x1f0] sm:$0xff] %vm276_vm0, %v3840_v45  ;;  %v3831_v45 = vmul.f32 %v3776_v49, %v7242_v43  ;;  %v3837_v31 = vmul.f32 %v3776_v49, %v7245_v60  ;;  %v3839_v26 = vmul.f32 %v3776_v49, %v7246_v32  ;;  %v3841_v57 = vmul.f32 %v3776_v49, %v7247_v55 }
 0x7a3   : > { %3843 = vst.msk [vmem:[%s6663_s28 + $0x8] sm:$0xff] %vm276_vm0, %v3779_v50 }
 0x7a4   : > { %3845 = vst.msk [vmem:[%s6663_s28 + $0x18] sm:$0xff] %vm276_vm0, %v3781_v36 }
 0x7a5   : > { %3847 = vst.msk [vmem:[%s6663_s28 + $0x28] sm:$0xff] %vm276_vm0, %v3783_v4 }
 0x7a6   : > { %3849 = vst.msk [vmem:[%s6663_s28 + $0x38] sm:$0xff] %vm276_vm0, %v3785_v29 }
 0x7a7   : > { %3851 = vst.msk [vmem:[%s6663_s28 + $0x48] sm:$0xff] %vm276_vm0, %v3787_v37 }
 0x7a8   : > { %3853 = vst.msk [vmem:[%s6663_s28 + $0x58] sm:$0xff] %vm276_vm0, %v3789_v46 }
 0x7a9   : > { %3855 = vst.msk [vmem:[%s6663_s28 + $0x68] sm:$0xff] %vm276_vm0, %v3791_v27 }
 0x7aa   : > { %3857 = vst.msk [vmem:[%s6663_s28 + $0x78] sm:$0xff] %vm276_vm0, %v3793_v5 }
 0x7ab   : > { %3859 = vst.msk [vmem:[%s6663_s28 + $0x88] sm:$0xff] %vm276_vm0, %v3795_v53 }
 0x7ac   : > { %3861 = vst.msk [vmem:[%s6663_s28 + $0x98] sm:$0xff] %vm276_vm0, %v3797_v1 }
 0x7ad   : > { %3863 = vst.msk [vmem:[%s6663_s28 + $0xa8] sm:$0xff] %vm276_vm0, %v3799_v38 }
 0x7ae   : > { %3865 = vst.msk [vmem:[%s6663_s28 + $0xb8] sm:$0xff] %vm276_vm0, %v3801_v14 }
 0x7af   : > { %3867 = vst.msk [vmem:[%s6663_s28 + $0xc8] sm:$0xff] %vm276_vm0, %v3803_v9 }
 0x7b0   : > { %3869 = vst.msk [vmem:[%s6663_s28 + $0xd8] sm:$0xff] %vm276_vm0, %v3805_v21 }
 0x7b1   : > { %3871 = vst.msk [vmem:[%s6663_s28 + $0xe8] sm:$0xff] %vm276_vm0, %v3807_v48 }
 0x7b2   : > { %3873 = vst.msk [vmem:[%s6663_s28 + $0xf8] sm:$0xff] %vm276_vm0, %v3809_v44 }
 0x7b3   : > { %3875 = vst.msk [vmem:[%s6663_s28 + $0x108] sm:$0xff] %vm276_vm0, %v3811_v7 }
 0x7b4   : > { %3877 = vst.msk [vmem:[%s6663_s28 + $0x118] sm:$0xff] %vm276_vm0, %v3813_v34 }
 0x7b5   : > { %3879 = vst.msk [vmem:[%s6663_s28 + $0x128] sm:$0xff] %vm276_vm0, %v3815_v56 }
 0x7b6   : > { %3881 = vst.msk [vmem:[%s6663_s28 + $0x138] sm:$0xff] %vm276_vm0, %v3817_v6 }
 0x7b7   : > { %3883 = vst.msk [vmem:[%s6663_s28 + $0x148] sm:$0xff] %vm276_vm0, %v3819_v3 }
 0x7b8   : > { %3885 = vst.msk [vmem:[%s6663_s28 + $0x158] sm:$0xff] %vm276_vm0, %v3821_v11 }
 0x7b9   : > { %3887 = vst.msk [vmem:[%s6663_s28 + $0x168] sm:$0xff] %vm276_vm0, %v3823_v0 }
 0x7ba   : > { %3889 = vst.msk [vmem:[%s6663_s28 + $0x178] sm:$0xff] %vm276_vm0, %v3825_v15 }
 0x7bb   : > { %3891 = vst.msk [vmem:[%s6663_s28 + $0x188] sm:$0xff] %vm276_vm0, %v3827_v52 }
 0x7bc   : > { %3893 = vst.msk [vmem:[%s6663_s28 + $0x198] sm:$0xff] %vm276_vm0, %v3829_v33 }
 0x7bd   : > { %3895 = vst.msk [vmem:[%s6663_s28 + $0x1a8] sm:$0xff] %vm276_vm0, %v3831_v45 }
 0x7be   : > { %3897 = vst.msk [vmem:[%s6663_s28 + $0x1b8] sm:$0xff] %vm276_vm0, %v3833_v17 }
 0x7bf   : > { %3899 = vst.msk [vmem:[%s6663_s28 + $0x1c8] sm:$0xff] %vm276_vm0, %v3835_v28 }
 0x7c0   : > { %3901 = vst.msk [vmem:[%s6663_s28 + $0x1d8] sm:$0xff] %vm276_vm0, %v3837_v31 }
 0x7c1   : > { %3903 = vst.msk [vmem:[%s6663_s28 + $0x1e8] sm:$0xff] %vm276_vm0, %v3839_v26 }
 0x7c2   : > { %3905 = vst.msk [vmem:[%s6663_s28 + $0x1f8] sm:$0xff] %vm276_vm0, %v3841_v57 }
 0x7c3 PF: > { %s15_s15 = sadd.s32 1, %s4240_s15  }
 0x7c4   : > { %p12_p7 = scmp.ge.s32.totalorder %s15_s15, 4  }
 0x7c6   :  { %14 = sbr.rel (!%p12_p7) target bundleno = 1 (0x1), region = 71 }
 0x7cb   :  { %3927 = vsyncpa [#allocation3], 1 }
 0x7cc   :  { %3929 = vsyncpa [#allocation3 + $0x1], 1 }

</bundles_post_ra>
